<compile_context>
chip_gen: v7x
topology: tpu7x:2x2x1
jax: 0.10.0
libtpu: 0.0.40
codegen_flags: <defaults>
</compile_context>

<pallas_src>
import math
import functools

import jax
import jax.numpy as jnp
from jax.experimental import pallas as pl
from jax.experimental.pallas import tpu as pltpu

NEG_SLOPE = 0.01      # nn.LeakyReLU default negative slope
EPS_DENOM = 1e-8      # clamp_min in LorentzLinear
EPS_LOG = 1e-6        # log(ass + 1e-6)
NEG_INF = -1e30       # masked-softmax sentinel (f32-safe)
A_PAD = 128           # lane-dense padding of the assignment dimension


def _pick_tile(n, candidates):
    for c in candidates:
        if c <= n and n % c == 0:
            return c
    return n


# ----------------------------------------------------------------------------
# Prologue: per-node projections (hoisted out of the N^2 stage)
# ----------------------------------------------------------------------------
def _prologue_kernel(num_assign,
                     x_ref, wass_ref, wq_ref, wk_ref, wsm_ref,
                     sq_scale_ref, sk_scale_ref,
                     ass_ref, sq_ref, kw_ref):
    x = x_ref[...]                                               # (TM, F)

    # ---- ass = softmax(assign_linear(logmap0(x)))
    # logmap0 zeroes the time column (row 0 of wass is pre-zeroed in the
    # wrapper), so logmap0(x) @ wass == coef * (x @ wass).
    t = jnp.maximum(x[:, 0:1], 1.0 + 1e-7)
    acosh_t = jnp.log(t + jnp.sqrt(t * t - 1.0))
    coef = acosh_t / jnp.sqrt(jnp.maximum(t * t - 1.0, 1e-15))   # (TM, 1)
    logits = coef * jnp.dot(x, wass_ref[...],
                            preferred_element_type=jnp.float32)  # (TM, A_PAD)
    col = jax.lax.broadcasted_iota(jnp.int32, logits.shape, 1)
    logits = jnp.where(col < num_assign, logits, NEG_INF)        # mask pad lanes
    m = jnp.max(logits, axis=-1, keepdims=True)
    e = jnp.exp(logits - m)
    probs = e * pl.reciprocal(jnp.sum(e, axis=-1, keepdims=True), approx=True)
    # Spare lane `num_assign` carries 1.0 so p @ ass also produces the softmax
    # row-sum l in the main kernel (row-sum folded into the MXU, XLU freed).
    probs = jnp.where(col < num_assign, probs,
                      jnp.where(col == num_assign, 1.0, 0.0))
    ass_ref[...] = probs.astype(ass_ref.dtype)                   # bf16 MXU feed

    # ---- LorentzLinear folded into its scalar map:
    #      q . w1  =  time*w1[0] + sqrt(sc) * (y@w1 - y0*w1[0])
    wsm = wsm_ref[...]                                           # (2H, 1)
    H = wq_ref.shape[1]
    w1 = wsm[0:H, :]
    w2 = wsm[H:2 * H, :]

    def lorentz_scalar(w, log_scale, wv):
        y = jnp.dot(x, w, preferred_element_type=jnp.float32)    # (TM, H)
        y0 = y[:, 0:1]
        time = jax.nn.sigmoid(y0) * jnp.exp(log_scale) + 1.1
        narrow_sq = jnp.sum(y * y, axis=-1, keepdims=True) - y0 * y0
        sc = jnp.sqrt((time * time - 1.0) / jnp.maximum(narrow_sq, EPS_DENOM))
        yw = jnp.dot(y, wv, preferred_element_type=jnp.float32)  # (TM, 1)
        wv0 = wv[0:1, :]                                         # (1, 1)
        return time * wv0 + sc * (yw - y0 * wv0)                 # (TM, 1)

    sq_ref[...] = lorentz_scalar(wq_ref[...], sq_scale_ref[0, 0], w1)
    kw_ref[...] = lorentz_scalar(wk_ref[...], sk_scale_ref[0, 0], w2)


# ----------------------------------------------------------------------------
# Main: tiled masked attention softmax + att@ass + gumbel softmax
# ----------------------------------------------------------------------------
def _attention_kernel(num_assign, inv_temp, tn, ass_resident,
                      sq_ref, kw_ref, ass_ref, adj_ref, gum_ref,
                      out_ref, m_ref):
    j = pl.program_id(1)

    @pl.when(j == 0)
    def _():
        m_ref[...] = jnp.full(m_ref.shape, NEG_INF, dtype=m_ref.dtype)
        out_ref[...] = jnp.zeros(out_ref.shape, dtype=out_ref.dtype)

    # score[i, jj] = leaky_relu(q[i].w1 + k[jj].w2)   (rank-1 construction)
    raw = sq_ref[...] + kw_ref[...]                              # (TM,1)+(1,TN)
    score = jnp.where(raw >= 0.0, raw, NEG_SLOPE * raw)
    mask = adj_ref[...] > 0.0                                    # streamed f32 adj
    masked = jnp.where(mask, score, NEG_INF)

    # online masked row softmax (flash-style); row-sum rides in ass column A,
    # and the accumulator lives directly in the (VMEM-resident) output block.
    m_prev = m_ref[...]
    m_new = jnp.maximum(m_prev, jnp.max(masked, axis=-1, keepdims=True))
    alpha = jnp.exp(m_prev - m_new)
    # NOTE: the second where keeps the all-masked-row invariant
    # (exp(NEG_INF - NEG_INF) = 1 must never leak into p).
    p = jnp.where(mask, jnp.exp(masked - m_new), 0.0)            # (TM, TN) f32

    if ass_resident:
        start = pl.multiple_of(j * tn, tn)
        ass_blk = ass_ref[pl.ds(start, tn), :]                   # (TN, A_PAD) bf16
    else:
        ass_blk = ass_ref[...]                                   # (TN, A_PAD) bf16

    out_ref[...] = alpha * out_ref[...] + jnp.dot(
        p.astype(ass_blk.dtype), ass_blk,
        preferred_element_type=jnp.float32)                      # bf16 MXU, f32 acc
    m_ref[...] = m_new

    @pl.when(j == pl.num_programs(1) - 1)
    def _():
        acc = out_ref[...]
        l = acc[:, num_assign:num_assign + 1]                    # folded row-sum
        inv_l = jnp.where(l > 0.0,
                          pl.reciprocal(jnp.maximum(l, 1e-30), approx=True),
                          0.0)
        ass2 = acc * inv_l                                       # att @ ass
        logits = (jnp.log(ass2 + EPS_LOG) + gum_ref[...]) * inv_temp
        col = jax.lax.broadcasted_iota(jnp.int32, logits.shape, 1)
        logits = jnp.where(col < num_assign, logits, NEG_INF)    # mask pad lanes
        mm = jnp.max(logits, axis=-1, keepdims=True)
        e = jnp.exp(logits - mm)
        out_ref[...] = e * pl.reciprocal(jnp.sum(e, axis=-1, keepdims=True),
                                         approx=True)


# ----------------------------------------------------------------------------
# Wrapper
# ----------------------------------------------------------------------------
def lorentz_assignment(x, adj, params, gumbel, temperature=0.2, tm=None, tn=None):
    f32 = jnp.float32
    bf16 = jnp.bfloat16
    N, F = x.shape
    H = params["wq"].shape[1]
    A = params["wass"].shape[1]
    assert A < A_PAD  # need one spare lane for the ones (row-sum) column

    if tm is None:
        tm = _pick_tile(N, (512, 256, 128, 64, 32, 16, 8))
    if tn is None:
        tn = _pick_tile(N, (1024, 512, 256, 128))
    assert N % tm == 0 and N % tn == 0
    grid_rows, grid_cols = N // tm, N // tn

    # zero-pad the assignment dimension to a lane-dense 128; zero row 0 of the
    # assign weight (logmap0 zeroes the time column, so this is exact).
    wass_pad = jnp.zeros((F, A_PAD), f32).at[:, :A].set(params["wass"].astype(f32))
    wass_pad = wass_pad.at[0, :].set(0.0)
    gum_pad = jnp.zeros((N, A_PAD), f32).at[:, :A].set(gumbel.astype(f32))

    smem = pl.BlockSpec(memory_space=pltpu.MemorySpace.SMEM)

    # ---- prologue: per-node projections (O(N*H)), tiled over row blocks ----
    ass_pad, sq, kcol = pl.pallas_call(
        functools.partial(_prologue_kernel, A),
        out_shape=(jax.ShapeDtypeStruct((N, A_PAD), bf16),
                   jax.ShapeDtypeStruct((N, 1), f32),
                   jax.ShapeDtypeStruct((N, 1), f32)),
        grid=(grid_rows,),
        in_specs=[pl.BlockSpec((tm, F), lambda i: (i, 0)),
                  pl.BlockSpec((F, A_PAD), lambda i: (0, 0)),
                  pl.BlockSpec((F, H), lambda i: (0, 0)),
                  pl.BlockSpec((F, H), lambda i: (0, 0)),
                  pl.BlockSpec((2 * H, 1), lambda i: (0, 0)),
                  smem, smem],
        out_specs=(pl.BlockSpec((tm, A_PAD), lambda i: (i, 0)),
                   pl.BlockSpec((tm, 1), lambda i: (i, 0)),
                   pl.BlockSpec((tm, 1), lambda i: (i, 0))),
        compiler_params=pltpu.CompilerParams(
            dimension_semantics=("parallel",)),
    )(x.astype(f32), wass_pad, params["wq"].astype(f32),
      params["wk"].astype(f32), params["wsm"].astype(f32),
      params["scale_q"].astype(f32), params["scale_k"].astype(f32))

    # tiny O(N) relayout so the main kernel gets a lane-dense (1, N) row
    kw = jnp.reshape(kcol, (1, N))

    # keep ass fully VMEM-resident (fetched once) when it comfortably fits;
    # otherwise fall back to a (tn, A_PAD) tile per column step.
    ass_bytes = N * A_PAD * 2  # bf16
    ass_resident = 2 * ass_bytes <= 8 * 1024 * 1024
    if ass_resident:
        ass_spec = pl.BlockSpec((N, A_PAD), lambda i, j: (0, 0))
    else:
        ass_spec = pl.BlockSpec((tn, A_PAD), lambda i, j: (j, 0))

    cost = pl.CostEstimate(
        flops=int(2 * N * N * A_PAD + 12 * N * N),
        transcendentals=int(N * N),
        bytes_accessed=int(4 * N * N
                           + (1 if ass_resident else grid_rows) * ass_bytes
                           + 2 * N * A_PAD * 4 + 12 * N),
    )

    # per-step VMEM estimate (adj f32 tile dominates) -> pick a safe limit that
    # also stays sane on v7x's 64 MiB.
    step_bytes = (2 * tm * tn * 4                                   # adj (dbl-buf)
                  + 3 * tm * tn * 4                                 # (tm,tn) temps
                  + (2 * ass_bytes if ass_resident else 2 * tn * A_PAD * 2)
                  + 4 * tm * A_PAD * 4                              # out + gumbel
                  + 4 * tm)                                         # m scratch, sq
    vmem_limit = int(min(96 * 1024 * 1024,
                         max(32 * 1024 * 1024, 2 * step_bytes)))

    # TODO(synk): for genuinely sparse adjacency, per-tile nonzero counts via
    # PrefetchScalarGridSpec could skip empty (i, j) tiles entirely.
    out_pad = pl.pallas_call(
        functools.partial(_attention_kernel, A, 1.0 / float(temperature),
                          tn, ass_resident),
        out_shape=jax.ShapeDtypeStruct((N, A_PAD), f32),
        grid=(grid_rows, grid_cols),
        in_specs=[pl.BlockSpec((tm, 1), lambda i, j: (i, 0)),       # sq
                  pl.BlockSpec((1, tn), lambda i, j: (0, j)),       # kw
                  ass_spec,                                         # ass (bf16)
                  pl.BlockSpec((tm, tn), lambda i, j: (i, j)),      # adj (f32 stream)
                  pl.BlockSpec((tm, A_PAD), lambda i, j: (i, 0))],  # gumbel
        out_specs=pl.BlockSpec((tm, A_PAD), lambda i, j: (i, 0)),
        scratch_shapes=[pltpu.VMEM((tm, 1), f32)],                  # running max
        compiler_params=pltpu.CompilerParams(
            dimension_semantics=("parallel", "arbitrary"),
            vmem_limit_bytes=vmem_limit),
        cost_estimate=cost,
    )(sq, kw, ass_pad, adj.astype(f32), gum_pad)

    return out_pad[:, :A]


# ----------------------------------------------------------------------------
# Pure-JAX reference (mirror of the original module's forward, eval mode)
# ----------------------------------------------------------------------------
def _softmax_rows(x):
    m = jnp.max(x, axis=-1, keepdims=True)
    e = jnp.exp(x - m)
    return e / jnp.sum(e, axis=-1, keepdims=True)


def _logmap0(x):
    t = jnp.maximum(x[:, 0:1], 1.0 + 1e-7)
    acosh_t = jnp.log(t + jnp.sqrt(t * t - 1.0))
    coef = acosh_t / jnp.sqrt(jnp.maximum(t * t - 1.0, 1e-15))
    col = jax.lax.broadcasted_iota(jnp.int32, x.shape, 1)
    return jnp.where(col == 0, 0.0, x * coef)


def _lorentz_linear(x, w, log_scale):
    y = x @ w
    time = jax.nn.sigmoid(y[:, 0:1]) * jnp.exp(log_scale) + 1.1
    col = jax.lax.broadcasted_iota(jnp.int32, y.shape, 1)
    narrow_sq = jnp.sum(jnp.where(col == 0, 0.0, y * y), axis=-1, keepdims=True)
    sc = (time * time - 1.0) / jnp.maximum(narrow_sq, EPS_DENOM)
    return jnp.where(col == 0, time, y * jnp.sqrt(sc))


def reference(x, adj, params, gumbel, temperature=0.2):
    H = params["wq"].shape[1]
    u = _logmap0(x)
    ass = _softmax_rows(u @ params["wass"])
    q = _lorentz_linear(x, params["wq"], params["scale_q"])
    k = _lorentz_linear(x, params["wk"], params["scale_k"])
    w1 = params["wsm"][:H, 0]
    w2 = params["wsm"][H:, 0]
    raw = (q @ w1)[:, None] + (k @ w2)[None, :]
    score = jnp.where(raw >= 0.0, raw, NEG_SLOPE * raw)
    mask = adj > 0.0
    masked = jnp.where(mask, score, NEG_INF)
    m = masked.max(-1, keepdims=True)
    e = jnp.where(mask, jnp.exp(masked - m), 0.0)
    d = e.sum(-1, keepdims=True)
    att = jnp.where(d > 0.0, e / jnp.maximum(d, 1e-30), 0.0)
    ass2 = att @ ass
    return _softmax_rows((jnp.log(ass2 + EPS_LOG) + gumbel) / temperature)


if __name__ == "__main__":
    key = jax.random.PRNGKey(0)
    N, F, H, A = 256, 8, 16, 4   # nodes, in_features, hidden_features, num_assign
    ks = jax.random.split(key, 8)

    # Nodes on the Lorentz hyperboloid (k = 1): time = sqrt(1 + ||spatial||^2)
    spatial = 0.5 * jax.random.normal(ks[0], (N, F - 1), dtype=jnp.float32)
    time = jnp.sqrt(1.0 + jnp.sum(spatial * spatial, axis=-1, keepdims=True))
    x = jnp.concatenate([time, spatial], axis=-1)

    # Dense adjacency with self loops (every src row has >= 1 edge)
    adj = (jax.random.uniform(ks[1], (N, N)) < 0.1).astype(jnp.float32)
    adj = jnp.maximum(adj, jnp.eye(N, dtype=jnp.float32))

    # Parameter init mirroring the module's __init__ (weights pre-transposed to (in,out))
    stdv_ass = 1.0 / math.sqrt(F)
    stdv_ll = 1.0 / math.sqrt(H)          # LorentzLinear.reset_parameters
    stdv_sm = 1.0 / math.sqrt(2 * H)
    wq = jax.random.uniform(ks[2], (F, H), minval=-stdv_ll, maxval=stdv_ll)
    wq = wq.at[0, :].set(0.0)             # weight[:, 0] = 0 (input feature 0 zeroed)
    wk = jax.random.uniform(ks[3], (F, H), minval=-stdv_ll, maxval=stdv_ll)
    wk = wk.at[0, :].set(0.0)
    params = dict(
        wass=jax.random.uniform(ks[4], (F, A), minval=-stdv_ass, maxval=stdv_ass),
        wq=wq.astype(jnp.float32),
        wk=wk.astype(jnp.float32),
        scale_q=jnp.full((1, 1), math.log(10.0), jnp.float32),
        scale_k=jnp.full((1, 1), math.log(10.0), jnp.float32),
        wsm=jax.random.uniform(ks[5], (2 * H, 1), minval=-stdv_sm, maxval=stdv_sm),
    )
    # TODO(synk): dropout layers are eval-mode identities; gumbel noise for
    # gumbel_softmax is sampled host-side (no in-kernel RNG needed here).
    gumbel = jax.random.gumbel(ks[6], (N, A), dtype=jnp.float32)

    # tm/tn forced to 128 so the 256-node example exercises a real 2x2 grid
    out = lorentz_assignment(x, adj, params, gumbel, temperature=0.2, tm=128, tn=128)
    out = jax.block_until_ready(out)

    ref = reference(x, adj, params, gumbel, temperature=0.2)
    assert out.shape == (N, A)
    assert bool(jnp.all(jnp.isfinite(out)))
    assert bool(jnp.allclose(out, ref, atol=2e-2, rtol=2e-2))
    print("KERNEL_OK")
</pallas_src>

<mosaic_0001>
module attributes {stable_mosaic.version = 11 : i64} {
  func.func @_prologue_kernel(%arg0: i32, %arg1: memref<128x8xf32, #tpu.memory_space<vmem>>, %arg2: memref<8x128xf32, #tpu.memory_space<vmem>>, %arg3: memref<8x16xf32, #tpu.memory_space<vmem>>, %arg4: memref<8x16xf32, #tpu.memory_space<vmem>>, %arg5: memref<32x1xf32, #tpu.memory_space<vmem>>, %arg6: memref<1x1xf32, #tpu.memory_space<smem>>, %arg7: memref<1x1xf32, #tpu.memory_space<smem>>, %arg8: memref<128x128xbf16, #tpu.memory_space<vmem>>, %arg9: memref<128x1xf32, #tpu.memory_space<vmem>>, %arg10: memref<128x1xf32, #tpu.memory_space<vmem>>) attributes {dimension_semantics = [#tpu.dimension_semantics<parallel>], iteration_bounds = array<i64: 2>, scalar_prefetch = 0 : i64, scratch_operands = 0 : i64, tpu.core_type = #tpu.core_type<tc>, window_params = [{transform_indices = @transform_0, window_bounds = array<i64: 128, 8>}, {pipeline_mode = #tpu.pipeline_mode<synchronous>, transform_indices = @transform_1, window_bounds = array<i64: 8, 128>}, {pipeline_mode = #tpu.pipeline_mode<synchronous>, transform_indices = @transform_2, window_bounds = array<i64: 8, 16>}, {pipeline_mode = #tpu.pipeline_mode<synchronous>, transform_indices = @transform_3, window_bounds = array<i64: 8, 16>}, {pipeline_mode = #tpu.pipeline_mode<synchronous>, transform_indices = @transform_4, window_bounds = array<i64: 32, 1>}, {transform_indices = @transform_5, window_bounds = array<i64: 1, 1>}, {transform_indices = @transform_6, window_bounds = array<i64: 1, 1>}, {transform_indices = @transform_7, window_bounds = array<i64: 128, 128>}, {transform_indices = @transform_8, window_bounds = array<i64: 128, 1>}, {transform_indices = @transform_9, window_bounds = array<i64: 128, 1>}]} {
    %c0 = arith.constant 0 : index
    %c0_0 = arith.constant 0 : index
    %0 = vector.load %arg1[%c0, %c0_0] : memref<128x8xf32, #tpu.memory_space<vmem>>, vector<128x8xf32>
    %1 = vector.extract_strided_slice %0 {offsets = [0, 0], sizes = [128, 1], strides = [1, 1]} : vector<128x8xf32> to vector<128x1xf32>
    %cst = arith.constant 1.00000012 : f32
    %2 = vector.broadcast %cst : f32 to vector<128x1xf32>
    %3 = arith.maximumf %1, %2 : vector<128x1xf32>
    %4 = arith.mulf %3, %3 : vector<128x1xf32>
    %cst_1 = arith.constant 1.000000e+00 : f32
    %5 = vector.broadcast %cst_1 : f32 to vector<128x1xf32>
    %6 = arith.subf %4, %5 : vector<128x1xf32>
    %7 = math.sqrt %6 : vector<128x1xf32>
    %8 = arith.addf %3, %7 : vector<128x1xf32>
    %9 = math.log %8 : vector<128x1xf32>
    %10 = arith.mulf %3, %3 : vector<128x1xf32>
    %cst_2 = arith.constant 1.000000e+00 : f32
    %11 = vector.broadcast %cst_2 : f32 to vector<128x1xf32>
    %12 = arith.subf %10, %11 : vector<128x1xf32>
    %cst_3 = arith.constant 1.000000e-15 : f32
    %13 = vector.broadcast %cst_3 : f32 to vector<128x1xf32>
    %14 = arith.maximumf %12, %13 : vector<128x1xf32>
    %15 = math.sqrt %14 : vector<128x1xf32>
    %16 = arith.divf %9, %15 : vector<128x1xf32>
    %c0_4 = arith.constant 0 : index
    %c0_5 = arith.constant 0 : index
    %17 = vector.load %arg2[%c0_4, %c0_5] : memref<8x128xf32, #tpu.memory_space<vmem>>, vector<8x128xf32>
    %cst_6 = arith.constant dense<0.000000e+00> : vector<128x128xf32>
    %18 = tpu.matmul %0, %17, %cst_6 {dimension_numbers = #tpu.dot_dimension_numbers<[1], [0], [0], [1], [0, 0, 1, 1], [], []>} : vector<128x8xf32>, vector<8x128xf32>, vector<128x128xf32> -> vector<128x128xf32>
    %19 = vector.broadcast %16 : vector<128x1xf32> to vector<128x128xf32>
    %20 = arith.mulf %19, %18 : vector<128x128xf32>
    %21 = tpu.iota {dimensions = array<i32: 1>} : vector<128x128xi32>
    %c4_i32 = arith.constant 4 : i32
    %22 = vector.broadcast %c4_i32 : i32 to vector<128x128xi32>
    %23 = arith.cmpi slt, %21, %22 : vector<128x128xi32>
    %cst_7 = arith.constant -1.000000e+30 : f32
    %24 = vector.broadcast %cst_7 : f32 to vector<128x128xf32>
    %25 = arith.select %23, %20, %24 : vector<128x128xi1>, vector<128x128xf32>
    %cst_8 = arith.constant dense<0xFF800000> : vector<128xf32>
    %26 = vector.multi_reduction <maximumf>, %25, %cst_8 [1] : vector<128x128xf32> to vector<128xf32>
    %27 = vector.shape_cast %26 : vector<128xf32> to vector<128x1xf32>
    %28 = vector.broadcast %27 : vector<128x1xf32> to vector<128x128xf32>
    %29 = arith.subf %25, %28 : vector<128x128xf32>
    %30 = math.exp %29 : vector<128x128xf32>
    %cst_9 = arith.constant dense<0.000000e+00> : vector<128xf32>
    %31 = vector.multi_reduction <add>, %30, %cst_9 [1] : vector<128x128xf32> to vector<128xf32>
    %32 = vector.shape_cast %31 : vector<128xf32> to vector<128x1xf32>
    %33 = tpu.reciprocal %32 {approx = true} : vector<128x1xf32> -> vector<128x1xf32>
    %34 = vector.broadcast %33 : vector<128x1xf32> to vector<128x128xf32>
    %35 = arith.mulf %30, %34 : vector<128x128xf32>
    %c4_i32_10 = arith.constant 4 : i32
    %36 = vector.broadcast %c4_i32_10 : i32 to vector<128x128xi32>
    %37 = arith.cmpi slt, %21, %36 : vector<128x128xi32>
    %c4_i32_11 = arith.constant 4 : i32
    %38 = vector.broadcast %c4_i32_11 : i32 to vector<128x128xi32>
    %39 = arith.cmpi eq, %21, %38 : vector<128x128xi32>
    %cst_12 = arith.constant 1.000000e+00 : f32
    %cst_13 = arith.constant 0.000000e+00 : f32
    %40 = vector.broadcast %cst_12 : f32 to vector<128x128xf32>
    %41 = vector.broadcast %cst_13 : f32 to vector<128x128xf32>
    %42 = arith.select %39, %40, %41 : vector<128x128xi1>, vector<128x128xf32>
    %43 = arith.select %37, %35, %42 : vector<128x128xi1>, vector<128x128xf32>
    %44 = arith.truncf %43 : vector<128x128xf32> to vector<128x128xbf16>
    %c0_14 = arith.constant 0 : index
    %c0_15 = arith.constant 0 : index
    %45 = vector.load %arg8[%c0_14, %c0_15] : memref<128x128xbf16, #tpu.memory_space<vmem>>, vector<128x128xbf16>
    tpu.vector_store %arg8[%c0_14, %c0_15], %44 {strides = array<i32>} : memref<128x128xbf16, #tpu.memory_space<vmem>>, vector<128x128xbf16>,
    %c0_16 = arith.constant 0 : index
    %c0_17 = arith.constant 0 : index
    %46 = vector.load %arg5[%c0_16, %c0_17] : memref<32x1xf32, #tpu.memory_space<vmem>>, vector<32x1xf32>
    %47 = vector.extract_strided_slice %46 {offsets = [0, 0], sizes = [16, 1], strides = [1, 1]} : vector<32x1xf32> to vector<16x1xf32>
    %48 = vector.extract_strided_slice %46 {offsets = [16, 0], sizes = [16, 1], strides = [1, 1]} : vector<32x1xf32> to vector<16x1xf32>
    %c0_18 = arith.constant 0 : index
    %c0_19 = arith.constant 0 : index
    %49 = vector.load %arg3[%c0_18, %c0_19] : memref<8x16xf32, #tpu.memory_space<vmem>>, vector<8x16xf32>
    %c0_20 = arith.constant 0 : index
    %c0_21 = arith.constant 0 : index
    %50 = memref.load %arg6[%c0_20, %c0_21] : memref<1x1xf32, #tpu.memory_space<smem>>
    %cst_22 = arith.constant dense<0.000000e+00> : vector<128x16xf32>
    %51 = tpu.matmul %0, %49, %cst_22 {dimension_numbers = #tpu.dot_dimension_numbers<[1], [0], [0], [1], [0, 0, 1, 1], [], []>} : vector<128x8xf32>, vector<8x16xf32>, vector<128x16xf32> -> vector<128x16xf32>
    %52 = vector.extract_strided_slice %51 {offsets = [0, 0], sizes = [128, 1], strides = [1, 1]} : vector<128x16xf32> to vector<128x1xf32>
    %53 = arith.negf %52 : vector<128x1xf32>
    %54 = math.exp %53 : vector<128x1xf32>
    %cst_23 = arith.constant 1.000000e+00 : f32
    %55 = vector.broadcast %cst_23 : f32 to vector<128x1xf32>
    %56 = arith.addf %55, %54 : vector<128x1xf32>
    %57 = arith.divf %55, %56 : vector<128x1xf32>
    %58 = math.exp %50 : f32
    %59 = vector.broadcast %58 : f32 to vector<128x1xf32>
    %60 = arith.mulf %57, %59 : vector<128x1xf32>
    %cst_24 = arith.constant 1.100000e+00 : f32
    %61 = vector.broadcast %cst_24 : f32 to vector<128x1xf32>
    %62 = arith.addf %60, %61 : vector<128x1xf32>
    %63 = arith.mulf %51, %51 : vector<128x16xf32>
    %cst_25 = arith.constant dense<0.000000e+00> : vector<128xf32>
    %64 = vector.multi_reduction <add>, %63, %cst_25 [1] : vector<128x16xf32> to vector<128xf32>
    %65 = vector.shape_cast %64 : vector<128xf32> to vector<128x1xf32>
    %66 = arith.mulf %52, %52 : vector<128x1xf32>
    %67 = arith.subf %65, %66 : vector<128x1xf32>
    %68 = arith.mulf %62, %62 : vector<128x1xf32>
    %cst_26 = arith.constant 1.000000e+00 : f32
    %69 = vector.broadcast %cst_26 : f32 to vector<128x1xf32>
    %70 = arith.subf %68, %69 : vector<128x1xf32>
    %cst_27 = arith.constant 9.99999993E-9 : f32
    %71 = vector.broadcast %cst_27 : f32 to vector<128x1xf32>
    %72 = arith.maximumf %67, %71 : vector<128x1xf32>
    %73 = arith.divf %70, %72 : vector<128x1xf32>
    %74 = math.sqrt %73 : vector<128x1xf32>
    %cst_28 = arith.constant dense<0.000000e+00> : vector<128x1xf32>
    %75 = tpu.matmul %51, %47, %cst_28 {dimension_numbers = #tpu.dot_dimension_numbers<[1], [0], [0], [1], [0, 0, 1, 1], [], []>} : vector<128x16xf32>, vector<16x1xf32>, vector<128x1xf32> -> vector<128x1xf32>
    %76 = vector.extract_strided_slice %47 {offsets = [0, 0], sizes = [1, 1], strides = [1, 1]} : vector<16x1xf32> to vector<1x1xf32>
    %77 = vector.broadcast %76 : vector<1x1xf32> to vector<128x1xf32>
    %78 = arith.mulf %62, %77 : vector<128x1xf32>
    %79 = vector.broadcast %76 : vector<1x1xf32> to vector<128x1xf32>
    %80 = arith.mulf %52, %79 : vector<128x1xf32>
    %81 = arith.subf %75, %80 : vector<128x1xf32>
    %82 = arith.mulf %74, %81 : vector<128x1xf32>
    %83 = arith.addf %78, %82 : vector<128x1xf32>
    %c0_29 = arith.constant 0 : index
    %c0_30 = arith.constant 0 : index
    %84 = vector.load %arg9[%c0_29, %c0_30] : memref<128x1xf32, #tpu.memory_space<vmem>>, vector<128x1xf32>
    tpu.vector_store %arg9[%c0_29, %c0_30], %83 {strides = array<i32>} : memref<128x1xf32, #tpu.memory_space<vmem>>, vector<128x1xf32>,
    %c0_31 = arith.constant 0 : index
    %c0_32 = arith.constant 0 : index
    %85 = vector.load %arg4[%c0_31, %c0_32] : memref<8x16xf32, #tpu.memory_space<vmem>>, vector<8x16xf32>
    %c0_33 = arith.constant 0 : index
    %c0_34 = arith.constant 0 : index
    %86 = memref.load %arg7[%c0_33, %c0_34] : memref<1x1xf32, #tpu.memory_space<smem>>
    %cst_35 = arith.constant dense<0.000000e+00> : vector<128x16xf32>
    %87 = tpu.matmul %0, %85, %cst_35 {dimension_numbers = #tpu.dot_dimension_numbers<[1], [0], [0], [1], [0, 0, 1, 1], [], []>} : vector<128x8xf32>, vector<8x16xf32>, vector<128x16xf32> -> vector<128x16xf32>
    %88 = vector.extract_strided_slice %87 {offsets = [0, 0], sizes = [128, 1], strides = [1, 1]} : vector<128x16xf32> to vector<128x1xf32>
    %89 = arith.negf %88 : vector<128x1xf32>
    %90 = math.exp %89 : vector<128x1xf32>
    %cst_36 = arith.constant 1.000000e+00 : f32
    %91 = vector.broadcast %cst_36 : f32 to vector<128x1xf32>
    %92 = arith.addf %91, %90 : vector<128x1xf32>
    %93 = arith.divf %91, %92 : vector<128x1xf32>
    %94 = math.exp %86 : f32
    %95 = vector.broadcast %94 : f32 to vector<128x1xf32>
    %96 = arith.mulf %93, %95 : vector<128x1xf32>
    %cst_37 = arith.constant 1.100000e+00 : f32
    %97 = vector.broadcast %cst_37 : f32 to vector<128x1xf32>
    %98 = arith.addf %96, %97 : vector<128x1xf32>
    %99 = arith.mulf %87, %87 : vector<128x16xf32>
    %cst_38 = arith.constant dense<0.000000e+00> : vector<128xf32>
    %100 = vector.multi_reduction <add>, %99, %cst_38 [1] : vector<128x16xf32> to vector<128xf32>
    %101 = vector.shape_cast %100 : vector<128xf32> to vector<128x1xf32>
    %102 = arith.mulf %88, %88 : vector<128x1xf32>
    %103 = arith.subf %101, %102 : vector<128x1xf32>
    %104 = arith.mulf %98, %98 : vector<128x1xf32>
    %cst_39 = arith.constant 1.000000e+00 : f32
    %105 = vector.broadcast %cst_39 : f32 to vector<128x1xf32>
    %106 = arith.subf %104, %105 : vector<128x1xf32>
    %cst_40 = arith.constant 9.99999993E-9 : f32
    %107 = vector.broadcast %cst_40 : f32 to vector<128x1xf32>
    %108 = arith.maximumf %103, %107 : vector<128x1xf32>
    %109 = arith.divf %106, %108 : vector<128x1xf32>
    %110 = math.sqrt %109 : vector<128x1xf32>
    %cst_41 = arith.constant dense<0.000000e+00> : vector<128x1xf32>
    %111 = tpu.matmul %87, %48, %cst_41 {dimension_numbers = #tpu.dot_dimension_numbers<[1], [0], [0], [1], [0, 0, 1, 1], [], []>} : vector<128x16xf32>, vector<16x1xf32>, vector<128x1xf32> -> vector<128x1xf32>
    %112 = vector.extract_strided_slice %48 {offsets = [0, 0], sizes = [1, 1], strides = [1, 1]} : vector<16x1xf32> to vector<1x1xf32>
    %113 = vector.broadcast %112 : vector<1x1xf32> to vector<128x1xf32>
    %114 = arith.mulf %98, %113 : vector<128x1xf32>
    %115 = vector.broadcast %112 : vector<1x1xf32> to vector<128x1xf32>
    %116 = arith.mulf %88, %115 : vector<128x1xf32>
    %117 = arith.subf %111, %116 : vector<128x1xf32>
    %118 = arith.mulf %110, %117 : vector<128x1xf32>
    %119 = arith.addf %114, %118 : vector<128x1xf32>
    %c0_42 = arith.constant 0 : index
    %c0_43 = arith.constant 0 : index
    %120 = vector.load %arg10[%c0_42, %c0_43] : memref<128x1xf32, #tpu.memory_space<vmem>>, vector<128x1xf32>
    tpu.vector_store %arg10[%c0_42, %c0_43], %119 {strides = array<i32>} : memref<128x1xf32, #tpu.memory_space<vmem>>, vector<128x1xf32>,
    return
  }
  func.func @transform_0(%arg0: i32) -> (i32, i32) {
    %c0_i32 = arith.constant 0 : i32
    %c0_i32_0 = arith.constant 0 : i32
    return %arg0, %c0_i32 : i32, i32
  }
  func.func @transform_1(%arg0: i32) -> (i32, i32) {
    %c0_i32 = arith.constant 0 : i32
    %c0_i32_0 = arith.constant 0 : i32
    %c0_i32_1 = arith.constant 0 : i32
    return %c0_i32, %c0_i32_0 : i32, i32
  }
  func.func @transform_2(%arg0: i32) -> (i32, i32) {
    %c0_i32 = arith.constant 0 : i32
    %c0_i32_0 = arith.constant 0 : i32
    %c0_i32_1 = arith.constant 0 : i32
    return %c0_i32, %c0_i32_0 : i32, i32
  }
  func.func @transform_3(%arg0: i32) -> (i32, i32) {
    %c0_i32 = arith.constant 0 : i32
    %c0_i32_0 = arith.constant 0 : i32
    %c0_i32_1 = arith.constant 0 : i32
    return %c0_i32, %c0_i32_0 : i32, i32
  }
  func.func @transform_4(%arg0: i32) -> (i32, i32) {
    %c0_i32 = arith.constant 0 : i32
    %c0_i32_0 = arith.constant 0 : i32
    %c0_i32_1 = arith.constant 0 : i32
    return %c0_i32, %c0_i32_0 : i32, i32
  }
  func.func @transform_5(%arg0: i32) -> (i32, i32) {
    %c0_i32 = arith.constant 0 : i32
    %c0_i32_0 = arith.constant 0 : i32
    %c0_i32_1 = arith.constant 0 : i32
    return %c0_i32, %c0_i32_0 : i32, i32
  }
  func.func @transform_6(%arg0: i32) -> (i32, i32) {
    %c0_i32 = arith.constant 0 : i32
    %c0_i32_0 = arith.constant 0 : i32
    %c0_i32_1 = arith.constant 0 : i32
    return %c0_i32, %c0_i32_0 : i32, i32
  }
  func.func @transform_7(%arg0: i32) -> (i32, i32) {
    %c0_i32 = arith.constant 0 : i32
    %c0_i32_0 = arith.constant 0 : i32
    return %arg0, %c0_i32 : i32, i32
  }
  func.func @transform_8(%arg0: i32) -> (i32, i32) {
    %c0_i32 = arith.constant 0 : i32
    %c0_i32_0 = arith.constant 0 : i32
    return %arg0, %c0_i32 : i32, i32
  }
  func.func @transform_9(%arg0: i32) -> (i32, i32) {
    %c0_i32 = arith.constant 0 : i32
    %c0_i32_0 = arith.constant 0 : i32
    return %arg0, %c0_i32 : i32, i32
  }
}

</mosaic_0001>

<bundles_post_ra>
// kernel: tpu_custom_call.1
= control target key start
LH: loop header
LB: loop body
LE: loop exit
PB: predicated region body
PF: predicated region fallthrough
CT: control target
= control target key end

     0   :  { %s6855_s0 = inlined_call_operand.vmem [shape: f32[256,8], index: 0, kind: input, shape index: {}]   ;;  %s6856_s1 = inlined_call_operand.vmem [shape: f32[8,128], index: 1, kind: input, shape index: {}]   ;;  %s6857_s2 = inlined_call_operand.vmem [shape: f32[8,16], index: 2, kind: input, shape index: {}]   ;;  %s6858_s3 = inlined_call_operand.vmem [shape: f32[8,16], index: 3, kind: input, shape index: {}]   ;;  %s6859_s4 = inlined_call_operand.vmem [shape: f32[32,1], index: 4, kind: input, shape index: {}]   ;;  %s6860_s5 = inlined_call_operand.<no memory space> [shape: f32[1,1], index: 5, kind: input, shape index: {}]   ;;  %s6861_s6 = inlined_call_operand.<no memory space> [shape: f32[1,1], index: 6, kind: input, shape index: {}]   ;;  %s6862_s7 = inlined_call_operand.hbm [shape: bf16[256,128], index: 7, kind: output, shape index: {0}]   ;;  %s6863_s8 = inlined_call_operand.vmem [shape: f32[256,1], index: 8, kind: output, shape index: {1}]   ;;  %s6864_s9 = inlined_call_operand.vmem [shape: f32[256,1], index: 9, kind: output, shape index: {2}]  }
   0x1   :  { %15 = sst [smem:[#allocation2]] %s6860_s5 }
   0x2   :  { %16 = sst [smem:[#allocation3]] %s6861_s6 }
   0x3   :  { %17 = vsyncpa [#allocation5], 0 }
   0x4   :  { %19 = vsyncpa [#allocation5 + $0x1], 0  ;;  %s4252_s13 = smov 0   ;;  %s4254_s14 = smov 0  }
   0x5   :  { %s4256_s15 = smov 0   ;;  %s4258_s16 = smov 0  }
   0x6 LB: > { %s4273_s5 = sadd.s32 4294967295, %s4189_s16   ;;  %s3139_s6 = sadd.s32 4294967294, %s4189_s16   ;;  %s4189_s16 = sphi %s4258_s16, %s7222_s16   ;;  %s4185_s15 = sphi %s4256_s15, %s7221_s15   ;;  %s4181_s14 = sphi %s4254_s14, %s7220_s14   ;;  %s4177_s13 = sphi %s4252_s13, %s7219_s13  }
   0x7   : > { %s4277_s17 = sadd.s32 1, %s4189_s16   ;;  %s184_s18 = sadd.s32 1, %s4185_s15 }
   0x8   : > { %s181_s19 = ssub.s32 %s4189_s16, %s4277_s17  ;;  %p194_p0 = scmp.ne.s32.totalorder %s4185_s15, %s4181_s14 }
   0x9   : > { %p182_p1 = scmp.eq.s32.totalorder %s181_s19, 0  ;;  %p195_p2 = scmp.eq.s32.totalorder %s4273_s5, 1 }
   0xa   : > { %p200_p3 = scmp.ne.s32.totalorder %s4181_s14, %s4177_s13  ;;  %p201_p4 = scmp.eq.s32.totalorder %s3139_s6, 1 }
   0xb   : > { %s4288_s20 = scalar_select %p182_p1, %s4185_s15, %s184_s18  }
   0xc   : > { %p4290_p5 = por %p195_p2, %p194_p0  ;;  %p4294_p6 = por %p201_p4, %p200_p3 }
   0xd   : > { %p3142_p7 = scmp.ge.s32.totalorder %s4189_s16, 1  ;;  %p298_p8 = scmp.lt.s32.totalorder %s4189_s16, 3 }
   0xf   : > { %p299_p9 = pnand %p3142_p7, %p298_p8 }
  0x11   : > { %302 = sbr.rel (%p299_p9) target bundleno = 619 (0x26b), region = 48 }
  0x18   : > { %v747_v0 = vld [vmem:[%s6856_s1] sm:$0xff]  ;;  %s3144_s25 = sshll.u32 %s4273_s5, 4  ;;  %v4191_v2 = vmov 0   ;;  %vm748_vm0 = vcmask 64512   ;;  %s1304_s29 = sld [smem:[#allocation2]] }
  0x19   : > { %v1303_v1 = vld [vmem:[%s6857_s2] sm:$0xff]  ;;  %3482 = vmatprep.subr.mxu0 %v747_v0  ;;  %3624 = vmatprep.subr.mxu1 %v747_v0  ;;  %p345_p10 = scmp.lt.s32.totalorder %s3144_s25, 31  ;;  %s2151_s30 = sld [smem:[#allocation3]] }
  0x1a   : > { %3483 = vmatpush3.msra.mxu0 %v747_v0  ;;  %3625 = vmatpush3.msra.mxu1 %v747_v0  ;;  %v4334_v7 = vld [vmem:[%s6858_s3] sm:$0xff]  ;;  %s3347_s27 = sshll.u32 %s4273_s5, 10  ;;  %s4193_s6 = smov [#allocation4]  }
  0x1b   : > { %s7224_s25 = smov (!%p345_p10, %s3144_s25), 31  ;;  %3508 = vmatprep.subr.mxu1 %v1303_v1  ;;  %3674 = vset.pattern.permute.xlu1 %v4191_v2 }
  0x1c   : > { %3673 = vset.pattern.permute.xlu0 %v4191_v2  ;;  %s4307_s28 = sshll.u32 %s7224_s25, 3 }
  0x1d   : > { %s4313_s10 = scalar_lea.vmem %s6855_s0, %s4307_s28  ;;  %s6166_s18 = scalar_lea.vmem %s6863_s8, %s4307_s28 }
  0x1e   : > { %v4316_v3 = vld [vmem:[%s4313_s10] sm:$0xff]  ;;  %v4322_v5 = vld [vmem:[%s4313_s10 + $0x8] sm:$0xff]  ;;  %v4345_v10 = vld [vmem:[%s4313_s10 + $0x10] sm:$0xff]  ;;  %s6480_s24 = scalar_lea.vmem %s6864_s9, %s4307_s28  ;;  %s327_s28 = sand.u32 1, %s4181_s14  }
  0x1f   : > { %v4319_v4 = vld [vmem:[%s4313_s10 + $0x40] sm:$0xff]  ;;  %v4325_v6 = vmax.f32 %v4316_v3, 1.0000001  ;;  %3484 = vmatprep.mubr.msk.f32.mxu0 %vm748_vm0, %v4316_v3  ;;  %v4342_v9 = vld [vmem:[%s4313_s10 + $0x48] sm:$0xff]  ;;  %v4348_v11 = vld [vmem:[%s4313_s10 + $0x50] sm:$0xff]  ;;  %s3143_s25 = sshll.u32 %s327_s28, 6 }
  0x20   : > { %3496 = vmatprep.mubr.msk.f32.mxu1 %vm748_vm0, %v4319_v4  ;;  %v4337_v8 = vmax.f32 %v4319_v4, 1.0000001  ;;  %3485 = vmatmul.mubr.msk.f32.vlgmr.msra.gmra.mrb[0].mxu0 %vm748_vm0, %v4322_v5  ;;  %v4351_v12 = vmax.f32 %v4322_v5, 1.0000001  ;;  %v4358_v13 = vld [vmem:[%s4313_s10 + $0x18] sm:$0xff]  ;;  %v4372_v17 = vld [vmem:[%s4313_s10 + $0x20] sm:$0xff] }
  0x21   : > { %3497 = vmatmul.mubr.msk.f32.vlgmr.msra.gmra.mrb[0].mxu1 %vm748_vm0, %v4342_v9  ;;  %3487 = vmatprep.mubr.msk.f32.mxu0 %vm748_vm0, %v4345_v10  ;;  %v4361_v14 = vmax.f32 %v4345_v10, 1.0000001  ;;  %v4366_v15 = vmax.f32 %v4358_v13, 1.0000001  ;;  %v4369_v16 = vld [vmem:[%s4313_s10 + $0x58] sm:$0xff]  ;;  %v4378_v19 = vld [vmem:[%s4313_s10 + $0x60] sm:$0xff]  ;;  %v395_v20 = vmul.f32 %v4325_v6, %v4325_v6 }
  0x22   : > { %6947 = vst [vmem:[#allocation7_spill] sm:$0xff] %v4337_v8  ;;  %3499 = vmatprep.mubr.msk.f32.mxu1 %vm748_vm0, %v4348_v11  ;;  %3509 = vmatpush3.msra.mxu1 %v1303_v1  ;;  %v4375_v18 = vmax.f32 %v4342_v9, 1.0000001  ;;  %v403_v21 = vmul.f32 %v4337_v8, %v4337_v8  ;;  %v396_v24 = vmul.f32 %v4351_v12, %v4351_v12  ;;  %v4394_v25 = vmax.f32 %v4348_v11, 1.0000001  ;;  %v4401_v26 = vld [vmem:[%s4313_s10 + $0x28] sm:$0xff] }
  0x23   : > { %3562 = vmatprep.subr.mxu1 %v4334_v7  ;;  %v397_v22 = vmul.f32 %v4361_v14, %v4361_v14  ;;  %v398_v23 = vmul.f32 %v4366_v15, %v4366_v15  ;;  %v4408_v29 = vmax.f32 %v4369_v16, 1.0000001  ;;  %v4413_v30 = vld [vmem:[%s4313_s10 + $0x68] sm:$0xff]  ;;  %v4416_v31 = vld [vmem:[%s4313_s10 + $0x30] sm:$0xff]  ;;  %v4421_v33 = vmax.f32 %v4372_v17, 1.0000001 }
  0x24   : > { %3488 = vmatmul.mubr.msk.f32.gmra.mrb[2].mxu0 %vm748_vm0, %v4358_v13  ;;  %6948 = vst [vmem:[#allocation8_spill] sm:$0xff] %v4394_v25  ;;  %v404_v32 = vmul.f32 %v4375_v18, %v4375_v18  ;;  %v4424_v34 = vld [vmem:[%s4313_s10 + $0x70] sm:$0xff]  ;;  %v4426_v35 = vadd.f32 -1.0, %v395_v20  ;;  %v4428_v36 = vadd.f32 -1.0, %v403_v21  ;;  %v4433_v37 = vadd.f32 -1.0, %v396_v24  ;;  %v4448_v41 = vld [vmem:[%s4313_s10 + $0x38] sm:$0xff] }
  0x25   : > { %3500 = vmatmul.mubr.msk.f32.gmra.mrb[2].mxu1 %vm748_vm0, %v4369_v16  ;;  %3490 = vmatprep.mubr.msk.f32.mxu0 %vm748_vm0, %v4372_v17  ;;  %v4403_v27 = vadd.f32 -1.0, %v397_v22  ;;  %v4405_v28 = vadd.f32 -1.0, %v398_v23  ;;  %v405_v38 = vmul.f32 %v4394_v25, %v4394_v25  ;;  %v4438_v39 = vmax.f32 %v4401_v26, 1.0000001  ;;  %v4460_v45 = vld [vmem:[%s4313_s10 + $0x78] sm:$0xff]  ;;  %s6737_s26 = scalar_lea.vmem [#allocation4], %s3143_s25 }
  0x26   : > { %3502 = vmatprep.mubr.msk.f32.mxu1 %vm748_vm0, %v4378_v19  ;;  %6949 = vst [vmem:[#allocation9_spill] sm:$0xff] %v4428_v36  ;;  %v4441_v40 = vmax.f32 %v4413_v30, 1.0000001  ;;  %v406_v42 = vmul.f32 %v4408_v29, %v4408_v29  ;;  %v399_v43 = vmul.f32 %v4421_v33, %v4421_v33  ;;  %v4455_v44 = vmax.f32 %v4416_v31, 1.0000001  ;;  %s6814_s5 = scalar_lea.sflag [#allocation5], %s327_s28 }
  0x27   : > { %3675 = vrsqrt.f32 %v4403_v27  ;;  %v4464_v46 = vmax.f32 %v4428_v36, 1e-15  ;;  %v4466_v47 = vadd.f32 -1.0, %v404_v32  ;;  %v400_v48 = vmul.f32 %v4438_v39, %v4438_v39 }
  0x28   : > { %3491 = vmatmul.mubr.msk.f32.gmra.mrb[4].mxu0 %vm748_vm0, %v4401_v26  ;;  %3677 = vrsqrt.f32 %v4405_v28  ;;  %v4471_v49 = vmax.f32 %v4433_v37, 1e-15  ;;  %v4474_v50 = vmax.f32 %v4378_v19, 1.0000001  ;;  %v4477_v51 = vmax.f32 %v4448_v41, 1.0000001 }
  0x29   : > { %3503 = vmatmul.mubr.msk.f32.gmra.mrb[4].mxu1 %vm748_vm0, %v4413_v30  ;;  %3493 = vmatprep.mubr.msk.f32.mxu0 %vm748_vm0, %v4416_v31  ;;  %6950 = vst [vmem:[#allocation10_spill] sm:$0xff] %v4464_v46  ;;  %v4481_v52 = vadd.f32 -1.0, %v405_v38  ;;  %v408_v53 = vmul.f32 %v4441_v40, %v4441_v40  ;;  %v401_v54 = vmul.f32 %v4455_v44, %v4455_v44  ;;  %3679 = vrsqrt.f32 %v4426_v35 }
  0x2a   : > { %3505 = vmatprep.mubr.msk.f32.mxu1 %vm748_vm0, %v4424_v34  ;;  %6951 = vst [vmem:[#allocation11_spill] sm:$0xff] %v4474_v50  ;;  %v4491_v55 = vmax.f32 %v4405_v28, 1e-15  ;;  %v4493_v56 = vadd.f32 -1.0, %v406_v42  ;;  %v4495_v57 = vadd.f32 -1.0, %v399_v43  ;;  %v402_v58 = vmul.f32 %v4477_v51, %v4477_v51 }
  0x2b   : > { %v4502_v59 = vmax.f32 %v4466_v47, 1e-15  ;;  %v4504_v60 = vadd.f32 -1.0, %v400_v48  ;;  %v4507_v61 = vmax.f32 %v4460_v45, 1.0000001  ;;  %3681 = vrsqrt.f32 %v4466_v47 }
  0x2c   : > { %3494 = vmatmul.mubr.msk.f32.gmra.mrb[6].mxu0 %vm748_vm0, %v4448_v41  ;;  %v4511_v62 = vmax.f32 %v4493_v56, 1e-15  ;;  %v4514_v63 = vmax.f32 %v4495_v57, 1e-15  ;;  %v4518_v0 = vmul.f32 %v4474_v50, %v4474_v50  ;;  %v4521_v1 = vmax.f32 %v4424_v34, 1.0000001 }
  0x2d   : > { %3506 = vmatmul.mubr.msk.f32.gmra.mrb[6].mxu1 %vm748_vm0, %v4460_v45  ;;  %6952 = vst [vmem:[#allocation12_spill] sm:$0xff] %v4507_v61  ;;  %v4524_v2 = vmax.f32 %v4504_v60, 1e-15  ;;  %v4526_v20 = vadd.f32 -1.0, %v408_v53  ;;  %v4528_v21 = vadd.f32 -1.0, %v401_v54  ;;  %v4535_v24 = vadd.f32 -1.0, %v402_v58 }
  0x2e   : > { %3510 = vmatprep.mubr.msk.f32.mxu1 %vm748_vm0, %v4316_v3  ;;  %v4533_v22 = vmax.f32 %v4403_v27, 1e-15  ;;  %vm443_vm1 = vcmp.eq.f32.partialorder %v4403_v27, inf  ;;  %v446_v32 = vand.u32 2147483648, %v4403_v27  ;;  %3683 = vrsqrt.f32 %v4491_v55 }
  0x2f   : > { %v4545_v38 = vmul.f32 %v4507_v61, %v4507_v61  ;;  %vm445_vm2 = vcmp.eq.f32.partialorder %v4403_v27, 0.0  ;;  %v4551_v48 = vmax.f32 %v4535_v24, 1e-15  ;;  %vm450_vm3 = vcmp.eq.f32.partialorder %v4405_v28, inf }
  0x30   : > { %3685 = vrsqrt.f32 %v4533_v22  ;;  %vm452_vm4 = vcmp.eq.f32.partialorder %v4405_v28, 0.0  ;;  %vm619_vm5 = vcmp.eq.f32.partialorder %v4533_v22, inf  ;;  %vm621_vm6 = vcmp.eq.f32.partialorder %v4533_v22, 0.0 }
  0x31   : > { %3511 = vmatmul.mubr.msk.f32.vlgmr.msra.gmra.mrb[8].mxu1 %vm748_vm0, %v4322_v5  ;;  %v3676_v23 = vpop.eup %3675  ;;  %3687 = vrsqrt.f32 %v4504_v60  ;;  %vm626_vm7 = vcmp.eq.f32.partialorder %v4491_v55, inf  ;;  %vm628_vm8 = vcmp.eq.f32.partialorder %v4491_v55, 0.0  ;;  %vm464_vm9 = vcmp.eq.f32.partialorder %v4504_v60, inf }
  0x32   : > { %3513 = vmatprep.mubr.msk.f32.mxu1 %vm748_vm0, %v4345_v10  ;;  %3563 = vmatpush3.msra.mxu1 %v4334_v7  ;;  %v442_v42 = vmul.f32 %v3676_v23, %v4403_v27  ;;  %v3678_v43 = vpop.eup %3677  ;;  %v453_v7 = vand.u32 2147483648, %v4405_v28  ;;  %v622_v23 = vand.u32 2147483648, %v4533_v22  ;;  %3689 = vrsqrt.f32 %v4524_v2 }
  0x33   : > { %v449_v54 = vmul.f32 %v3678_v43, %v4405_v28  ;;  %v3680_v50 = vpop.eup %3679  ;;  %3691 = vrsqrt.f32 %v4535_v24  ;;  %vm466_vm10 = vcmp.eq.f32.partialorder %v4504_v60, 0.0  ;;  %vm640_vm11 = vcmp.eq.f32.partialorder %v4524_v2, inf }
  0x34   : > { %v444_v53 = vsel %vm443_vm1, %v4403_v27, %v442_v42  ;;  %vm642_vm12 = vcmp.eq.f32.partialorder %v4524_v2, 0.0  ;;  %vm478_vm13 = vcmp.eq.f32.partialorder %v4535_v24, inf  ;;  %3693 = vrsqrt.f32 %v4551_v48 }
  0x35   : > { %3514 = vmatmul.mubr.msk.f32.gmra.mrb[10].mxu1 %vm748_vm0, %v4358_v13  ;;  %v447_v58 = vsel %vm445_vm2, %v446_v32, %v444_v53  ;;  %v451_v27 = vsel %vm450_vm3, %v4405_v28, %v449_v54  ;;  %v629_v32 = vand.u32 2147483648, %v4491_v55  ;;  %v3682_v43 = vpop.eup %3681  ;;  %v467_v53 = vand.u32 2147483648, %v4504_v60 }
  0x36   : > { %3516 = vmatprep.mubr.msk.f32.mxu1 %vm748_vm0, %v4372_v17  ;;  %v541_v25 = vadd.f32 %v447_v58, %v4361_v14  ;;  %v454_v42 = vsel %vm452_vm4, %v453_v7, %v451_v27  ;;  %v643_v28 = vand.u32 2147483648, %v4524_v2  ;;  %vm429_vm14 = vcmp.eq.f32.partialorder %v4426_v35, inf }
  0x37   : > { %v542_v14 = vadd.f32 %v454_v42, %v4366_v15  ;;  %v428_v15 = vmul.f32 %v3680_v50, %v4426_v35  ;;  %vm431_vm15 = vcmp.eq.f32.partialorder %v4426_v35, 0.0  ;;  %v432_v54 = vand.u32 2147483648, %v4426_v35 }
  0x38   : > { %3695 = vlog2.f32 %v541_v25  ;;  %v3684_v7 = vpop.eup %3683  ;;  %v4593_v58 = vmax.f32 %v4426_v35, 1e-15  ;;  %v491_v27 = vmul.f32 %v3682_v43, %v4466_v47  ;;  %vm492_vm1 = vcmp.eq.f32.partialorder %v4466_v47, inf }
  0x39   : > { %3517 = vmatmul.mubr.msk.f32.gmra.mrb[12].mxu1 %vm748_vm0, %v4401_v26  ;;  %3697 = vlog2.f32 %v542_v14  ;;  %v625_v25 = vmul.f32 %v3684_v7, %v4491_v55  ;;  %v430_v50 = vsel %vm429_vm14, %v4426_v35, %v428_v15  ;;  %v495_v8 = vand.u32 2147483648, %v4466_v47 }
  0x3a   : > { %3519 = vmatprep.mubr.msk.f32.mxu1 %vm748_vm0, %v4416_v31  ;;  %v3686_v42 = vpop.eup %3685  ;;  %v433_v46 = vsel %vm431_vm15, %v432_v54, %v430_v50  ;;  %3699 = vrsqrt.f32 %v4593_v58  ;;  %vm494_vm2 = vcmp.eq.f32.partialorder %v4466_v47, 0.0  ;;  %vm480_vm3 = vcmp.eq.f32.partialorder %v4535_v24, 0.0 }
  0x3b   : > { %v618_v14 = vmul.f32 %v3686_v42, %v4533_v22  ;;  %v3688_v43 = vpop.eup %3687  ;;  %v627_v7 = vsel %vm626_vm7, %v4491_v55, %v625_v25  ;;  %v481_v35 = vand.u32 2147483648, %v4535_v24  ;;  %v539_v15 = vadd.f32 %v433_v46, %v4325_v6 }
  0x3c   : > { %v3690_v61 = vpop.eup %3689  ;;  %v630_v42 = vsel %vm628_vm8, %v629_v32, %v627_v7  ;;  %v463_v50 = vmul.f32 %v3688_v43, %v4504_v60  ;;  %v493_v25 = vsel %vm492_vm1, %v4466_v47, %v491_v27  ;;  %vm654_vm4 = vcmp.eq.f32.partialorder %v4551_v48, inf }
  0x3d   : > { %3520 = vmatmul.mubr.msk.f32.gmra.mrb[14].mxu1 %vm748_vm0, %v4448_v41  ;;  %v620_v54 = vsel %vm619_vm5, %v4533_v22, %v618_v14  ;;  %3701 = vrcp.f32 %v630_v42  ;;  %v639_v46 = vmul.f32 %v3690_v61, %v4524_v2  ;;  %v496_v36 = vsel %vm494_vm2, %v495_v8, %v493_v25  ;;  %v3692_v14 = vpop.eup %3691 }
  0x3e   : > { %3522 = vmatprep.mubr.msk.f32.mxu1 %vm748_vm0, %v4319_v4  ;;  %v623_v6 = vsel %vm621_vm6, %v622_v23, %v620_v54  ;;  %v465_v55 = vsel %vm464_vm9, %v4504_v60, %v463_v50  ;;  %v548_v47 = vadd.f32 %v496_v36, %v4375_v18  ;;  %v477_v61 = vmul.f32 %v3692_v14, %v4535_v24  ;;  %v3694_v23 = vpop.eup %3693 }
  0x3f   : > { %3703 = vrcp.f32 %v623_v6  ;;  %v468_v22 = vsel %vm466_vm10, %v467_v53, %v465_v55  ;;  %v641_v8 = vsel %vm640_vm11, %v4524_v2, %v639_v46  ;;  %v657_v43 = vand.u32 2147483648, %v4551_v48 }
  0x40   : > { %3705 = vlog2.f32 %v539_v15  ;;  %v544_v32 = vadd.f32 %v468_v22, %v4438_v39  ;;  %v644_v27 = vsel %vm642_vm12, %v643_v28, %v641_v8  ;;  %v479_v36 = vsel %vm478_vm13, %v4535_v24, %v477_v61 }
  0x41   : > { %3523 = vmatmul.mubr.msk.f32.gmra.mrb[16].mxu1 %vm748_vm0, %v4342_v9  ;;  %3707 = vlog2.f32 %v548_v47  ;;  %v653_v60 = vmul.f32 %v3694_v23, %v4551_v48  ;;  %vm656_vm5 = vcmp.eq.f32.partialorder %v4551_v48, 0.0  ;;  %v4652_v2 = vmax.f32 %v4526_v20, 1e-15 }
  0x42   : > { %3525 = vmatprep.mubr.msk.f32.mxu1 %vm748_vm0, %v4348_v11  ;;  %v3696_v18 = vpop.eup %3695  ;;  %3709 = vrcp.f32 %v644_v27  ;;  %v4655_v53 = vmax.f32 %v4528_v21, 1e-15  ;;  %v482_v28 = vsel %vm480_vm3, %v481_v35, %v479_v36  ;;  %v4662_v7 = vadd.f32 -1.0, %v4545_v38 }
  0x43   : > { %v3698_v39 = vpop.eup %3697  ;;  %3711 = vlog2.f32 %v544_v32  ;;  %v546_v15 = vadd.f32 %v482_v28, %v4477_v51  ;;  %v655_v54 = vsel %vm654_vm4, %v4551_v48, %v653_v60  ;;  %vm605_vm6 = vcmp.eq.f32.partialorder %v4593_v58, inf }
  0x44   : > { %3713 = vrsqrt.f32 %v4502_v59  ;;  %v3700_v42 = vpop.eup %3699  ;;  %v658_v50 = vsel %vm656_vm5, %v657_v43, %v655_v54  ;;  %v608_v25 = vand.u32 2147483648, %v4593_v58  ;;  %v560_v24 = vmul.f32 0.6931472, %v3696_v18 }
  0x45   : > { %3526 = vmatmul.mubr.msk.f32.gmra.mrb[18].mxu1 %vm748_vm0, %v4369_v16  ;;  %3715 = vrsqrt.f32 %v4433_v37  ;;  %v604_v51 = vmul.f32 %v3700_v42, %v4593_v58  ;;  %vm607_vm7 = vcmp.eq.f32.partialorder %v4593_v58, 0.0  ;;  %v4677_v38 = vmax.f32 %v4662_v7, 1e-15 }
  0x46   : > { %3528 = vmatprep.mubr.msk.f32.mxu1 %vm748_vm0, %v4378_v19  ;;  %3717 = vlog2.f32 %v546_v15  ;;  %vm668_vm8 = vcmp.eq.f32.partialorder %v4502_v59, inf  ;;  %vm670_vm9 = vcmp.eq.f32.partialorder %v4502_v59, 0.0  ;;  %v562_v35 = vmul.f32 0.6931472, %v3698_v39 }
  0x47   : > { %3719 = vrcp.f32 %v658_v50  ;;  %v3702_v48 = vpop.eup %3701  ;;  %v606_v6 = vsel %vm605_vm6, %v4593_v58, %v604_v51  ;;  %v671_v46 = vand.u32 2147483648, %v4502_v59  ;;  %vm436_vm10 = vcmp.eq.f32.partialorder %v4433_v37, inf }
  0x48   : > { %3721 = vrsqrt.f32 %v4471_v49  ;;  %v609_v55 = vsel %vm607_vm7, %v608_v25, %v606_v6  ;;  %vm438_vm11 = vcmp.eq.f32.partialorder %v4433_v37, 0.0  ;;  %v439_v58 = vand.u32 2147483648, %v4433_v37 }
  0x49   : > { %3529 = vmatmul.mubr.msk.f32.gmra.mrb[20].mxu1 %vm748_vm0, %v4413_v30  ;;  %v3704_v14 = vpop.eup %3703  ;;  %3723 = vrsqrt.f32 %v4493_v56  ;;  %vm612_vm12 = vcmp.eq.f32.partialorder %v4471_v49, inf  ;;  %vm614_vm13 = vcmp.eq.f32.partialorder %v4471_v49, 0.0  ;;  %v615_v61 = vand.u32 2147483648, %v4471_v49 }
  0x4a   : > { %3531 = vmatprep.mubr.msk.f32.mxu1 %vm748_vm0, %v4424_v34  ;;  %v3706_v47 = vpop.eup %3705  ;;  %v720_v22 = vmul.f32 %v3704_v14, %v560_v24  ;;  %3725 = vrcp.f32 %v609_v55  ;;  %vm506_vm14 = vcmp.eq.f32.partialorder %v4493_v56, inf  ;;  %v722_v32 = vmul.f32 %v3702_v48, %v562_v35 }
  0x4b   : > { %v3708_v8 = vpop.eup %3707  ;;  %3727 = vrsqrt.f32 %v4511_v62  ;;  %vm508_vm15 = vcmp.eq.f32.partialorder %v4493_v56, 0.0  ;;  %v509_v27 = vand.u32 2147483648, %v4493_v56  ;;  %v556_v18 = vmul.f32 0.6931472, %v3706_v47 }
  0x4c   : > { %v3710_v23 = vpop.eup %3709  ;;  %954 = vperm.xlu1 %3674, %v720_v22   ;;  %3729 = vrsqrt.f32 %v4495_v57  ;;  %vm682_vm1 = vcmp.eq.f32.partialorder %v4511_v62, inf  ;;  %v4707_v39 = vmul.f32 0.6931472, %v3708_v8  ;;  %vm684_vm2 = vcmp.eq.f32.partialorder %v4511_v62, 0.0 }
  0x4d   : > { %3532 = vmatmul.mubr.msk.f32.gmra.mrb[22].mxu1 %vm748_vm0, %v4460_v45  ;;  %v3712_v43 = vpop.eup %3711  ;;  %3731 = vrsqrt.f32 %v4514_v63  ;;  %vm457_vm3 = vcmp.eq.f32.partialorder %v4495_v57, inf  ;;  %v460_v28 = vand.u32 2147483648, %v4495_v57  ;;  %vm635_vm6 = vcmp.eq.f32.partialorder %v4514_v63, 0.0 }
  0x4e   : > { %3564 = vmatprep.mubr.msk.f32.mxu1 %vm748_vm0, %v4316_v3  ;;  %v685_v3 = vand.u32 2147483648, %v4511_v62  ;;  %v3714_v36 = vpop.eup %3713  ;;  %v566_v60 = vmul.f32 0.6931472, %v3712_v43  ;;  %3733 = vrsqrt.f32 %v4526_v20  ;;  %vm522_vm5 = vcmp.eq.f32.partialorder %v4526_v20, 0.0 }
  0x4f   : > { %v3716_v15 = vpop.eup %3715  ;;  %v667_v54 = vmul.f32 %v3714_v36, %v4502_v59  ;;  %3735 = vrsqrt.f32 %v4652_v2  ;;  %v523_v48 = vand.u32 2147483648, %v4526_v20  ;;  %vm696_vm4 = vcmp.eq.f32.partialorder %v4652_v2, inf }
  0x50   : > { %v3718_v42 = vpop.eup %3717  ;;  %959 = vperm.xlu1 %3674, %v722_v32   ;;  %v726_v50 = vmul.f32 %v3710_v23, %v566_v60  ;;  %v435_v25 = vmul.f32 %v3716_v15, %v4433_v37  ;;  %3737 = vrsqrt.f32 %v4528_v21  ;;  %vm698_vm7 = vcmp.eq.f32.partialorder %v4652_v2, 0.0 }
  0x51   : > { %3565 = vmatmul.mubr.msk.f32.vlgmr.msra.gmra.mrb[24].mxu1 %vm748_vm0, %v4322_v5  ;;  %v636_v5 = vand.u32 2147483648, %v4514_v63  ;;  %v570_v24 = vmul.f32 0.6931472, %v3718_v42  ;;  %v669_v51 = vsel %vm668_vm8, %v4502_v59, %v667_v54  ;;  %v699_v55 = vand.u32 2147483648, %v4652_v2 }
  0x52   : > { %3567 = vmatprep.mubr.msk.f32.mxu1 %vm748_vm0, %v4345_v10  ;;  %v3720_v10 = vpop.eup %3719  ;;  %v672_v6 = vsel %vm670_vm9, %v671_v46, %v669_v51  ;;  %v437_v14 = vsel %vm436_vm10, %v4433_v37, %v435_v25  ;;  %3739 = vrsqrt.f32 %v4655_v53  ;;  %vm471_vm8 = vcmp.eq.f32.partialorder %v4528_v21, inf }
  0x53   : > { %v3722_v35 = vpop.eup %3721  ;;  %3741 = vrcp.f32 %v672_v6  ;;  %v730_v22 = vmul.f32 %v3720_v10, %v570_v24  ;;  %vm473_vm9 = vcmp.eq.f32.partialorder %v4528_v21, 0.0  ;;  %v474_v32 = vand.u32 2147483648, %v4528_v21 }
  0x54   : > { %v3724_v47 = vpop.eup %3723  ;;  %v611_v59 = vmul.f32 %v3722_v35, %v4471_v49  ;;  %969 = vperm.xlu1 %3674, %v726_v50   ;;  %vm647_vm10 = vcmp.eq.f32.partialorder %v4655_v53, inf  ;;  %3743 = vrsqrt.f32 %v4662_v7 }
  0x55   : > { %3568 = vmatmul.mubr.msk.f32.gmra.mrb[26].mxu1 %vm748_vm0, %v4358_v13  ;;  %v440_v13 = vsel %vm438_vm11, %v439_v58, %v437_v14  ;;  %v3726_v46 = vpop.eup %3725  ;;  %v505_v23 = vmul.f32 %v3724_v47, %v4493_v56  ;;  %vm649_vm11 = vcmp.eq.f32.partialorder %v4655_v53, 0.0 }
  0x56   : > { %3570 = vmatprep.mubr.msk.f32.mxu1 %vm748_vm0, %v4372_v17  ;;  %v540_v8 = vadd.f32 %v440_v13, %v4351_v12  ;;  %v3728_v17 = vpop.eup %3727  ;;  %v716_v43 = vmul.f32 %v3726_v46, %v556_v18  ;;  %v613_v37 = vsel %vm612_vm12, %v4471_v49, %v611_v59  ;;  %vm6953_vm12 = vcmp.eq.f32.partialorder %v4495_v57, 0.0 }
  0x57   : > { %v3730_v58 = vpop.eup %3729  ;;  %v616_v12 = vsel %vm614_vm13, %v615_v61, %v613_v37  ;;  %v507_v18 = vsel %vm506_vm14, %v4493_v56, %v505_v23  ;;  %v681_v36 = vmul.f32 %v3728_v17, %v4511_v62  ;;  %vm6954_vm13 = vcmp.eq.f32.partialorder %v4514_v63, inf }
  0x58   : > { %3745 = vlog2.f32 %v540_v8  ;;  %v3732_v60 = vpop.eup %3731  ;;  %944 = vperm.xlu0 %3673, %v716_v43   ;;  %v456_v49 = vmul.f32 %v3730_v58, %v4495_v57  ;;  %979 = vperm.xlu1 %3674, %v730_v22   ;;  %vm6955_vm14 = vcmp.eq.f32.partialorder %v4526_v20, inf  ;;  %v4843_v59 = vmax.f32 %v4481_v52, 1e-15  ;;  %v6957_v43 = vld [vmem:[#allocation12_spill] sm:$0xff]  ;;  %v6958_v58 = vld [vmem:[#allocation10_spill] sm:$0xff] }
  0x59   : > { %3571 = vmatmul.mubr.msk.f32.gmra.mrb[28].mxu1 %vm748_vm0, %v4401_v26  ;;  %3747 = vrcp.f32 %v616_v12  ;;  %v510_v26 = vsel %vm508_vm15, %v509_v27, %v507_v18  ;;  %v3734_v61 = vpop.eup %3733  ;;  %v683_v54 = vsel %vm682_vm1, %v4511_v62, %v681_v36  ;;  %v632_v42 = vmul.f32 %v3732_v60, %v4514_v63 }
  0x5a   : > { %3573 = vmatprep.mubr.msk.f32.mxu1 %vm748_vm0, %v4416_v31  ;;  %v550_v15 = vadd.f32 %v510_v26, %v4408_v29  ;;  %v650_v31 = vand.u32 2147483648, %v4655_v53  ;;  %v3736_v50 = vpop.eup %3735  ;;  %v686_v56 = vsel %vm684_vm2, %v685_v3, %v683_v54  ;;  %v458_v27 = vsel %vm457_vm3, %v4495_v57, %v456_v49 }
  0x5b   : > { %v519_v29 = vmul.f32 %v3734_v61, %v4526_v20  ;;  %3749 = vrsqrt.f32 %v4677_v38  ;;  %v3738_v25 = vpop.eup %3737  ;;  %v461_v10 = vsel %vm6953_vm12, %v460_v28, %v458_v27  ;;  %v634_v62 = vsel %vm6954_vm13, %v4514_v63, %v632_v42 }
  0x5c   : > { %3751 = vlog2.f32 %v550_v15  ;;  %v695_v3 = vmul.f32 %v3736_v50, %v4652_v2  ;;  %v543_v24 = vadd.f32 %v461_v10, %v4421_v33  ;;  %v637_v51 = vsel %vm635_vm6, %v636_v5, %v634_v62  ;;  %v3740_v57 = vpop.eup %3739 }
  0x5d   : > { %3574 = vmatmul.mubr.msk.f32.gmra.mrb[30].mxu1 %vm748_vm0, %v4448_v41  ;;  %3753 = vrcp.f32 %v686_v56  ;;  %v521_v41 = vsel %vm6955_vm14, %v4526_v20, %v519_v29  ;;  %v470_v63 = vmul.f32 %v3738_v25, %v4528_v21  ;;  %v3742_v5 = vpop.eup %3741  ;;  %v646_v6 = vmul.f32 %v3740_v57, %v4655_v53 }
  0x5e   : > { %3576 = vmatprep.mubr.msk.f32.mxu1 %vm748_vm0, %v4319_v4  ;;  %3755 = vrcp.f32 %v637_v51  ;;  %v524_v28 = vsel %vm522_vm5, %v523_v48, %v521_v41  ;;  %v697_v33 = vsel %vm696_vm4, %v4652_v2, %v695_v3  ;;  %v734_v20 = vmul.f32 %v3742_v5, %v4707_v39 }
  0x5f   : > { %3757 = vlog2.f32 %v543_v24  ;;  %v552_v4 = vadd.f32 %v524_v28, %v4441_v40  ;;  %v700_v35 = vsel %vm698_vm7, %v699_v55, %v697_v33  ;;  %v472_v48 = vsel %vm471_vm8, %v4528_v21, %v470_v63  ;;  %v3744_v40 = vpop.eup %3743 }
  0x60   : > { %3759 = vrcp.f32 %v700_v35  ;;  %vm534_vm15 = vcmp.eq.f32.partialorder %v4662_v7, inf  ;;  %v475_v2 = vsel %vm473_vm9, %v474_v32, %v472_v48  ;;  %v648_v14 = vsel %vm647_vm10, %v4655_v53, %v646_v6  ;;  %989 = vperm.xlu1 %3674, %v734_v20   ;;  %v6956_v32 = vld [vmem:[#allocation9_spill] sm:$0xff] }
  0x61   : > { %3577 = vmatmul.mubr.msk.f32.gmra.mrb[32].mxu1 %vm748_vm0, %v4342_v9  ;;  %3761 = vlog2.f32 %v552_v4  ;;  %v537_v9 = vand.u32 2147483648, %v4662_v7  ;;  %v545_v55 = vadd.f32 %v475_v2, %v4455_v44  ;;  %v651_v47 = vsel %vm649_vm11, %v650_v31, %v648_v14  ;;  %v6959_v2 = vld [vmem:[#allocation7_spill] sm:$0xff] }
  0x62   : > { %3579 = vmatprep.mubr.msk.f32.mxu1 %vm748_vm0, %v4348_v11  ;;  %v3746_v39 = vpop.eup %3745  ;;  %v533_v13 = vmul.f32 %v3744_v40, %v4662_v7  ;;  %vm536_vm1 = vcmp.eq.f32.partialorder %v4662_v7, 0.0  ;;  %v4846_v46 = vadd.f32 -1.0, %v4518_v0  ;;  %3763 = vrcp.f32 %v651_v47 }
  0x63   : > { %v3748_v21 = vpop.eup %3747  ;;  %v558_v11 = vmul.f32 0.6931472, %v3746_v39  ;;  %v409_v22 = vmul.f32 %v4521_v1, %v4521_v1  ;;  %3765 = vlog2.f32 %v545_v55  ;;  %vm710_vm2 = vcmp.eq.f32.partialorder %v4677_v38, inf }
  0x64   : > { %v535_v44 = vsel %vm534_vm15, %v4662_v7, %v533_v13  ;;  %v713_v0 = vand.u32 2147483648, %v4677_v38  ;;  %3767 = vrsqrt.f32 %v6956_v32  ;;  %vm712_vm3 = vcmp.eq.f32.partialorder %v4677_v38, 0.0 }
  0x65   : > { %3580 = vmatmul.mubr.msk.f32.gmra.mrb[34].mxu1 %vm748_vm0, %v4369_v16  ;;  %v3750_v53 = vpop.eup %3749  ;;  %v718_v8 = vmul.f32 %v3748_v21, %v558_v11  ;;  %v538_v23 = vsel %vm536_vm1, %v537_v9, %v535_v44  ;;  %3769 = vrsqrt.f32 %v6958_v58  ;;  %v4866_v36 = vmax.f32 %v4846_v46, 1e-15 }
  0x66   : > { %3582 = vmatprep.mubr.msk.f32.mxu1 %vm748_vm0, %v4378_v19  ;;  %v3752_v17 = vpop.eup %3751  ;;  %v554_v37 = vadd.f32 %v538_v23, %v6957_v43  ;;  %v709_v7 = vmul.f32 %v3750_v53, %v4677_v38  ;;  %3771 = vrsqrt.f32 %v4481_v52  ;;  %v4868_v60 = vadd.f32 -1.0, %v409_v22  ;;  %v6960_v22 = vld [vmem:[#allocation8_spill] sm:$0xff] }
  0x67   : > { %v3754_v16 = vpop.eup %3753  ;;  %949 = vperm.xlu0 %3673, %v718_v8   ;;  %v578_v12 = vmul.f32 0.6931472, %v3752_v17  ;;  %vm485_vm4 = vcmp.eq.f32.partialorder %v6956_v32, inf  ;;  %vm487_vm5 = vcmp.eq.f32.partialorder %v6956_v32, 0.0  ;;  %v488_v50 = vand.u32 2147483648, %v6956_v32 }
  0x68   : > { %v3756_v18 = vpop.eup %3755  ;;  %3773 = vlog2.f32 %v554_v37  ;;  %v711_v19 = vsel %vm710_vm2, %v4677_v38, %v709_v7  ;;  %v4879_v54 = vmax.f32 %v4868_v60, 1e-15  ;;  %vm661_vm6 = vcmp.eq.f32.partialorder %v6958_v58, inf }
  0x69   : > { %3583 = vmatmul.mubr.msk.f32.gmra.mrb[36].mxu1 %vm748_vm0, %v4413_v30  ;;  %v3758_v26 = vpop.eup %3757  ;;  %v738_v49 = vmul.f32 %v3754_v16, %v578_v12  ;;  %v714_v61 = vsel %vm712_vm3, %v713_v0, %v711_v19  ;;  %3775 = vrsqrt.f32 %v4843_v59  ;;  %vm663_vm7 = vcmp.eq.f32.partialorder %v6958_v58, 0.0  ;;  %v6961_v12 = vld [vmem:[#allocation11_spill] sm:$0xff] }
  0x6a   : > { %3585 = vmatprep.mubr.msk.f32.mxu1 %vm748_vm0, %v4424_v34  ;;  %v3760_v15 = vpop.eup %3759  ;;  %v564_v42 = vmul.f32 0.6931472, %v3758_v26  ;;  %3777 = vrcp.f32 %v714_v61  ;;  %v664_v56 = vand.u32 2147483648, %v6958_v58  ;;  %vm499_vm8 = vcmp.eq.f32.partialorder %v4481_v52, inf }
  0x6b   : > { %v3762_v31 = vpop.eup %3761  ;;  %999 = vperm.xlu1 %3674, %v738_v49   ;;  %3779 = vrsqrt.f32 %v4846_v46  ;;  %vm501_vm9 = vcmp.eq.f32.partialorder %v4481_v52, 0.0  ;;  %v502_v10 = vand.u32 2147483648, %v4481_v52  ;;  %vm677_vm10 = vcmp.eq.f32.partialorder %v4843_v59, 0.0 }
  0x6c   : > { %v724_v30 = vmul.f32 %v3756_v18, %v564_v42  ;;  %v582_v38 = vmul.f32 0.6931472, %v3762_v31  ;;  %3781 = vrsqrt.f32 %v4866_v36  ;;  %v3764_v34 = vpop.eup %3763  ;;  %v678_v24 = vand.u32 2147483648, %v4843_v59 }
  0x6d   : > { %3586 = vmatmul.mubr.msk.f32.gmra.mrb[38].mxu1 %vm748_vm0, %v4460_v45  ;;  %3783 = vrsqrt.f32 %v4868_v60  ;;  %v3766_v27 = vpop.eup %3765  ;;  %vm675_vm0 = vcmp.eq.f32.partialorder %v4843_v59, inf  ;;  %vm513_vm11 = vcmp.eq.f32.partialorder %v4846_v46, inf  ;;  %vm515_vm12 = vcmp.eq.f32.partialorder %v4846_v46, 0.0 }
  0x6e   : > { %964 = vperm.xlu0 %3673, %v724_v30   ;;  %v742_v29 = vmul.f32 %v3760_v15, %v582_v38  ;;  %3785 = vrsqrt.f32 %v4879_v54  ;;  %v3768_v45 = vpop.eup %3767  ;;  %v568_v25 = vmul.f32 0.6931472, %v3766_v27  ;;  %v516_v28 = vand.u32 2147483648, %v4846_v46 }
  0x6f   : > { %v3770_v62 = vpop.eup %3769  ;;  %v484_v3 = vmul.f32 %v3768_v45, %v6956_v32  ;;  %vm689_vm13 = vcmp.eq.f32.partialorder %v4866_v36, inf  ;;  %vm691_vm14 = vcmp.eq.f32.partialorder %v4866_v36, 0.0  ;;  %v692_v4 = vand.u32 2147483648, %v4866_v36 }
  0x70   : > { %1009 = vperm.xlu1 %3674, %v742_v29   ;;  %v3772_v51 = vpop.eup %3771  ;;  %v728_v41 = vmul.f32 %v3764_v34, %v568_v25  ;;  %v660_v57 = vmul.f32 %v3770_v62, %v6958_v58  ;;  %vm527_vm15 = vcmp.eq.f32.partialorder %v4868_v60, inf  ;;  %vm529_vm1 = vcmp.eq.f32.partialorder %v4868_v60, 0.0 }
  0x71   : > { %v486_v63 = vsel %vm485_vm4, %v6956_v32, %v484_v3  ;;  %v498_v5 = vmul.f32 %v3772_v51, %v4481_v52  ;;  %v530_v32 = vand.u32 2147483648, %v4868_v60  ;;  %vm703_vm2 = vcmp.eq.f32.partialorder %v4879_v54, inf  ;;  %v1299_v3 = vld [vmem:[%s6859_s4] sm:$0xff] }
  0x72   : > { %v3774_v33 = vpop.eup %3773  ;;  %974 = vperm.xlu0 %3673, %v728_v41   ;;  %v489_v20 = vsel %vm487_vm5, %v488_v50, %v486_v63  ;;  %v662_v48 = vsel %vm661_vm6, %v6958_v58, %v660_v57  ;;  %v706_v7 = vand.u32 2147483648, %v4879_v54  ;;  %vm705_vm3 = vcmp.eq.f32.partialorder %v4879_v54, 0.0  ;;  %v1302_v63 = vld [vmem:[%s6859_s4 + $0x18] sm:$0xff] }
  0x73   : > { %v3776_v35 = vpop.eup %3775  ;;  %v586_v6 = vmul.f32 0.6931472, %v3774_v33  ;;  %v547_v14 = vadd.f32 %v489_v20, %v6959_v2  ;;  %v665_v9 = vsel %vm663_vm7, %v664_v56, %v662_v48  ;;  %v500_v39 = vsel %vm499_vm8, %v4481_v52, %v498_v5  ;;  %v1301_v33 = vld [vmem:[%s6859_s4 + $0x10] sm:$0xff] }
  0x74   : > { %v3778_v40 = vpop.eup %3777  ;;  %v674_v55 = vmul.f32 %v3776_v35, %v4843_v59  ;;  %3787 = vrcp.f32 %v665_v9  ;;  %v503_v21 = vsel %vm501_vm9, %v502_v10, %v500_v39  ;;  %v1038_v62 = vlaneseq }
  0x75   : > { %v3780_v47 = vpop.eup %3779  ;;  %v746_v13 = vmul.f32 %v3778_v40, %v586_v6  ;;  %3789 = vlog2.f32 %v547_v14  ;;  %v549_v44 = vadd.f32 %v503_v21, %v6960_v22  ;;  %v4975_v5 = vpack.c.bf16 %v1302_v63, %v1301_v33 }
  0x76   : > { %v3782_v11 = vpop.eup %3781  ;;  %v676_v53 = vsel %vm675_vm0, %v4843_v59, %v674_v55  ;;  %v512_v8 = vmul.f32 %v3780_v47, %v4846_v46  ;;  %v2050_v51 = vshrl.u32 %v1038_v62, 7  ;;  %v1546_v35 = vstv %s1304_s29  ;;  %s3019_s29 = sshll.u32 %s6737_s26, 4  ;;  %s6809_s29 = int_to_ptr.vmem [resolvable:$true] %s3019_s29 }
  0x77   : > { %v3784_v23 = vpop.eup %3783  ;;  %1019 = vperm.xlu1 %3674, %v746_v13   ;;  %v679_v0 = vsel %vm677_vm10, %v678_v24, %v676_v53  ;;  %v688_v52 = vmul.f32 %v3782_v11, %v4866_v36  ;;  %3791 = vlog2.f32 %v549_v44  ;;  %v1300_v24 = vld [vmem:[%s6859_s4 + $0x8] sm:$0xff]  ;;  %v1547_v6 = vmul.f32 1.442695, %v1546_v35  ;;  %s4127_s12 = scalar_lea.vmem %s6809_s29, 1024 }
  0x78   : > { %v3786_v17 = vpop.eup %3785  ;;  %v514_v43 = vsel %vm513_vm11, %v4846_v46, %v512_v8  ;;  %v526_v37 = vmul.f32 %v3784_v23, %v4868_v60  ;;  %3793 = vrcp.f32 %v679_v0  ;;  %v3616_v41 = vpack.c.bf16 %v1300_v24, %v1299_v3  ;;  %p4128_p11 = scmp.ne.s32.totalorder %s6809_s29, %s4127_s12 }
  0x79   : > { %v517_v59 = vsel %vm515_vm12, %v516_v28, %v514_v43  ;;  %v690_v58 = vsel %vm689_vm13, %v4866_v36, %v688_v52  ;;  %v702_v16 = vmul.f32 %v3786_v17, %v4879_v54  ;;  %v2051_v57 = vsub.s32 0, %v2050_v51 }
  0x7a   : > { %v551_v18 = vadd.f32 %v517_v59, %v6961_v12  ;;  %v693_v19 = vsel %vm691_vm14, %v692_v4, %v690_v58  ;;  %v528_v26 = vsel %vm527_vm15, %v4868_v60, %v526_v37  ;;  %3617 = vmatprep.subr.bf16.mxu0 %v3616_v41  ;;  %v2393_v48 = vstv %s2151_s30  ;;  %p4129_p12 = pnand %p4128_p11, %p4290_p5 }
  0x7b   : > { %3795 = vrcp.f32 %v693_v19  ;;  %v531_v46 = vsel %vm529_vm1, %v530_v32, %v528_v26  ;;  %v704_v49 = vsel %vm703_vm2, %v4879_v54, %v702_v16  ;;  %3619 = vmatpush3.bf16.msra.mxu0 %v3616_v41  ;;  %v4967_v28 = vrot.slane %v1299_v3, %v2051_v57 }
  0x7c   : > { %3797 = vlog2.f32 %v551_v18  ;;  %v553_v61 = vadd.f32 %v531_v46, %v4521_v1  ;;  %v707_v15 = vsel %vm705_vm3, %v706_v7, %v704_v49  ;;  %v4977_v4 = vrot.slane %v1301_v33, %v2051_v57  ;;  %3621 = vmatprep.subr.bf16.mxu0 %v4975_v5  ;;  %p4130_p13 = pneg %p4129_p12 }
  0x7d   : > { %v2394_v2 = vmul.f32 1.442695, %v2393_v48  ;;  %v4982_v13 = vand.u32 127, %v1038_v62  ;;  %vm1599_vm5 = vcmask 130048  }
  0x7e   : > { %3799 = vlog2.f32 %v553_v61  ;;  %v3788_v36 = vpop.eup %3787 }
  0x7f   : > { %v3790_v42 = vpop.eup %3789  ;;  %3801 = vrcp.f32 %v707_v15  ;;  %6962 = vst [vmem:[#allocation9_spill] sm:$0xff] %v4982_v13  ;;  %vm1040_vm4 = vcmp.lt.s32.totalorder %v4982_v13, 4 }
  0x80   : > { %v572_v31 = vmul.f32 0.6931472, %v3790_v42  ;;  %3803 = vpow2.f32 %v1547_v6 }
  0x81   : > { %v3792_v30 = vpop.eup %3791  ;;  %3805 = vpow2.f32 %v2394_v2 }
  0x82   : > { %v3794_v38 = vpop.eup %3793  ;;  %v732_v50 = vmul.f32 %v3788_v36, %v572_v31  ;;  %v576_v34 = vmul.f32 0.6931472, %v3792_v30 }
  0x84   : > { %984 = vperm.xlu0 %3673, %v732_v50   ;;  %v736_v60 = vmul.f32 %v3794_v38, %v576_v34 }
  0x85   : > { %v3796_v56 = vpop.eup %3795 }
  0x86   : > { %v3798_v27 = vpop.eup %3797 }
  0x87   : > { %v580_v29 = vmul.f32 0.6931472, %v3798_v27 }
  0x88   : > { %v3800_v45 = vpop.eup %3799  ;;  %994 = vperm.xlu0 %3673, %v736_v60  }
  0x89   : > { %v740_v54 = vmul.f32 %v3796_v56, %v580_v29  ;;  %v584_v25 = vmul.f32 0.6931472, %v3800_v45  ;;  %v3802_v1 = vpop.eup %3801 }
  0x8a   : > { %v3804_v20 = vpop.eup %3803 }
  0x8b   : > { %v744_v10 = vmul.f32 %v3802_v1, %v584_v25  ;;  %3626 = vpush %v3804_v20  ;;  %v3806_v9 = vpop.eup %3805 }
  0x8c   : > { %1004 = vperm.xlu0 %3673, %v740_v54   ;;  %3628 = vpush %v3806_v9 }
  0x90   : > { %1014 = vperm.xlu0 %3673, %v744_v10  }
  0xbc   : > { %s3627_s10 = spop %3626 }
  0xbd   : > { %s3629_s11 = spop %3628 }
  0xcb   : > { %v955_v40 = vpop.permute.xlu1 %954 }
  0xcf   : > { %v960_v14 = vpop.permute.xlu1 %959 }
  0xd3   : > { %v970_v39 = vpop.permute.xlu1 %969 }
  0xd7   : > { %v4980_v55 = vpop.permute.xlu1 %979  ;;  %v945_v47 = vpop.permute.xlu0 %944 }
  0xdf   : > { %v990_v21 = vpop.permute.xlu1 %989 }
  0xe6   : > { %v950_v11 = vpop.permute.xlu0 %949 }
  0xea   : > { %v1000_v49 = vpop.permute.xlu1 %999 }
  0xed   : > { %v965_v59 = vpop.permute.xlu0 %964 }
  0xef   : > { %v1010_v63 = vpop.permute.xlu1 %1009 }
  0xf1   : > { %v5002_v61 = vpop.permute.xlu0 %974 }
  0xf3   : > { %v3486_v22 = vpop.f32.mrb[0].mxu0 }
  0xf4   : > { %v1023_v44 = vmul.f32 %v3486_v22, %v950_v11  ;;  %v3498_v53 = vpop.f32.mrb[0].mxu1  ;;  %v863_v8 = vpop.f32.mrb[1].mxu0 }
  0xf5   : > { %v1031_v23 = vmul.f32 %v3498_v53, %v990_v21  ;;  %v903_v0 = vpop.f32.mrb[1].mxu1  ;;  %v1022_v32 = vmul.f32 %v945_v47, %v863_v8 }
  0xf6   : > { %v4987_v52 = vsel %vm1040_vm4, %v1023_v44, -1e+30 }
  0xf7   : > { %v3489_v17 = vpop.f32.mrb[2].mxu0  ;;  %v4991_v43 = vsel %vm1040_vm4, %v1031_v23, -1e+30  ;;  %1059 = vmax.xlane.f32.xlu1 %v4987_v52  ;;  %v4997_v18 = vsel %vm1040_vm4, %v1022_v32, -1e+30  ;;  %v1020_v32 = vpop.permute.xlu1 %1019 }
  0xf8   : > { %v3501_v37 = vpop.f32.mrb[2].mxu1  ;;  %1075 = vmax.xlane.f32.xlu0 %v4991_v43  ;;  %v873_v7 = vpop.f32.mrb[3].mxu0  ;;  %v1025_v16 = vmul.f32 %v3489_v17, %v960_v14 }
  0xf9   : > { %v913_v58 = vpop.f32.mrb[3].mxu1  ;;  %v1033_v15 = vmul.f32 %v3501_v37, %v1000_v49  ;;  %v1024_v50 = vmul.f32 %v955_v40, %v873_v7 }
  0xfa   : > { %v5006_v42 = vsel %vm1040_vm4, %v1025_v16, -1e+30 }
  0xfb   : > { %v3492_v12 = vpop.f32.mrb[4].mxu0  ;;  %v5017_v34 = vsel %vm1040_vm4, %v1033_v15, -1e+30  ;;  %v5040_v62 = vsel %vm1040_vm4, %v1024_v50, -1e+30 }
  0xfc   : > { %v3504_v19 = vpop.f32.mrb[4].mxu1  ;;  %1057 = vmax.xlane.f32.xlu0 %v4997_v18  ;;  %v883_v26 = vpop.f32.mrb[5].mxu0  ;;  %v1027_v10 = vmul.f32 %v3492_v12, %v970_v39 }
  0xfd   : > { %v5000_v46 = vpop.f32.mrb[5].mxu1  ;;  %v1035_v20 = vmul.f32 %v3504_v19, %v1010_v63  ;;  %v1026_v40 = vmul.f32 %v965_v59, %v883_v26 }
  0xfe   : > { %v5069_v48 = vsel %vm1040_vm4, %v1027_v10, -1e+30 }
  0xff   : > { %v3495_v36 = vpop.f32.mrb[6].mxu0  ;;  %v5098_v53 = vsel %vm1040_vm4, %v1035_v20, -1e+30  ;;  %v5103_v23 = vsel %vm1040_vm4, %v1026_v40, -1e+30 }
 0x100   : > { %v5008_v31 = vpop.f32.mrb[6].mxu1  ;;  %1063 = vmax.xlane.f32.xlu0 %v5006_v42  ;;  %v5011_v30 = vpop.f32.mrb[7].mxu0  ;;  %v1029_v22 = vmul.f32 %v3495_v36, %v4980_v55  ;;  %6970 = vst [vmem:[#allocation15_spill] sm:$0xff] %v5098_v53  ;;  %6971 = vst [vmem:[#allocation16_spill] sm:$0xff] %v5103_v23 }
 0x101   : > { %v5013_v38 = vpop.f32.mrb[7].mxu1  ;;  %v1037_v59 = vmul.f32 %v5008_v31, %v1020_v32  ;;  %v1028_v26 = vmul.f32 %v5002_v61, %v5011_v30 }
 0x102   : > { %v5122_v12 = vsel %vm1040_vm4, %v1029_v22, -1e+30  ;;  %v5191_v22 = vstv %s3627_s10 }
 0x103   : > { %v985_v60 = vpop.permute.xlu0 %984  ;;  %6973 = vst [vmem:[#allocation18_spill] sm:$0xff] %v5122_v12 }
 0x104   : > { %v5019_v56 = vpop.f32.mrb[8].mxu1  ;;  %1079 = vmax.xlane.f32.xlu0 %v5017_v34  ;;  %v1030_v54 = vmul.f32 %v985_v60, %v903_v0 }
 0x105   : > { %v3215_v27 = vmul.f32 -1.442695, %v5019_v56  ;;  %v5023_v29 = vpop.f32.mrb[9].mxu1  ;;  %v5027_v45 = vmul.f32 %v5019_v56, %v4967_v28  ;;  %v5143_v61 = vmul.f32 %v5019_v56, %v5019_v56 }
 0x106   : > { %v3214_v25 = vmul.f32 -1.442695, %v5023_v29  ;;  %3538 = vmatprep.mubr.msk.f32.mxu0 %vm1599_vm5, %v5023_v29  ;;  %v5034_v1 = vmul.f32 %v4967_v28, %v5023_v29  ;;  %v5044_v3 = vsel %vm1040_vm4, %v1030_v54, -1e+30  ;;  %v5182_v40 = vmul.f32 %v5023_v29, %v5023_v29 }
 0x107   : > { %6963 = vst [vmem:[#allocation12_spill] sm:$0xff] %v5027_v45  ;;  %3807 = vpow2.f32 %v3215_v27  ;;  %3539 = vmatmul.mubr.msk.f32.vlgmr.msra.gmra.mrb[8].mxu0 %vm1599_vm5, %v5019_v56  ;;  %v995_v51 = vpop.permute.xlu0 %994  ;;  %1073 = vmax.xlane.f32.xlu1 %v5044_v3  ;;  %6976 = vst [vmem:[#allocation21_spill] sm:$0xff] %v5143_v61 }
 0x108   : > { %6964 = vst [vmem:[#allocation10_spill] sm:$0xff] %v5034_v1  ;;  %3809 = vpow2.f32 %v3214_v25  ;;  %v5046_v24 = vpop.f32.mrb[10].mxu1  ;;  %1061 = vmax.xlane.f32.xlu0 %v5040_v62  ;;  %3623 = vmatpush3.bf16.msra.mxu0 %v4975_v5  ;;  %v1032_v35 = vmul.f32 %v995_v51, %v913_v58  ;;  %v5156_v25 = vsel %vm1040_vm4, %v1037_v59, -1e+30  ;;  %6982 = vst [vmem:[#allocation27_spill] sm:$0xff] %v5182_v40 }
 0x109   : > { %v3217_v41 = vmul.f32 -1.442695, %v5046_v24  ;;  %v5052_v57 = vpop.f32.mrb[11].mxu1  ;;  %v5056_v33 = vmul.f32 %v5046_v24, %v4967_v28  ;;  %6978 = vst [vmem:[#allocation23_spill] sm:$0xff] %v5156_v25  ;;  %v5160_v56 = vmul.f32 %v5046_v24, %v5046_v24 }
 0x10a   : > { %v3216_v6 = vmul.f32 -1.442695, %v5052_v57  ;;  %3541 = vmatprep.mubr.msk.f32.mxu0 %vm1599_vm5, %v5052_v57  ;;  %v5063_v5 = vmul.f32 %v4967_v28, %v5052_v57  ;;  %v5073_v2 = vsel %vm1040_vm4, %v1032_v35, -1e+30 }
 0x10b   : > { %6965 = vst [vmem:[#allocation7_spill] sm:$0xff] %v5056_v33  ;;  %3811 = vpow2.f32 %v3217_v41  ;;  %3542 = vmatmul.mubr.msk.f32.gmra.mrb[10].mxu0 %vm1599_vm5, %v5046_v24  ;;  %6967 = vst [vmem:[#allocation11_spill] sm:$0xff] %v5073_v2  ;;  %1077 = vmax.xlane.f32.xlu1 %v5073_v2  ;;  %v1005_v11 = vpop.permute.xlu0 %1004  ;;  %v5169_v41 = vsel %vm1040_vm4, %v1028_v26, -1e+30  ;;  %v1609_v29 = vsel %vm1599_vm5, %v5160_v56, 0.0 }
 0x10c   : > { %6966 = vst [vmem:[#allocation8_spill] sm:$0xff] %v5063_v5  ;;  %3813 = vpow2.f32 %v3216_v6  ;;  %v5075_v14 = vpop.f32.mrb[12].mxu1  ;;  %1067 = vmax.xlane.f32.xlu0 %v5069_v48  ;;  %v1034_v8 = vmul.f32 %v1005_v11, %v5000_v46  ;;  %6979 = vst [vmem:[#allocation24_spill] sm:$0xff] %v5160_v56  ;;  %v5187_v11 = vmul.f32 %v5052_v57, %v5052_v57 }
 0x10d   : > { %v3219_v9 = vmul.f32 -1.442695, %v5075_v14  ;;  %v5080_v39 = vpop.f32.mrb[13].mxu1  ;;  %v5084_v47 = vmul.f32 %v5075_v14, %v4967_v28  ;;  %6981 = vst [vmem:[#allocation26_spill] sm:$0xff] %v5169_v41  ;;  %v5218_v26 = vmul.f32 %v5075_v14, %v5075_v14 }
 0x10e   : > { %3544 = vmatprep.mubr.msk.f32.mxu0 %vm1599_vm5, %v5080_v39  ;;  %v5090_v21 = vmul.f32 %v4967_v28, %v5080_v39  ;;  %v3218_v44 = vmul.f32 -1.442695, %v5080_v39  ;;  %v5132_v46 = vsel %vm1040_vm4, %v1034_v8, -1e+30  ;;  %6983 = vst [vmem:[#allocation28_spill] sm:$0xff] %v5187_v11 }
 0x10f   : > { %6968 = vst [vmem:[#allocation13_spill] sm:$0xff] %v5084_v47  ;;  %3815 = vpow2.f32 %v3219_v9  ;;  %3545 = vmatmul.mubr.msk.f32.gmra.mrb[12].mxu0 %vm1599_vm5, %v5075_v14  ;;  %1065 = vmax.xlane.f32.xlu1 %v5103_v23  ;;  %6975 = vst [vmem:[#allocation20_spill] sm:$0xff] %v5132_v46  ;;  %v1015_v27 = vpop.permute.xlu0 %1014 }
 0x110   : > { %6969 = vst [vmem:[#allocation14_spill] sm:$0xff] %v5090_v21  ;;  %v5105_v0 = vpop.f32.mrb[14].mxu1  ;;  %1083 = vmax.xlane.f32.xlu0 %v5098_v53  ;;  %3817 = vpow2.f32 %v3218_v44  ;;  %v1036_v51 = vmul.f32 %v1015_v27, %v5013_v38  ;;  %v1603_v38 = vsel %vm1599_vm5, %v5143_v61, 0.0  ;;  %6987 = vst [vmem:[#allocation32_spill] sm:$0xff] %v5218_v26 }
 0x111   : > { %v3808_v55 = vpop.eup %3807  ;;  %v5109_v17 = vpop.f32.mrb[15].mxu1  ;;  %v5113_v37 = vmul.f32 %v5105_v0, %v4967_v28  ;;  %v3221_v36 = vmul.f32 -1.442695, %v5105_v0 }
 0x112   : > { %v3810_v7 = vpop.eup %3809  ;;  %v1499_v58 = vadd.f32 1.0, %v3808_v55  ;;  %3547 = vmatprep.mubr.msk.f32.mxu0 %vm1599_vm5, %v5109_v17  ;;  %v5126_v19 = vmul.f32 %v4967_v28, %v5109_v17  ;;  %v3220_v54 = vmul.f32 -1.442695, %v5109_v17  ;;  %v5204_v55 = vsel %vm1040_vm4, %v1036_v51, -1e+30 }
 0x113   : > { %6972 = vst [vmem:[#allocation17_spill] sm:$0xff] %v5113_v37  ;;  %v1498_v16 = vadd.f32 1.0, %v3810_v7  ;;  %3548 = vmatmul.mubr.msk.f32.gmra.mrb[14].mxu0 %vm1599_vm5, %v5105_v0  ;;  %1081 = vmax.xlane.f32.xlu1 %v5132_v46  ;;  %6985 = vst [vmem:[#allocation30_spill] sm:$0xff] %v5204_v55 }
 0x114   : > { %6974 = vst [vmem:[#allocation19_spill] sm:$0xff] %v5126_v19  ;;  %3819 = vrcp.f32 %v1499_v58  ;;  %v5134_v49 = vpop.f32.mrb[16].mxu1  ;;  %1071 = vmax.xlane.f32.xlu0 %v5122_v12 }
 0x115   : > { %v3812_v15 = vpop.eup %3811  ;;  %3821 = vrcp.f32 %v1498_v16  ;;  %v5139_v31 = vpop.f32.mrb[17].mxu1  ;;  %v5147_v30 = vmul.f32 %v5134_v49, %v4967_v28  ;;  %v3223_v63 = vmul.f32 -1.442695, %v5134_v49 }
 0x116   : > { %v3814_v50 = vpop.eup %3813  ;;  %v1501_v60 = vadd.f32 1.0, %v3812_v15  ;;  %3550 = vmatprep.mubr.msk.f32.mxu0 %vm1599_vm5, %v5139_v31  ;;  %v5164_v10 = vmul.f32 %v4967_v28, %v5139_v31  ;;  %v3222_v9 = vmul.f32 -1.442695, %v5139_v31 }
 0x117   : > { %6977 = vst [vmem:[#allocation22_spill] sm:$0xff] %v5147_v30  ;;  %3551 = vmatmul.mubr.msk.f32.gmra.mrb[16].mxu0 %vm1599_vm5, %v5134_v49  ;;  %v1500_v6 = vadd.f32 1.0, %v3814_v50  ;;  %1069 = vmax.xlane.f32.xlu1 %v5169_v41  ;;  %v1600_v50 = vsel %vm1599_vm5, %v5182_v40, 0.0 }
 0x118   : > { %6980 = vst [vmem:[#allocation25_spill] sm:$0xff] %v5164_v10  ;;  %3823 = vrcp.f32 %v1501_v60  ;;  %v5172_v35 = vpop.f32.mrb[18].mxu1  ;;  %1087 = vmax.xlane.f32.xlu0 %v5156_v25 }
 0x119   : > { %v3816_v24 = vpop.eup %3815  ;;  %3825 = vpow2.f32 %v3221_v36  ;;  %v5176_v20 = vpop.f32.mrb[19].mxu1  ;;  %v3225_v44 = vmul.f32 -1.442695, %v5172_v35  ;;  %v5200_v8 = vmul.f32 %v5172_v35, %v4967_v28 }
 0x11a   : > { %3553 = vmatprep.mubr.msk.f32.mxu0 %vm1599_vm5, %v5176_v20  ;;  %3827 = vpow2.f32 %v3220_v54  ;;  %v1503_v57 = vadd.f32 1.0, %v3816_v24  ;;  %v5210_v7 = vmul.f32 %v4967_v28, %v5176_v20  ;;  %v3818_v59 = vpop.eup %3817  ;;  %v3224_v58 = vmul.f32 -1.442695, %v5176_v20 }
 0x11b   : > { %3554 = vmatmul.mubr.msk.f32.gmra.mrb[18].mxu0 %vm1599_vm5, %v5172_v35  ;;  %6984 = vst [vmem:[#allocation29_spill] sm:$0xff] %v5200_v8  ;;  %3829 = vpow2.f32 %v3223_v63  ;;  %1085 = vmax.xlane.f32.xlu1 %v5204_v55  ;;  %v5321_v47 = vmul.f32 %v5176_v20, %v5176_v20 }
 0x11c   : > { %v5206_v32 = vpop.f32.mrb[20].mxu1  ;;  %1604 = vadd.xlane.f32.xlu0 %v1603_v38  ;;  %6986 = vst [vmem:[#allocation31_spill] sm:$0xff] %v5210_v7  ;;  %3831 = vrcp.f32 %v1500_v6  ;;  %v1606_v6 = vsel %vm1599_vm5, %v5187_v11, 0.0 }
 0x11d   : > { %v5214_v16 = vpop.f32.mrb[21].mxu1  ;;  %v5222_v15 = vmul.f32 %v5206_v32, %v4967_v28  ;;  %3833 = vpow2.f32 %v3222_v9  ;;  %v3227_v60 = vmul.f32 -1.442695, %v5206_v32  ;;  %v1615_v9 = vsel %vm1599_vm5, %v5218_v26, 0.0  ;;  %7001 = vst [vmem:[#allocation46_spill] sm:$0xff] %v5321_v47 }
 0x11e   : > { %v3820_v36 = vpop.eup %3819  ;;  %3556 = vmatprep.mubr.msk.f32.mxu0 %vm1599_vm5, %v5214_v16  ;;  %3835 = vpow2.f32 %v3225_v44  ;;  %v3226_v54 = vmul.f32 -1.442695, %v5214_v16  ;;  %v5235_v51 = vmul.f32 %v4967_v28, %v5214_v16  ;;  %v5248_v44 = vmul.f32 %v5105_v0, %v5105_v0 }
 0x11f   : > { %6988 = vst [vmem:[#allocation33_spill] sm:$0xff] %v5222_v15  ;;  %v3822_v27 = vpop.eup %3821  ;;  %3557 = vmatmul.mubr.msk.f32.gmra.mrb[20].mxu0 %vm1599_vm5, %v5206_v32  ;;  %v1552_v14 = vmul.f32 %v3820_v36, %v5191_v22  ;;  %3837 = vrcp.f32 %v1503_v57  ;;  %1601 = vadd.xlane.f32.xlu1 %v1600_v50  ;;  %v1502_v36 = vadd.f32 1.0, %v3818_v59  ;;  %v5277_v15 = vmul.f32 %v5134_v49, %v5134_v49 }
 0x120   : > { %6989 = vst [vmem:[#allocation34_spill] sm:$0xff] %v5235_v51  ;;  %v5237_v63 = vpop.f32.mrb[22].mxu1  ;;  %1610 = vadd.xlane.f32.xlu0 %v1609_v29  ;;  %v1551_v24 = vmul.f32 %v3822_v27, %v5191_v22  ;;  %3839 = vpow2.f32 %v3224_v58  ;;  %6990 = vst [vmem:[#allocation35_spill] sm:$0xff] %v5248_v44  ;;  %v5252_v29 = vmul.f32 %v5080_v39, %v5080_v39  ;;  %v1621_v51 = vsel %vm1599_vm5, %v5248_v44, 0.0 }
 0x121   : > { %v5242_v38 = vpop.f32.mrb[23].mxu1  ;;  %3841 = vpow2.f32 %v3227_v60  ;;  %v5256_v58 = vadd.f32 1.1, %v1552_v14  ;;  %v3229_v27 = vmul.f32 -1.442695, %v5237_v63  ;;  %6995 = vst [vmem:[#allocation40_spill] sm:$0xff] %v5277_v15  ;;  %v5290_v49 = vmul.f32 %v5139_v31, %v5139_v31 }
 0x122   : > { %v3824_v57 = vpop.eup %3823  ;;  %6991 = vst [vmem:[#allocation36_spill] sm:$0xff] %v5252_v29  ;;  %3559 = vmatprep.mubr.msk.f32.mxu0 %vm1599_vm5, %v5242_v38  ;;  %3843 = vpow2.f32 %v3226_v54  ;;  %v3228_v0 = vmul.f32 -1.442695, %v5242_v38  ;;  %v5268_v60 = vadd.f32 1.1, %v1551_v24  ;;  %v1612_v24 = vsel %vm1599_vm5, %v5252_v29, 0.0 }
 0x123   : > { %6992 = vst [vmem:[#allocation37_spill] sm:$0xff] %v5256_v58  ;;  %v3826_v50 = vpop.eup %3825  ;;  %3560 = vmatmul.mubr.msk.f32.gmra.mrb[22].mxu0 %vm1599_vm5, %v5237_v63  ;;  %v5266_v39 = vmul.f32 %v4967_v28, %v5256_v58  ;;  %v1554_v14 = vmul.f32 %v3824_v57, %v5191_v22  ;;  %1607 = vadd.xlane.f32.xlu1 %v1606_v6  ;;  %3845 = vrcp.f32 %v1502_v36  ;;  %6997 = vst [vmem:[#allocation42_spill] sm:$0xff] %v5290_v49 }
 0x124   : > { %v5262_v59 = vpop.f32.mrb[24].mxu1  ;;  %1616 = vadd.xlane.f32.xlu0 %v1615_v9  ;;  %6994 = vst [vmem:[#allocation39_spill] sm:$0xff] %v5268_v60  ;;  %v3828_v13 = vpop.eup %3827  ;;  %v1505_v7 = vadd.f32 1.0, %v3826_v50  ;;  %v5283_v57 = vmul.f32 %v5109_v17, %v5109_v17  ;;  %3847 = vpow2.f32 %v3229_v27  ;;  %v5298_v17 = vmul.f32 %v4967_v28, %v5268_v60 }
 0x125   : > { %6993 = vst [vmem:[#allocation38_spill] sm:$0xff] %v5266_v39  ;;  %v5271_v54 = vpop.f32.mrb[25].mxu1  ;;  %v3830_v9 = vpop.eup %3829  ;;  %v3279_v8 = vmul.f32 -1.442695, %v5262_v59  ;;  %v1504_v50 = vadd.f32 1.0, %v3828_v13  ;;  %3849 = vpow2.f32 %v3228_v0  ;;  %v1627_v37 = vsel %vm1599_vm5, %v5277_v15, 0.0 }
 0x126   : > { %6996 = vst [vmem:[#allocation41_spill] sm:$0xff] %v5283_v57  ;;  %3592 = vmatprep.mubr.msk.f32.mxu0 %vm1599_vm5, %v5271_v54  ;;  %v3832_v6 = vpop.eup %3831  ;;  %6998 = vst [vmem:[#allocation43_spill] sm:$0xff] %v5298_v17  ;;  %v5300_v27 = vadd.f32 1.1, %v1554_v14  ;;  %v1507_v19 = vadd.f32 1.0, %v3830_v9  ;;  %v5308_v13 = vmul.f32 %v5172_v35, %v5172_v35  ;;  %3851 = vrcp.f32 %v1505_v7 }
 0x127   : > { %3593 = vmatmul.mubr.msk.f32.vlgmr.msra.gmra.mrb[24].mxu0 %vm1599_vm5, %v5262_v59  ;;  %v3834_v36 = vpop.eup %3833  ;;  %1613 = vadd.xlane.f32.xlu1 %v1612_v24  ;;  %v3278_v14 = vmul.f32 -1.442695, %v5271_v54  ;;  %3853 = vpow2.f32 %v3279_v8  ;;  %v1624_v21 = vsel %vm1599_vm5, %v5290_v49, 0.0  ;;  %v5336_v20 = vmul.f32 %v5206_v32, %v5206_v32 }
 0x128   : > { %v5294_v10 = vpop.f32.mrb[26].mxu1  ;;  %1622 = vadd.xlane.f32.xlu0 %v1621_v51  ;;  %6999 = vst [vmem:[#allocation44_spill] sm:$0xff] %v5300_v27  ;;  %v3836_v30 = vpop.eup %3835  ;;  %7000 = vst [vmem:[#allocation45_spill] sm:$0xff] %v5308_v13  ;;  %v1618_v51 = vsel %vm1599_vm5, %v5283_v57, 0.0  ;;  %v1506_v24 = vadd.f32 1.0, %v3834_v36  ;;  %3855 = vrcp.f32 %v1504_v50  ;;  %v5327_v36 = vmul.f32 %v4967_v28, %v5300_v27 }
 0x129   : > { %v5302_v31 = vpop.f32.mrb[27].mxu1  ;;  %v3838_v0 = vpop.eup %3837  ;;  %v1509_v7 = vadd.f32 1.0, %v3836_v30  ;;  %3857 = vrcp.f32 %v1507_v19  ;;  %v3281_v17 = vmul.f32 -1.442695, %v5294_v10  ;;  %v1633_v30 = vsel %vm1599_vm5, %v5308_v13, 0.0  ;;  %7003 = vst [vmem:[#allocation48_spill] sm:$0xff] %v5336_v20 }
 0x12a   : > { %3595 = vmatprep.mubr.msk.f32.mxu0 %vm1599_vm5, %v5302_v31  ;;  %v3840_v9 = vpop.eup %3839  ;;  %7002 = vst [vmem:[#allocation47_spill] sm:$0xff] %v5327_v36  ;;  %3859 = vpow2.f32 %v3278_v14  ;;  %v1553_v19 = vmul.f32 %v3832_v6, %v5191_v22  ;;  %v1556_v36 = vmul.f32 %v3838_v0, %v5191_v22  ;;  %v3280_v0 = vmul.f32 -1.442695, %v5302_v31 }
 0x12b   : > { %3596 = vmatmul.mubr.msk.f32.gmra.mrb[26].mxu0 %vm1599_vm5, %v5294_v10  ;;  %v3842_v35 = vpop.eup %3841  ;;  %1619 = vadd.xlane.f32.xlu1 %v1618_v51  ;;  %v1508_v50 = vadd.f32 1.0, %v3840_v9  ;;  %3861 = vrcp.f32 %v1506_v24  ;;  %v1630_v24 = vsel %vm1599_vm5, %v5321_v47, 0.0 }
 0x12c   : > { %v5323_v5 = vpop.f32.mrb[28].mxu1  ;;  %1628 = vadd.xlane.f32.xlu0 %v1627_v37  ;;  %v3844_v8 = vpop.eup %3843  ;;  %v5340_v37 = vmul.f32 %v5214_v16, %v5214_v16  ;;  %v1511_v51 = vadd.f32 1.0, %v3842_v35  ;;  %3863 = vrcp.f32 %v1509_v7  ;;  %v5352_v16 = vmul.f32 %v5237_v63, %v5237_v63 }
 0x12d   : > { %v5330_v33 = vpop.f32.mrb[29].mxu1  ;;  %v3846_v32 = vpop.eup %3845  ;;  %v1510_v9 = vadd.f32 1.0, %v3844_v8  ;;  %v5354_v39 = vadd.f32 1.1, %v1553_v19  ;;  %3865 = vpow2.f32 %v3281_v17  ;;  %v1639_v7 = vsel %vm1599_vm5, %v5336_v20, 0.0 }
 0x12e   : > { %7004 = vst [vmem:[#allocation49_spill] sm:$0xff] %v5340_v37  ;;  %3598 = vmatprep.mubr.msk.f32.mxu0 %vm1599_vm5, %v5330_v33  ;;  %7005 = vst [vmem:[#allocation50_spill] sm:$0xff] %v5352_v16  ;;  %v3848_v6 = vpop.eup %3847  ;;  %3867 = vrcp.f32 %v1508_v50  ;;  %v1636_v19 = vsel %vm1599_vm5, %v5340_v37, 0.0  ;;  %v3282_v17 = vmul.f32 -1.442695, %v5330_v33  ;;  %v1555_v20 = vmul.f32 %v3846_v32, %v5191_v22 }
 0x12f   : > { %3599 = vmatmul.mubr.msk.f32.gmra.mrb[28].mxu0 %vm1599_vm5, %v5323_v5  ;;  %7006 = vst [vmem:[#allocation51_spill] sm:$0xff] %v5354_v39  ;;  %1625 = vadd.xlane.f32.xlu1 %v1624_v21  ;;  %v3850_v8 = vpop.eup %3849  ;;  %v5368_v21 = vmul.f32 %v5242_v38, %v5242_v38  ;;  %3869 = vrcp.f32 %v1511_v51  ;;  %v5377_v50 = vmul.f32 %v4967_v28, %v5354_v39  ;;  %v5379_v1 = vadd.f32 1.1, %v1556_v36 }
 0x130   : > { %v5348_v14 = vpop.f32.mrb[30].mxu1  ;;  %1634 = vadd.xlane.f32.xlu0 %v1633_v30  ;;  %v3283_v30 = vmul.f32 -1.442695, %v5323_v5  ;;  %v5381_v45 = vpop.eup %3851  ;;  %3871 = vrcp.f32 %v1510_v9  ;;  %v1513_v37 = vadd.f32 1.0, %v3848_v6  ;;  %v1645_v51 = vsel %vm1599_vm5, %v5352_v16, 0.0 }
 0x131   : > { %v5359_v35 = vpop.f32.mrb[31].mxu1  ;;  %7007 = vst [vmem:[#allocation52_spill] sm:$0xff] %v5368_v21  ;;  %7008 = vst [vmem:[#allocation53_spill] sm:$0xff] %v5377_v50  ;;  %v3854_v13 = vpop.eup %3853  ;;  %v1512_v49 = vadd.f32 1.0, %v3850_v8  ;;  %3873 = vpow2.f32 %v3280_v0  ;;  %v5390_v36 = vmul.f32 %v5271_v54, %v5271_v54  ;;  %v5396_v9 = vmul.f32 %v5262_v59, %v5262_v59 }
 0x132   : > { %3601 = vmatprep.mubr.msk.f32.mxu0 %vm1599_vm5, %v5359_v35  ;;  %7009 = vst [vmem:[#allocation54_spill] sm:$0xff] %v5379_v1  ;;  %v3856_v6 = vpop.eup %3855  ;;  %3875 = vpow2.f32 %v3283_v30  ;;  %v5403_v32 = vmul.f32 %v5302_v31, %v5302_v31  ;;  %v3284_v8 = vmul.f32 -1.442695, %v5359_v35  ;;  %v5414_v30 = vstv %s3629_s11  ;;  %s6807_s11 = scalar_lea.hbm %s6862_s7, %s3347_s27 }
 0x133   : > { %3602 = vmatmul.mubr.msk.f32.gmra.mrb[30].mxu0 %vm1599_vm5, %v5348_v14  ;;  %1631 = vadd.xlane.f32.xlu1 %v1630_v24  ;;  %7010 = vst [vmem:[#allocation55_spill] sm:$0xff] %v5390_v36  ;;  %7011 = vst [vmem:[#allocation56_spill] sm:$0xff] %v5396_v9  ;;  %v5407_v24 = vmul.f32 %v5294_v10, %v5294_v10  ;;  %v5409_v0 = vpop.eup %3857  ;;  %3877 = vpow2.f32 %v3282_v17  ;;  %v5418_v16 = vmul.f32 %v4967_v28, %v5379_v1 }
 0x134   : > { %v5383_v47 = vpop.f32.mrb[32].mxu1  ;;  %1640 = vadd.xlane.f32.xlu0 %v1639_v7  ;;  %v3285_v7 = vmul.f32 -1.442695, %v5348_v14  ;;  %7012 = vst [vmem:[#allocation57_spill] sm:$0xff] %v5403_v32  ;;  %v3860_v57 = vpop.eup %3859  ;;  %3879 = vrcp.f32 %v1513_v37  ;;  %v2346_v15 = vadd.f32 1.0, %v3854_v13  ;;  %v1642_v29 = vsel %vm1599_vm5, %v5368_v21, 0.0 }
 0x135   : > { %v5392_v50 = vpop.f32.mrb[33].mxu1  ;;  %7013 = vst [vmem:[#allocation58_spill] sm:$0xff] %v5407_v24  ;;  %7014 = vst [vmem:[#allocation59_spill] sm:$0xff] %v5418_v16  ;;  %v5424_v17 = vadd.f32 1.1, %v1555_v20  ;;  %v5426_v11 = vpop.eup %3861  ;;  %3881 = vrcp.f32 %v1512_v49  ;;  %v2446_v16 = vsel %vm1599_vm5, %v5390_v36, 0.0  ;;  %v5476_v60 = vmul.f32 %v5359_v35, %v5359_v35 }
 0x136   : > { %3604 = vmatprep.mubr.msk.f32.mxu0 %vm1599_vm5, %v5392_v50  ;;  %v3287_v26 = vmul.f32 -1.442695, %v5383_v47  ;;  %v2449_v13 = vsel %vm1599_vm5, %v5396_v9, 0.0  ;;  %v5435_v37 = vpop.eup %3863  ;;  %3883 = vpow2.f32 %v3285_v7  ;;  %v3286_v20 = vmul.f32 -1.442695, %v5392_v50 }
 0x137   : > { %3605 = vmatmul.mubr.msk.f32.gmra.mrb[32].mxu0 %vm1599_vm5, %v5383_v47  ;;  %7015 = vst [vmem:[#allocation60_spill] sm:$0xff] %v5424_v17  ;;  %1637 = vadd.xlane.f32.xlu1 %v1636_v19  ;;  %v2455_v49 = vsel %vm1599_vm5, %v5407_v24, 0.0  ;;  %v3866_v19 = vpop.eup %3865  ;;  %v2345_v36 = vadd.f32 1.0, %v3860_v57  ;;  %3885 = vpow2.f32 %v3284_v8  ;;  %v5450_v7 = vmul.f32 %v5330_v33, %v5330_v33  ;;  %7020 = vst [vmem:[#allocation65_spill] sm:$0xff] %v5476_v60 }
 0x138   : > { %v5422_v44 = vpop.f32.mrb[34].mxu1  ;;  %1646 = vadd.xlane.f32.xlu0 %v1645_v51  ;;  %v5440_v51 = vsel %vm1599_vm5, %v5403_v32, 0.0  ;;  %v5454_v32 = vmul.f32 %v5323_v5, %v5323_v5  ;;  %v5456_v21 = vpop.eup %3867  ;;  %3887 = vrcp.f32 %v2346_v15  ;;  %v5463_v57 = vmul.f32 %v5348_v14, %v5348_v14 }
 0x139   : > { %v5431_v1 = vpop.f32.mrb[35].mxu1  ;;  %7016 = vst [vmem:[#allocation61_spill] sm:$0xff] %v5450_v7  ;;  %v3289_v9 = vmul.f32 -1.442695, %v5422_v44  ;;  %v5467_v8 = vmul.f32 %v4967_v28, %v5424_v17  ;;  %v5469_v39 = vpop.eup %3869  ;;  %3889 = vpow2.f32 %v3287_v26  ;;  %v2348_v40 = vadd.f32 1.0, %v3866_v19 }
 0x13a   : > { %3607 = vmatprep.mubr.msk.f32.mxu0 %vm1599_vm5, %v5431_v1  ;;  %7017 = vst [vmem:[#allocation62_spill] sm:$0xff] %v5454_v32  ;;  %7018 = vst [vmem:[#allocation63_spill] sm:$0xff] %v5463_v57  ;;  %v3288_v27 = vmul.f32 -1.442695, %v5431_v1  ;;  %v5480_v58 = vpop.eup %3871  ;;  %3891 = vpow2.f32 %v3286_v20  ;;  %v5486_v26 = vmul.f32 %v5383_v47, %v5383_v47  ;;  %v2464_v46 = vsel %vm1599_vm5, %v5476_v60, 0.0 }
 0x13b   : > { %3608 = vmatmul.mubr.msk.f32.gmra.mrb[34].mxu0 %vm1599_vm5, %v5422_v44  ;;  %7019 = vst [vmem:[#allocation64_spill] sm:$0xff] %v5467_v8  ;;  %1643 = vadd.xlane.f32.xlu1 %v1642_v29  ;;  %v1557_v29 = vmul.f32 %v3856_v6, %v5191_v22  ;;  %v3874_v8 = vpop.eup %3873  ;;  %3893 = vrcp.f32 %v2345_v36  ;;  %v2461_v36 = vsel %vm1599_vm5, %v5454_v32, 0.0  ;;  %v5505_v6 = vmul.f32 %v5422_v44, %v5422_v44 }
 0x13c   : > { %v5459_v24 = vpop.f32.mrb[36].mxu1  ;;  %2450 = vadd.xlane.f32.xlu0 %v2449_v13  ;;  %v1558_v13 = vmul.f32 %v5381_v45, %v5191_v22  ;;  %7021 = vst [vmem:[#allocation66_spill] sm:$0xff] %v5486_v26  ;;  %v5494_v45 = vmul.f32 %v5392_v50, %v5392_v50  ;;  %v3876_v19 = vpop.eup %3875  ;;  %3895 = vpow2.f32 %v3289_v9  ;;  %v2467_v9 = vsel %vm1599_vm5, %v5463_v57, 0.0 }
 0x13d   : > { %v5472_v15 = vpop.f32.mrb[37].mxu1  ;;  %v3291_v17 = vmul.f32 -1.442695, %v5459_v24  ;;  %7024 = vst [vmem:[#allocation69_spill] sm:$0xff] %v5505_v6  ;;  %v3878_v61 = vpop.eup %3877  ;;  %3897 = vpow2.f32 %v3288_v27  ;;  %v5513_v25 = vadd.f32 1.1, %v1557_v29  ;;  %v1564_v53 = vmul.f32 %v5469_v39, %v5191_v22 }
 0x13e   : > { %3610 = vmatprep.mubr.msk.f32.mxu0 %vm1599_vm5, %v5472_v15  ;;  %7022 = vst [vmem:[#allocation67_spill] sm:$0xff] %v5494_v45  ;;  %v5496_v20 = vadd.f32 1.1, %v1558_v13  ;;  %v3290_v56 = vmul.f32 -1.442695, %v5472_v15  ;;  %v2458_v13 = vsel %vm1599_vm5, %v5450_v7, 0.0  ;;  %3899 = vrcp.f32 %v2348_v40 }
 0x13f   : > { %3611 = vmatmul.mubr.msk.f32.gmra.mrb[36].mxu0 %vm1599_vm5, %v5459_v24  ;;  %2447 = vadd.xlane.f32.xlu1 %v2446_v16  ;;  %7025 = vst [vmem:[#allocation70_spill] sm:$0xff] %v5513_v25  ;;  %v2347_v32 = vadd.f32 1.0, %v3874_v8  ;;  %3901 = vpow2.f32 %v3291_v17  ;;  %v5532_v40 = vsel %vm1599_vm5, %v5494_v45, 0.0  ;;  %v2473_v8 = vsel %vm1599_vm5, %v5486_v26, 0.0 }
 0x140   : > { %7023 = vst [vmem:[#allocation68_spill] sm:$0xff] %v5496_v20  ;;  %v5499_v55 = vpop.f32.mrb[38].mxu1  ;;  %2456 = vadd.xlane.f32.xlu0 %v2455_v49  ;;  %v5515_v49 = vpop.eup %3879  ;;  %v5523_v27 = vmul.f32 %v4967_v28, %v5496_v20  ;;  %v2350_v7 = vadd.f32 1.0, %v3876_v19  ;;  %3903 = vpow2.f32 %v3290_v56  ;;  %v2479_v17 = vsel %vm1599_vm5, %v5505_v6, 0.0 }
 0x141   : > { %v5509_v41 = vpop.f32.mrb[39].mxu1  ;;  %v5525_v16 = vpop.eup %3881  ;;  %v3293_v29 = vmul.f32 -1.442695, %v5499_v55  ;;  %v5546_v20 = vmul.f32 %v4967_v28, %v5513_v25  ;;  %v1560_v56 = vmul.f32 %v5409_v0, %v5191_v22  ;;  %v1559_v19 = vmul.f32 %v5426_v11, %v5191_v22 }
 0x142   : > { %3613 = vmatprep.mubr.msk.f32.mxu0 %vm1599_vm5, %v5509_v41  ;;  %7026 = vst [vmem:[#allocation71_spill] sm:$0xff] %v5523_v27  ;;  %v3884_v60 = vpop.eup %3883  ;;  %v5538_v27 = vmul.f32 %v5431_v1, %v5431_v1  ;;  %v3292_v45 = vmul.f32 -1.442695, %v5509_v41  ;;  %3905 = vrcp.f32 %v2347_v32  ;;  %v2349_v26 = vadd.f32 1.0, %v3878_v61 }
 0x143   : > { %3614 = vmatmul.mubr.msk.f32.gmra.mrb[38].mxu0 %vm1599_vm5, %v5499_v55  ;;  %v3886_v57 = vpop.eup %3885  ;;  %2453 = vadd.xlane.f32.xlu1 %v5440_v51  ;;  %7027 = vst [vmem:[#allocation72_spill] sm:$0xff] %v5546_v20  ;;  %v5556_v6 = vmul.f32 %v5459_v24, %v5459_v24  ;;  %v1562_v51 = vmul.f32 %v5435_v37, %v5191_v22  ;;  %3907 = vpow2.f32 %v3293_v29  ;;  %v5560_v20 = vadd.f32 1.1, %v1560_v56 }
 0x144   : > { %2462 = vadd.xlane.f32.xlu0 %v2461_v36  ;;  %v5552_v36 = vpop.eup %3887  ;;  %v5562_v25 = vadd.f32 1.1, %v1559_v19  ;;  %v1561_v11 = vmul.f32 %v5456_v21, %v5191_v22  ;;  %v2352_v23 = vadd.f32 1.0, %v3884_v60  ;;  %v2351_v32 = vadd.f32 1.0, %v3886_v57 }
 0x145   : > { %v3890_v12 = vpop.eup %3889  ;;  %v5566_v61 = vadd.f32 1.1, %v1562_v51  ;;  %3909 = vpow2.f32 %v3292_v45  ;;  %v5572_v37 = vmul.f32 %v4967_v28, %v5560_v20  ;;  %v1563_v60 = vmul.f32 %v5480_v58, %v5191_v22 }
 0x146   : > { %v3892_v0 = vpop.eup %3891  ;;  %v5576_v29 = vmul.f32 %v4967_v28, %v5562_v25  ;;  %3911 = vrcp.f32 %v2350_v7  ;;  %v2354_v57 = vadd.f32 1.0, %v3890_v12  ;;  %v5588_v56 = vmul.f32 %v5472_v15, %v5472_v15 }
 0x147   : > { %v3894_v2 = vpop.eup %3893  ;;  %2459 = vadd.xlane.f32.xlu1 %v2458_v13  ;;  %v5582_v39 = vmul.f32 %v4967_v28, %v5566_v61  ;;  %v5584_v13 = vadd.f32 1.1, %v1561_v11  ;;  %3913 = vrcp.f32 %v2349_v26  ;;  %v5590_v19 = vadd.f32 1.1, %v1564_v53 }
 0x148   : > { %2468 = vadd.xlane.f32.xlu0 %v2467_v9  ;;  %7028 = vst [vmem:[#allocation73_spill] sm:$0xff] %v5576_v29  ;;  %v3896_v21 = vpop.eup %3895  ;;  %v2353_v9 = vadd.f32 1.0, %v3892_v0  ;;  %3915 = vrcp.f32 %v2352_v23  ;;  %v2476_v12 = vsel %vm1599_vm5, %v5538_v27, 0.0  ;;  %v2485_v58 = vsel %vm1599_vm5, %v5556_v6, 0.0 }
 0x149   : > { %7029 = vst [vmem:[#allocation74_spill] sm:$0xff] %v5582_v39  ;;  %v3898_v45 = vpop.eup %3897  ;;  %v5598_v7 = vmul.f32 %v4967_v28, %v5584_v13  ;;  %3917 = vrcp.f32 %v2351_v32  ;;  %v2356_v11 = vadd.f32 1.0, %v3896_v21  ;;  %v5602_v53 = vmul.f32 %v4967_v28, %v5590_v19 }
 0x14a   : > { %v3900_v51 = vpop.eup %3899  ;;  %v5604_v23 = vadd.f32 1.1, %v1563_v60  ;;  %3919 = vrcp.f32 %v2354_v57  ;;  %v1566_v39 = vmul.f32 %v5515_v49, %v5191_v22  ;;  %v5610_v29 = vmul.f32 %v5237_v63, %v4967_v28 }
 0x14b   : > { %v3902_v26 = vpop.eup %3901  ;;  %2465 = vadd.xlane.f32.xlu1 %v2464_v46  ;;  %7030 = vst [vmem:[#allocation75_spill] sm:$0xff] %v5602_v53  ;;  %3921 = vrcp.f32 %v2353_v9  ;;  %v2482_v46 = vsel %vm1599_vm5, %v5588_v56, 0.0  ;;  %v5616_v32 = vmul.f32 %v5499_v55, %v5499_v55  ;;  %v1565_v63 = vmul.f32 %v5525_v16, %v5191_v22 }
 0x14c   : > { %2474 = vadd.xlane.f32.xlu0 %v2473_v8  ;;  %v3904_v0 = vpop.eup %3903  ;;  %v2355_v8 = vadd.f32 1.0, %v3898_v45  ;;  %v5620_v60 = vmul.f32 %v4967_v28, %v5604_v23  ;;  %v2358_v57 = vadd.f32 1.0, %v3902_v26  ;;  %v5622_v49 = vadd.f32 1.1, %v1566_v39 }
 0x14d   : > { %v3906_v21 = vpop.eup %3905  ;;  %v5628_v45 = vmul.f32 %v4967_v28, %v5242_v38  ;;  %3923 = vrcp.f32 %v2356_v11  ;;  %v2357_v53 = vadd.f32 1.0, %v3904_v0  ;;  %v5639_v22 = vmul.f32 %v5509_v41, %v5509_v41 }
 0x14e   : > { %7031 = vst [vmem:[#allocation76_spill] sm:$0xff] %v5620_v60  ;;  %v3908_v9 = vpop.eup %3907  ;;  %v2399_v60 = vmul.f32 %v5552_v36, %v5414_v30  ;;  %3925 = vrcp.f32 %v2355_v8  ;;  %v5643_v38 = vmul.f32 %v4967_v28, %v5622_v49  ;;  %v5645_v16 = vadd.f32 1.1, %v1565_v63 }
 0x14f   : > { %2471 = vadd.xlane.f32.xlu1 %v5532_v40  ;;  %v3910_v39 = vpop.eup %3909  ;;  %v2398_v36 = vmul.f32 %v3894_v2, %v5414_v30  ;;  %v2401_v26 = vmul.f32 %v3900_v51, %v5414_v30  ;;  %3927 = vrcp.f32 %v2358_v57  ;;  %v2360_v0 = vadd.f32 1.0, %v3908_v9 }
 0x150   : > { %2480 = vadd.xlane.f32.xlu0 %v2479_v17  ;;  %v5635_v17 = vmul.f32 %v5262_v59, %v4977_v4  ;;  %7032 = vst [vmem:[#allocation77_spill] sm:$0xff] %v5643_v38  ;;  %v5647_v40 = vadd.f32 1.1, %v2399_v60  ;;  %v5652_v59 = vmul.f32 %v4977_v4, %v5271_v54  ;;  %v3912_v11 = vpop.eup %3911  ;;  %v2491_v8 = vsel %vm1599_vm5, %v5616_v32, 0.0 }
 0x151   : > { %v5659_v63 = vmul.f32 %v4967_v28, %v5645_v16  ;;  %v3914_v60 = vpop.eup %3913  ;;  %3929 = vrcp.f32 %v2357_v53  ;;  %v5665_v54 = vadd.f32 1.1, %v2398_v36  ;;  %v5667_v51 = vadd.f32 1.1, %v2401_v26 }
 0x152   : > { %v5663_v2 = vmul.f32 %v4977_v4, %v5647_v40  ;;  %v3916_v57 = vpop.eup %3915  ;;  %v5671_v9 = vmul.f32 %v5294_v10, %v4977_v4  ;;  %v2400_v28 = vmul.f32 %v3906_v21, %v5414_v30  ;;  %v5676_v53 = vmul.f32 %v4977_v4, %v5302_v31 }
 0x153   : > { %7033 = vst [vmem:[#allocation78_spill] sm:$0xff] %v5659_v63  ;;  %2477 = vadd.xlane.f32.xlu1 %v2476_v12  ;;  %v3918_v12 = vpop.eup %3917  ;;  %v2403_v10 = vmul.f32 %v3912_v11, %v5414_v30  ;;  %v5691_v21 = vmul.f32 %v5323_v5, %v4977_v4  ;;  %3931 = vrcp.f32 %v2360_v0  ;;  %v5698_v63 = vmul.f32 %v4977_v4, %v5330_v33 }
 0x154   : > { %2486 = vadd.xlane.f32.xlu0 %v2485_v58  ;;  %7034 = vst [vmem:[#allocation79_spill] sm:$0xff] %v5663_v2  ;;  %v2359_v58 = vadd.f32 1.0, %v3910_v39  ;;  %7035 = vst [vmem:[#allocation80_spill] sm:$0xff] %v5671_v9  ;;  %v5680_v2 = vmul.f32 %v4977_v4, %v5665_v54  ;;  %v3920_v36 = vpop.eup %3919  ;;  %v5684_v39 = vmul.f32 %v4977_v4, %v5667_v51  ;;  %v5686_v26 = vadd.f32 1.1, %v2400_v28 }
 0x155   : > { %7036 = vst [vmem:[#allocation81_spill] sm:$0xff] %v5676_v53  ;;  %7039 = vst [vmem:[#allocation84_spill] sm:$0xff] %v5691_v21  ;;  %v3922_v31 = vpop.eup %3921  ;;  %v5704_v28 = vadd.f32 1.1, %v2403_v10  ;;  %v2405_v5 = vmul.f32 %v3916_v57, %v5414_v30  ;;  %v5716_v33 = vmul.f32 %v4977_v4, %v5359_v35  ;;  %v7131_v53 = vld [vmem:[#allocation10_spill] sm:$0xff] }
 0x156   : > { %7037 = vst [vmem:[#allocation82_spill] sm:$0xff] %v5680_v2  ;;  %7038 = vst [vmem:[#allocation83_spill] sm:$0xff] %v5684_v39  ;;  %v2488_v2 = vsel %vm1599_vm5, %v5639_v22, 0.0  ;;  %3933 = vrcp.f32 %v2359_v58  ;;  %v5702_v11 = vmul.f32 %v4977_v4, %v5686_v26  ;;  %v5711_v39 = vmul.f32 %v5348_v14, %v4977_v4 }
 0x157   : > { %2483 = vadd.xlane.f32.xlu1 %v2482_v46  ;;  %7040 = vst [vmem:[#allocation85_spill] sm:$0xff] %v5698_v63  ;;  %v3924_v0 = vpop.eup %3923  ;;  %7043 = vst [vmem:[#allocation88_spill] sm:$0xff] %v5716_v33  ;;  %v5720_v10 = vmul.f32 %v4977_v4, %v5704_v28  ;;  %v5737_v33 = vmul.f32 %v5383_v47, %v4977_v4  ;;  %v5757_v47 = vmul.f32 %v5422_v44, %v4977_v4  ;;  %v7113_v63 = vld [vmem:[#allocation50_spill] sm:$0xff]  ;;  %vm2133_vm5 = vcmask 7168  }
 0x158   : > { %2492 = vadd.xlane.f32.xlu0 %v2491_v8  ;;  %v2402_v8 = vmul.f32 %v3914_v60, %v5414_v30  ;;  %7041 = vst [vmem:[#allocation86_spill] sm:$0xff] %v5702_v11  ;;  %7042 = vst [vmem:[#allocation87_spill] sm:$0xff] %v5711_v39  ;;  %v2404_v60 = vmul.f32 %v3918_v12, %v5414_v30  ;;  %v3926_v58 = vpop.eup %3925  ;;  %v5722_v11 = vadd.f32 1.1, %v2405_v5 }
 0x159   : > { %7044 = vst [vmem:[#allocation89_spill] sm:$0xff] %v5720_v10  ;;  %v2407_v12 = vmul.f32 %v3920_v36, %v5414_v30  ;;  %7047 = vst [vmem:[#allocation92_spill] sm:$0xff] %v5737_v33  ;;  %v5748_v36 = vmul.f32 %v4977_v4, %v5392_v50  ;;  %v5766_v50 = vmul.f32 %v4977_v4, %v5431_v1 }
 0x15a   : > { %v5707_v46 = vadd.f32 1.1, %v2402_v8  ;;  %v5728_v14 = vadd.f32 1.1, %v2404_v60  ;;  %v3928_v8 = vpop.eup %3927  ;;  %v5733_v35 = vmul.f32 %v4977_v4, %v5722_v11  ;;  %v2406_v60 = vmul.f32 %v3922_v31, %v5414_v30  ;;  %7051 = vst [vmem:[#allocation96_spill] sm:$0xff] %v5757_v47 }
 0x15b   : > { %2489 = vadd.xlane.f32.xlu1 %v2488_v2  ;;  %v3930_v5 = vpop.eup %3929  ;;  %v5743_v10 = vadd.f32 1.1, %v2407_v12  ;;  %7049 = vst [vmem:[#allocation94_spill] sm:$0xff] %v5748_v36  ;;  %v2408_v31 = vmul.f32 %v3926_v58, %v5414_v30  ;;  %7052 = vst [vmem:[#allocation97_spill] sm:$0xff] %v5766_v50 }
 0x15c   : > { %v5726_v57 = vmul.f32 %v4977_v4, %v5707_v46  ;;  %7046 = vst [vmem:[#allocation91_spill] sm:$0xff] %v5733_v35  ;;  %v5741_v2 = vmul.f32 %v4977_v4, %v5728_v14  ;;  %v5759_v33 = vadd.f32 1.1, %v2406_v60  ;;  %v2410_v44 = vmul.f32 %v3930_v5, %v5414_v30 }
 0x15d   : > { %v5753_v35 = vmul.f32 %v4977_v4, %v5743_v10  ;;  %v5782_v1 = vadd.f32 1.1, %v2408_v31 }
 0x15e   : > { %7045 = vst [vmem:[#allocation90_spill] sm:$0xff] %v5726_v57  ;;  %7048 = vst [vmem:[#allocation93_spill] sm:$0xff] %v5741_v2  ;;  %v2409_v57 = vmul.f32 %v3924_v0, %v5414_v30  ;;  %v3932_v2 = vpop.eup %3931  ;;  %v2411_v0 = vmul.f32 %v3928_v8, %v5414_v30  ;;  %v5786_v8 = vadd.f32 1.1, %v2410_v44 }
 0x15f   : > { %7050 = vst [vmem:[#allocation95_spill] sm:$0xff] %v5753_v35  ;;  %v5771_v35 = vmul.f32 %v5459_v24, %v4977_v4  ;;  %v5790_v24 = vmul.f32 %v4977_v4, %v5472_v15  ;;  %v2413_v5 = vmul.f32 %v3932_v2, %v5414_v30 }
 0x160   : > { %v5761_v12 = vadd.f32 1.1, %v2409_v57  ;;  %v3934_v47 = vpop.eup %3933  ;;  %v5776_v57 = vmul.f32 %v4977_v4, %v5759_v33  ;;  %v5784_v60 = vadd.f32 1.1, %v2411_v0  ;;  %v5807_v0 = vmul.f32 %v4977_v4, %v5786_v8 }
 0x161   : > { %7053 = vst [vmem:[#allocation98_spill] sm:$0xff] %v5771_v35  ;;  %7056 = vst [vmem:[#allocation101_spill] sm:$0xff] %v5790_v24  ;;  %v5795_v35 = vmul.f32 %v5499_v55, %v4977_v4  ;;  %v5809_v15 = vadd.f32 1.1, %v2413_v5  ;;  %v2412_v2 = vmul.f32 %v3934_v47, %v5414_v30  ;;  %v5814_v55 = vmul.f32 %v4977_v4, %v5509_v41 }
 0x162   : > { %7054 = vst [vmem:[#allocation99_spill] sm:$0xff] %v5776_v57  ;;  %v5780_v58 = vmul.f32 %v4977_v4, %v5761_v12  ;;  %v5799_v57 = vmul.f32 %v4977_v4, %v5782_v1  ;;  %v5803_v31 = vmul.f32 %v4977_v4, %v5784_v60  ;;  %7060 = vst [vmem:[#allocation105_spill] sm:$0xff] %v5807_v0 }
 0x163   : > { %7057 = vst [vmem:[#allocation102_spill] sm:$0xff] %v5795_v35  ;;  %7061 = vst [vmem:[#allocation106_spill] sm:$0xff] %v5809_v15  ;;  %v5818_v44 = vmul.f32 %v4977_v4, %v5809_v15 }
 0x164   : > { %7055 = vst [vmem:[#allocation100_spill] sm:$0xff] %v5780_v58  ;;  %7058 = vst [vmem:[#allocation103_spill] sm:$0xff] %v5799_v57  ;;  %v5820_v57 = vadd.f32 1.1, %v2412_v2 }
 0x165   : > { %7059 = vst [vmem:[#allocation104_spill] sm:$0xff] %v5803_v31  ;;  %7062 = vst [vmem:[#allocation107_spill] sm:$0xff] %v5814_v55 }
 0x166   : > { %7063 = vst [vmem:[#allocation108_spill] sm:$0xff] %v5818_v44  ;;  %7064 = vst [vmem:[#allocation109_spill] sm:$0xff] %v5820_v57  ;;  %v5824_v31 = vmul.f32 %v4977_v4, %v5820_v57 }
 0x168   : > { %7065 = vst [vmem:[#allocation110_spill] sm:$0xff] %v5824_v31 }
 0x184   : > { %v1060_v58 = vpop.xlane.xlu1 %1059 }
 0x185   : > { %v1090_v5 = vsub.f32 %v4987_v52, %v1060_v58  ;;  %v1076_v0 = vpop.xlane.xlu0 %1075 }
 0x186   : > { %v1098_v30 = vsub.f32 %v4991_v43, %v1076_v0 }
 0x187   : > { %v1107_v47 = vmul.f32 1.442695, %v1090_v5 }
 0x188   : > { %v1123_v41 = vmul.f32 1.442695, %v1098_v30 }
 0x189   : > { %3935 = vpow2.f32 %v1107_v47  ;;  %v1058_v55 = vpop.xlane.xlu0 %1057  ;;  %v7069_v47 = vld [vmem:[#allocation11_spill] sm:$0xff] }
 0x18a   : > { %v1089_v35 = vsub.f32 %v4997_v18, %v1058_v55  ;;  %3937 = vpow2.f32 %v1123_v41 }
 0x18c   : > { %v1105_v24 = vmul.f32 1.442695, %v1089_v35 }
 0x18d   : > { %v1064_v2 = vpop.xlane.xlu0 %1063 }
 0x18e   : > { %3939 = vpow2.f32 %v1105_v24  ;;  %v1092_v44 = vsub.f32 %v5006_v42, %v1064_v2 }
 0x190   : > { %v1111_v4 = vmul.f32 1.442695, %v1092_v44 }
 0x191   : > { %v1080_v31 = vpop.xlane.xlu0 %1079 }
 0x192   : > { %3941 = vpow2.f32 %v1111_v4  ;;  %v1100_v52 = vsub.f32 %v5017_v34, %v1080_v31 }
 0x193   : > { %v5831_v58 = vpop.eup %3935 }
 0x194   : > { %7066 = vst [vmem:[#allocation111_spill] sm:$0xff] %v5831_v58  ;;  %v1127_v43 = vmul.f32 1.442695, %v1100_v52  ;;  %1139 = vadd.xlane.f32.xlu0 %v5831_v58  ;;  %v1074_v5 = vpop.xlane.xlu1 %1073  ;;  %v5835_v35 = vpop.eup %3937  ;;  %v7071_v52 = vld [vmem:[#allocation15_spill] sm:$0xff]  ;;  %v7098_v58 = vld [vmem:[#allocation70_spill] sm:$0xff] }
 0x195   : > { %v1062_v0 = vpop.xlane.xlu0 %1061  ;;  %7067 = vst [vmem:[#allocation112_spill] sm:$0xff] %v5835_v35  ;;  %v1097_v24 = vsub.f32 %v5044_v3, %v1074_v5  ;;  %v7072_v5 = vld [vmem:[#allocation16_spill] sm:$0xff] }
 0x196   : > { %3943 = vpow2.f32 %v1127_v43  ;;  %v1091_v18 = vsub.f32 %v5040_v62, %v1062_v0 }
 0x197   : > { %v1121_v55 = vmul.f32 1.442695, %v1097_v24 }
 0x198   : > { %v5838_v42 = vpop.eup %3939  ;;  %1155 = vadd.xlane.f32.xlu0 %v5835_v35  ;;  %v1109_v34 = vmul.f32 1.442695, %v1091_v18  ;;  %v1078_v44 = vpop.xlane.xlu1 %1077 }
 0x199   : > { %7068 = vst [vmem:[#allocation113_spill] sm:$0xff] %v5838_v42  ;;  %1137 = vadd.xlane.f32.xlu1 %v5838_v42  ;;  %v1068_v31 = vpop.xlane.xlu0 %1067  ;;  %3945 = vpow2.f32 %v1121_v55  ;;  %v1099_v41 = vsub.f32 %v7069_v47, %v1078_v44  ;;  %v7074_v44 = vld [vmem:[#allocation18_spill] sm:$0xff]  ;;  %v7075_v47 = vld [vmem:[#allocation20_spill] sm:$0xff] }
 0x19a   : > { %v1094_v30 = vsub.f32 %v5069_v48, %v1068_v31  ;;  %3947 = vpow2.f32 %v1109_v34 }
 0x19b   : > { %v1125_v0 = vmul.f32 1.442695, %v1099_v41 }
 0x19c   : > { %v5844_v62 = vpop.eup %3941  ;;  %v1115_v2 = vmul.f32 1.442695, %v1094_v30  ;;  %v1066_v4 = vpop.xlane.xlu1 %1065 }
 0x19d   : > { %7070 = vst [vmem:[#allocation11_spill] sm:$0xff] %v5844_v62  ;;  %1143 = vadd.xlane.f32.xlu0 %v5844_v62  ;;  %v1084_v3 = vpop.xlane.xlu0 %1083  ;;  %v1093_v18 = vsub.f32 %v7072_v5, %v1066_v4  ;;  %v7077_v4 = vld [vmem:[#allocation23_spill] sm:$0xff] }
 0x19e   : > { %3949 = vpow2.f32 %v1115_v2  ;;  %v1102_v43 = vsub.f32 %v7071_v52, %v1084_v3 }
 0x19f   : > { %v1113_v30 = vmul.f32 1.442695, %v1093_v18 }
 0x1a0   : > { %v5849_v24 = vpop.eup %3943  ;;  %v1131_v48 = vmul.f32 1.442695, %v1102_v43  ;;  %v1082_v31 = vpop.xlane.xlu1 %1081 }
 0x1a1   : > { %7073 = vst [vmem:[#allocation15_spill] sm:$0xff] %v5849_v24  ;;  %1159 = vadd.xlane.f32.xlu0 %v5849_v24  ;;  %v1072_v55 = vpop.xlane.xlu0 %1071  ;;  %v1101_v62 = vsub.f32 %v7075_v47, %v1082_v31 }
 0x1a2   : > { %3951 = vpow2.f32 %v1131_v48  ;;  %v1096_v34 = vsub.f32 %v7074_v44, %v1072_v55  ;;  %v7079_v48 = vld [vmem:[#allocation26_spill] sm:$0xff] }
 0x1a3   : > { %3953 = vpow2.f32 %v1125_v0  ;;  %v5854_v35 = vpop.eup %3945  ;;  %v1129_v5 = vmul.f32 1.442695, %v1101_v62 }
 0x1a4   : > { %v1119_v2 = vmul.f32 1.442695, %v1096_v34  ;;  %7076 = vst [vmem:[#allocation16_spill] sm:$0xff] %v5854_v35  ;;  %v1070_v3 = vpop.xlane.xlu1 %1069  ;;  %1153 = vadd.xlane.f32.xlu1 %v5854_v35  ;;  %v5858_v43 = vpop.eup %3947  ;;  %v7081_v34 = vld [vmem:[#allocation21_spill] sm:$0xff] }
 0x1a5   : > { %v1088_v41 = vpop.xlane.xlu0 %1087  ;;  %7078 = vst [vmem:[#allocation18_spill] sm:$0xff] %v5858_v43  ;;  %v1095_v55 = vsub.f32 %v7079_v48, %v1070_v3 }
 0x1a6   : > { %3955 = vpow2.f32 %v1119_v2  ;;  %v1104_v52 = vsub.f32 %v7077_v4, %v1088_v41  ;;  %v7082_v41 = vld [vmem:[#allocation30_spill] sm:$0xff] }
 0x1a7   : > { %3957 = vpow2.f32 %v1113_v30  ;;  %v1117_v2 = vmul.f32 1.442695, %v1095_v55 }
 0x1a8   : > { %v5861_v0 = vpop.eup %3949  ;;  %v1135_v18 = vmul.f32 1.442695, %v1104_v52  ;;  %v1086_v44 = vpop.xlane.xlu1 %1085  ;;  %1141 = vadd.xlane.f32.xlu1 %v5858_v43 }
 0x1a9   : > { %7080 = vst [vmem:[#allocation20_spill] sm:$0xff] %v5861_v0  ;;  %1147 = vadd.xlane.f32.xlu0 %v5861_v0  ;;  %v1605_v31 = vpop.xlane.xlu0 %1604  ;;  %v1103_v4 = vsub.f32 %v7082_v41, %v1086_v44  ;;  %v7089_v41 = vld [vmem:[#allocation39_spill] sm:$0xff] }
 0x1aa   : > { %3959 = vpow2.f32 %v1135_v18  ;;  %v1649_v47 = vsub.f32 %v1605_v31, %v7081_v34  ;;  %v7085_v18 = vld [vmem:[#allocation24_spill] sm:$0xff]  ;;  %v7088_v34 = vld [vmem:[#allocation37_spill] sm:$0xff] }
 0x1ab   : > { %3961 = vpow2.f32 %v1129_v5  ;;  %v1133_v48 = vmul.f32 1.442695, %v1103_v4  ;;  %v7086_v5 = vld [vmem:[#allocation27_spill] sm:$0xff]  ;;  %v1664_v4 = vmul.f32 %v7089_v41, %v7089_v41 }
 0x1ac   : > { %v5867_v30 = vpop.eup %3951  ;;  %v1697_v62 = vmax.f32 %v1649_v47, 1e-08  ;;  %v1602_v0 = vpop.xlane.xlu1 %1601  ;;  %v1665_v47 = vmul.f32 %v7088_v34, %v7088_v34  ;;  %v7094_v34 = vld [vmem:[#allocation32_spill] sm:$0xff] }
 0x1ad   : > { %7083 = vst [vmem:[#allocation23_spill] sm:$0xff] %v5867_v30  ;;  %v5869_v3 = vpop.eup %3953  ;;  %1163 = vadd.xlane.f32.xlu0 %v5867_v30  ;;  %v1611_v52 = vpop.xlane.xlu0 %1610  ;;  %v1648_v55 = vsub.f32 %v1602_v0, %v7086_v5  ;;  %v7090_v30 = vld [vmem:[#allocation44_spill] sm:$0xff]  ;;  %v7092_v0 = vld [vmem:[#allocation51_spill] sm:$0xff] }
 0x1ae   : > { %7084 = vst [vmem:[#allocation26_spill] sm:$0xff] %v5869_v3  ;;  %1157 = vadd.xlane.f32.xlu1 %v5869_v3  ;;  %3963 = vrcp.f32 %v1697_v62  ;;  %v1651_v24 = vsub.f32 %v1611_v52, %v7085_v18  ;;  %v1667_v43 = vmul.f32 %v7090_v30, %v7090_v30  ;;  %v1666_v52 = vmul.f32 %v7092_v0, %v7092_v0  ;;  %v7095_v30 = vld [vmem:[#allocation60_spill] sm:$0xff] }
 0x1af   : > { %3965 = vpow2.f32 %v1117_v2  ;;  %v1696_v62 = vmax.f32 %v1648_v55, 1e-08  ;;  %v1668_v3 = vmul.f32 %v7095_v30, %v7095_v30  ;;  %v1670_v0 = vmul.f32 %v7098_v58, %v7098_v58  ;;  %v7101_v58 = vld [vmem:[#allocation35_spill] sm:$0xff] }
 0x1b0   : > { %v5875_v31 = vpop.eup %3955  ;;  %v1699_v44 = vmax.f32 %v1651_v24, 1e-08  ;;  %3967 = vpow2.f32 %v1133_v48  ;;  %v7093_v24 = vld [vmem:[#allocation54_spill] sm:$0xff]  ;;  %v1608_v5 = vpop.xlane.xlu1 %1607  ;;  %v7096_v48 = vld [vmem:[#allocation68_spill] sm:$0xff]  ;;  %v3231_v50 = vadd.f32 -1.0, %v1665_v47  ;;  %v3233_v30 = vadd.f32 -1.0, %v1667_v43 }
 0x1b1   : > { %7087 = vst [vmem:[#allocation21_spill] sm:$0xff] %v5875_v31  ;;  %v5883_v35 = vpop.eup %3957  ;;  %1151 = vadd.xlane.f32.xlu0 %v5875_v31  ;;  %v1617_v2 = vpop.xlane.xlu0 %1616  ;;  %v1669_v18 = vmul.f32 %v7093_v24, %v7093_v24  ;;  %v1671_v55 = vmul.f32 %v7096_v48, %v7096_v48  ;;  %v7097_v31 = vld [vmem:[#allocation28_spill] sm:$0xff]  ;;  %v5904_v36 = vadd.f32 -1.0, %v1666_v52  ;;  %v5915_v48 = vadd.f32 -1.0, %v1670_v0 }
 0x1b2   : > { %7091 = vst [vmem:[#allocation30_spill] sm:$0xff] %v5883_v35  ;;  %1145 = vadd.xlane.f32.xlu1 %v5883_v35  ;;  %3969 = vrcp.f32 %v1699_v44  ;;  %v1653_v41 = vsub.f32 %v1617_v2, %v7094_v34  ;;  %v1650_v42 = vsub.f32 %v1608_v5, %v7097_v31  ;;  %v3230_v35 = vadd.f32 -1.0, %v1664_v4 }
 0x1b3   : > { %3971 = vrcp.f32 %v1696_v62  ;;  %v5906_v62 = vadd.f32 -1.0, %v1669_v18  ;;  %v5912_v47 = vadd.f32 -1.0, %v1671_v55  ;;  %v1673_v43 = vmul.f32 %v5560_v20, %v5560_v20 }
 0x1b4   : > { %v5899_v57 = vpop.eup %3959  ;;  %v1701_v24 = vmax.f32 %v1653_v41, 1e-08  ;;  %v1698_v2 = vmax.f32 %v1650_v42, 1e-08  ;;  %v1614_v31 = vpop.xlane.xlu1 %1613  ;;  %v5910_v41 = vadd.f32 -1.0, %v1668_v3  ;;  %v7102_v42 = vld [vmem:[#allocation36_spill] sm:$0xff]  ;;  %v1674_v3 = vmul.f32 %v5584_v13, %v5584_v13 }
 0x1b5   : > { %7099 = vst [vmem:[#allocation24_spill] sm:$0xff] %v5899_v57  ;;  %v5901_v44 = vpop.eup %3961  ;;  %1167 = vadd.xlane.f32.xlu0 %v5899_v57  ;;  %v1623_v34 = vpop.xlane.xlu0 %1622  ;;  %v1652_v4 = vsub.f32 %v1614_v31, %v7102_v42  ;;  %v1672_v57 = vmul.f32 %v5562_v25, %v5562_v25  ;;  %v1677_v20 = vmul.f32 %v5590_v19, %v5590_v19  ;;  %v7104_v25 = vld [vmem:[#allocation40_spill] sm:$0xff]  ;;  %v7106_v42 = vld [vmem:[#allocation41_spill] sm:$0xff] }
 0x1b6   : > { %7100 = vst [vmem:[#allocation27_spill] sm:$0xff] %v5901_v44  ;;  %1161 = vadd.xlane.f32.xlu1 %v5901_v44  ;;  %3973 = vrcp.f32 %v1701_v24  ;;  %v1655_v5 = vsub.f32 %v1623_v34, %v7101_v58  ;;  %v1675_v24 = vmul.f32 %v5566_v61, %v5566_v61  ;;  %v1676_v31 = vmul.f32 %v5604_v23, %v5604_v23 }
 0x1b7   : > { %3975 = vrcp.f32 %v1698_v2  ;;  %v1700_v2 = vmax.f32 %v1652_v4, 1e-08  ;;  %v1679_v13 = vmul.f32 %v5622_v49, %v5622_v49  ;;  %v2511_v23 = vmul.f32 %v5647_v40, %v5647_v40 }
 0x1b8   : > { %v3964_v52 = vpop.eup %3963  ;;  %v1703_v18 = vmax.f32 %v1655_v5, 1e-08  ;;  %v1620_v58 = vpop.xlane.xlu1 %1619  ;;  %v1678_v5 = vmul.f32 %v5645_v16, %v5645_v16  ;;  %v2510_v4 = vmul.f32 %v5665_v54, %v5665_v54  ;;  %v5949_v49 = vadd.f32 -1.0, %v1672_v57 }
 0x1b9   : > { %v5925_v55 = vpop.eup %3965  ;;  %v1629_v34 = vpop.xlane.xlu0 %1628  ;;  %v5927_v0 = vmul.f32 %v3964_v52, %v3231_v50  ;;  %v1654_v19 = vsub.f32 %v1620_v58, %v7106_v42  ;;  %v2513_v16 = vmul.f32 %v5667_v51, %v5667_v51  ;;  %v5953_v58 = vadd.f32 -1.0, %v1675_v24 }
 0x1ba   : > { %7103 = vst [vmem:[#allocation37_spill] sm:$0xff] %v5925_v55  ;;  %1149 = vadd.xlane.f32.xlu1 %v5925_v55  ;;  %3977 = vrcp.f32 %v1703_v18  ;;  %v1657_v61 = vsub.f32 %v1629_v34, %v7104_v25  ;;  %v5939_v50 = vpop.eup %3967  ;;  %v5947_v18 = vadd.f32 -1.0, %v1673_v43  ;;  %v5955_v42 = vadd.f32 -1.0, %v1674_v3 }
 0x1bb   : > { %7105 = vst [vmem:[#allocation39_spill] sm:$0xff] %v5939_v50  ;;  %3979 = vrcp.f32 %v1700_v2  ;;  %v5957_v40 = vadd.f32 -1.0, %v1677_v20  ;;  %v1702_v54 = vmax.f32 %v1654_v19, 1e-08  ;;  %v5960_v43 = vadd.f32 -1.0, %v1676_v31  ;;  %v7107_v19 = vld [vmem:[#allocation42_spill] sm:$0xff] }
 0x1bc   : > { %v3970_v52 = vpop.eup %3969  ;;  %3981 = vrsqrt.f32 %v5927_v0  ;;  %v1705_v2 = vmax.f32 %v1657_v61, 1e-08  ;;  %v1626_v55 = vpop.xlane.xlu1 %1625  ;;  %v5962_v57 = vadd.f32 -1.0, %v1679_v13  ;;  %v5964_v44 = vadd.f32 -1.0, %v1678_v5 }
 0x1bd   : > { %v3972_v34 = vpop.eup %3971  ;;  %v1635_v25 = vpop.xlane.xlu0 %1634  ;;  %v5968_v61 = vadd.f32 -1.0, %v2511_v23  ;;  %v5970_v24 = vadd.f32 -1.0, %v2510_v4  ;;  %v2512_v3 = vmul.f32 %v5686_v26, %v5686_v26  ;;  %v1656_v15 = vsub.f32 %v1626_v55, %v7107_v19 }
 0x1be   : > { %1165 = vadd.xlane.f32.xlu1 %v5939_v50  ;;  %v5966_v51 = vmul.f32 %v3972_v34, %v3230_v35  ;;  %v5975_v39 = vmul.f32 %v3970_v52, %v3233_v30  ;;  %v5977_v31 = vadd.f32 -1.0, %v2513_v16  ;;  %v2515_v13 = vmul.f32 %v5704_v28, %v5704_v28  ;;  %v7108_v16 = vld [vmem:[#allocation45_spill] sm:$0xff] }
 0x1bf   : > { %3983 = vrcp.f32 %v1705_v2  ;;  %v2514_v23 = vmul.f32 %v5707_v46, %v5707_v46  ;;  %v2517_v4 = vmul.f32 %v5722_v11, %v5722_v11  ;;  %v2516_v26 = vmul.f32 %v5728_v14, %v5728_v14 }
 0x1c0   : > { %v3974_v20 = vpop.eup %3973  ;;  %3985 = vrcp.f32 %v1702_v54  ;;  %v1632_v30 = vpop.xlane.xlu1 %1631  ;;  %v2519_v28 = vmul.f32 %v5743_v10, %v5743_v10  ;;  %v1659_v34 = vsub.f32 %v1635_v25, %v7108_v16  ;;  %v5997_v46 = vadd.f32 -1.0, %v2512_v3  ;;  %v7109_v10 = vld [vmem:[#allocation48_spill] sm:$0xff] }
 0x1c1   : > { %v3976_v5 = vpop.eup %3975  ;;  %v1641_v35 = vpop.xlane.xlu0 %1640  ;;  %v5991_v52 = vmul.f32 %v3974_v20, %v5906_v62  ;;  %3987 = vrsqrt.f32 %v5966_v51  ;;  %v2518_v11 = vmul.f32 %v5759_v33, %v5759_v33  ;;  %v1704_v2 = vmax.f32 %v1656_v15, 1e-08 }
 0x1c2   : > { %v5988_v55 = vmul.f32 %v3976_v5, %v5904_v36  ;;  %3989 = vrsqrt.f32 %v5975_v39  ;;  %v6002_v36 = vadd.f32 -1.0, %v2515_v13  ;;  %v2521_v62 = vmul.f32 %v5761_v12, %v5761_v12  ;;  %v7110_v5 = vld [vmem:[#allocation46_spill] sm:$0xff] }
 0x1c3   : > { %v1661_v20 = vsub.f32 %v1641_v35, %v7109_v10  ;;  %v6008_v3 = vadd.f32 -1.0, %v2514_v23  ;;  %v6010_v19 = vadd.f32 -1.0, %v2517_v4  ;;  %v1658_v15 = vsub.f32 %v1632_v30, %v7110_v5 }
 0x1c4   : > { %v3978_v14 = vpop.eup %3977  ;;  %3991 = vrsqrt.f32 %v5988_v55  ;;  %v1638_v16 = vpop.xlane.xlu1 %1637  ;;  %v6014_v13 = vadd.f32 -1.0, %v2516_v26  ;;  %v6016_v50 = vadd.f32 -1.0, %v2519_v28  ;;  %v1707_v12 = vmax.f32 %v1659_v34, 1e-08  ;;  %v7116_v28 = vld [vmem:[#allocation49_spill] sm:$0xff] }
 0x1c5   : > { %v3980_v54 = vpop.eup %3979  ;;  %v1647_v25 = vpop.xlane.xlu0 %1646  ;;  %3993 = vrsqrt.f32 %v5991_v52  ;;  %v6022_v23 = vadd.f32 -1.0, %v2518_v11  ;;  %v6025_v4 = vmul.f32 %v3978_v14, %v5912_v47  ;;  %v6027_v30 = vadd.f32 -1.0, %v2521_v62 }
 0x1c6   : > { %v3982_v33 = vpop.eup %3981  ;;  %7111 = vst [vmem:[#allocation44_spill] sm:$0xff] %v6014_v13  ;;  %7112 = vst [vmem:[#allocation51_spill] sm:$0xff] %v6016_v50  ;;  %v1663_v35 = vsub.f32 %v1647_v25, %v7113_v63  ;;  %v6020_v10 = vmul.f32 %v3980_v54, %v5910_v41  ;;  %3995 = vrcp.f32 %v1704_v2  ;;  %v6031_v26 = vmul.f32 %v5782_v1, %v5782_v1  ;;  %v7117_v2 = vld [vmem:[#allocation56_spill] sm:$0xff] }
 0x1c7   : > { %7114 = vst [vmem:[#allocation54_spill] sm:$0xff] %v6022_v23  ;;  %7115 = vst [vmem:[#allocation32_spill] sm:$0xff] %v6027_v30  ;;  %v1660_v5 = vsub.f32 %v1638_v16, %v7116_v28  ;;  %v1709_v34 = vmax.f32 %v1661_v20, 1e-08  ;;  %v1752_v63 = vmul.f32 %v3982_v33, %v5927_v0  ;;  %v1706_v41 = vmax.f32 %v1658_v15, 1e-08 }
 0x1c8   : > { %3997 = vrsqrt.f32 %v6020_v10  ;;  %v1644_v11 = vpop.xlane.xlu1 %1643  ;;  %vm1753_vm6 = vcmp.eq.f32.partialorder %v5927_v0, inf  ;;  %vm1755_vm7 = vcmp.eq.f32.partialorder %v5927_v0, 0.0  ;;  %v6040_v47 = vmul.f32 %v5784_v60, %v5784_v60  ;;  %v7118_v25 = vld [vmem:[#allocation52_spill] sm:$0xff]  ;;  %v7120_v23 = vld [vmem:[#allocation55_spill] sm:$0xff]  ;;  %v7122_v15 = vld [vmem:[#allocation57_spill] sm:$0xff] }
 0x1c9   : > { %v2451_v38 = vpop.xlane.xlu0 %2450  ;;  %v3984_v1 = vpop.eup %3983  ;;  %3999 = vrcp.f32 %v1707_v12  ;;  %v1711_v14 = vmax.f32 %v1663_v35, 1e-08  ;;  %v1756_v54 = vand.u32 2147483648, %v5927_v0  ;;  %v1662_v33 = vsub.f32 %v1644_v11, %v7118_v25 }
 0x1ca   : > { %v2495_v62 = vsub.f32 %v2451_v38, %v7117_v2  ;;  %v3986_v20 = vpop.eup %3985  ;;  %vm1746_vm8 = vcmp.eq.f32.partialorder %v5966_v51, inf  ;;  %vm1767_vm9 = vcmp.eq.f32.partialorder %v5975_v39, inf  ;;  %4001 = vrsqrt.f32 %v6025_v4  ;;  %v7119_v2 = vld [vmem:[#allocation58_spill] sm:$0xff] }
 0x1cb   : > { %v3988_v60 = vpop.eup %3987  ;;  %v1708_v16 = vmax.f32 %v1660_v5, 1e-08  ;;  %4003 = vrcp.f32 %v1709_v34  ;;  %v1754_v38 = vsel %vm1753_vm6, %v5927_v0, %v1752_v63  ;;  %vm1760_vm0 = vcmp.eq.f32.partialorder %v5988_v55, inf }
 0x1cc   : > { %v3990_v28 = vpop.eup %3989  ;;  %4005 = vrcp.f32 %v1706_v41  ;;  %v2448_v11 = vpop.xlane.xlu1 %2447  ;;  %v2543_v5 = vmax.f32 %v2495_v62, 1e-08  ;;  %vm1748_vm10 = vcmp.eq.f32.partialorder %v5966_v51, 0.0  ;;  %vm1781_vm11 = vcmp.eq.f32.partialorder %v5991_v52, inf }
 0x1cd   : > { %v2457_v12 = vpop.xlane.xlu0 %2456  ;;  %4007 = vrcp.f32 %v1711_v14  ;;  %v1710_v35 = vmax.f32 %v1662_v33, 1e-08  ;;  %v2494_v41 = vsub.f32 %v2448_v11, %v7120_v23  ;;  %vm1769_vm12 = vcmp.eq.f32.partialorder %v5975_v39, 0.0 }
 0x1ce   : > { %v2497_v25 = vsub.f32 %v2457_v12, %v7119_v2  ;;  %v3992_v30 = vpop.eup %3991  ;;  %v6062_v12 = vsel %vm1755_vm7, %v1756_v54, %v1754_v38  ;;  %v1745_v2 = vmul.f32 %v3988_v60, %v5966_v51  ;;  %vm1762_vm13 = vcmp.eq.f32.partialorder %v5988_v55, 0.0  ;;  %v7121_v38 = vld [vmem:[#allocation62_spill] sm:$0xff] }
 0x1cf   : > { %v3994_v63 = vpop.eup %3993  ;;  %vm1774_vm14 = vcmp.eq.f32.partialorder %v6020_v10, inf  ;;  %4009 = vrcp.f32 %v1708_v16  ;;  %v1766_v62 = vmul.f32 %v3990_v28, %v5975_v39  ;;  %vm1783_vm15 = vcmp.eq.f32.partialorder %v5991_v52, 0.0 }
 0x1d0   : > { %v6072_v0 = vmul.f32 %v3986_v20, %v5915_v48  ;;  %v3996_v54 = vpop.eup %3995  ;;  %v2454_v33 = vpop.xlane.xlu1 %2453  ;;  %v2545_v60 = vmax.f32 %v2497_v25, 1e-08  ;;  %v1759_v34 = vmul.f32 %v3992_v30, %v5988_v55  ;;  %vm1795_vm1 = vcmp.eq.f32.partialorder %v6025_v4, inf }
 0x1d1   : > { %v2463_v14 = vpop.xlane.xlu0 %2462  ;;  %v2496_v21 = vsub.f32 %v2454_v33, %v7122_v15  ;;  %4011 = vrcp.f32 %v2543_v5  ;;  %v1780_v28 = vmul.f32 %v3994_v63, %v5991_v52  ;;  %vm1776_vm2 = vcmp.eq.f32.partialorder %v6020_v10, 0.0 }
 0x1d2   : > { %v2499_v11 = vsub.f32 %v2463_v14, %v7121_v38  ;;  %v3998_v16 = vpop.eup %3997  ;;  %v6081_v48 = vmul.f32 %v3984_v1, %v5947_v18  ;;  %4013 = vrcp.f32 %v1710_v35  ;;  %v2542_v20 = vmax.f32 %v2494_v41, 1e-08  ;;  %v7123_v41 = vld [vmem:[#allocation63_spill] sm:$0xff] }
 0x1d3   : > { %v1747_v25 = vsel %vm1746_vm8, %v5966_v51, %v1745_v2  ;;  %v1798_v30 = vand.u32 2147483648, %v6025_v4  ;;  %v4000_v14 = vpop.eup %3999  ;;  %v1768_v15 = vsel %vm1767_vm9, %v5975_v39, %v1766_v62  ;;  %v1773_v5 = vmul.f32 %v3998_v16, %v6020_v10 }
 0x1d4   : > { %vm1797_vm3 = vcmp.eq.f32.partialorder %v6025_v4, 0.0  ;;  %4015 = vrsqrt.f32 %v6072_v0  ;;  %v6094_v18 = vmul.f32 %v3996_v54, %v5949_v49  ;;  %v4002_v1 = vpop.eup %4001  ;;  %v2460_v35 = vpop.xlane.xlu1 %2459  ;;  %v2547_v63 = vmax.f32 %v2499_v11, 1e-08 }
 0x1d5   : > { %v2469_v38 = vpop.xlane.xlu0 %2468  ;;  %4017 = vrcp.f32 %v2545_v60  ;;  %v1761_v62 = vsel %vm1760_vm0, %v5988_v55, %v1759_v34  ;;  %v6100_v33 = vpop.eup %4003  ;;  %v2544_v16 = vmax.f32 %v2496_v21, 1e-08  ;;  %v1782_v23 = vsel %vm1781_vm11, %v5991_v52, %v1780_v28  ;;  %v7124_v60 = vld [vmem:[#allocation61_spill] sm:$0xff] }
 0x1d6   : > { %v2501_v2 = vsub.f32 %v2469_v38, %v7123_v41  ;;  %v1794_v49 = vmul.f32 %v4002_v1, %v6025_v4  ;;  %4019 = vrsqrt.f32 %v6081_v48  ;;  %v4006_v54 = vpop.eup %4005  ;;  %v2498_v11 = vsub.f32 %v2460_v35, %v7124_v60 }
 0x1d7   : > { %4021 = vrcp.f32 %v2542_v20  ;;  %v7125_v38 = vand.u32 2147483648, %v5966_v51  ;;  %v6113_v41 = vmul.f32 %v4000_v14, %v5953_v58  ;;  %v6115_v21 = vpop.eup %4007  ;;  %v7126_v28 = vand.u32 2147483648, %v5975_v39 }
 0x1d8   : > { %v7127_v20 = vand.u32 2147483648, %v5988_v55  ;;  %v1775_v51 = vsel %vm1774_vm14, %v6020_v10, %v1773_v5  ;;  %4023 = vrsqrt.f32 %v6094_v18  ;;  %v2466_v58 = vpop.xlane.xlu1 %2465  ;;  %v7128_v60 = vand.u32 2147483648, %v5991_v52  ;;  %v7130_v5 = vld [vmem:[#allocation12_spill] sm:$0xff] }
 0x1d9   : > { %v1750_v34 = vsel %vm1748_vm10, %v7125_v38, %v1747_v25  ;;  %v2475_v50 = vpop.xlane.xlu0 %2474  ;;  %v1771_v1 = vsel %vm1769_vm12, %v7126_v28, %v1768_v15  ;;  %4025 = vrcp.f32 %v2547_v63  ;;  %v2549_v25 = vmax.f32 %v2501_v2, 1e-08  ;;  %v6136_v55 = vpop.eup %4009  ;;  %v7136_v15 = vld [vmem:[#allocation7_spill] sm:$0xff] }
 0x1da   : > { %v1764_v35 = vsel %vm1762_vm13, %v7127_v20, %v1761_v62  ;;  %v3540_v14 = vpop.f32.mrb[8].mxu0  ;;  %v6133_v39 = vsel %vm1783_vm15, %v7128_v60, %v1782_v23  ;;  %4027 = vrcp.f32 %v2544_v16  ;;  %v7129_v62 = vld [vmem:[#allocation66_spill] sm:$0xff]  ;;  %v1796_v63 = vsel %vm1795_vm1, %v6025_v4, %v1794_v49  ;;  %v7133_v16 = vld [vmem:[#allocation65_spill] sm:$0xff]  ;;  %v7137_v4 = vld [vmem:[#allocation43_spill] sm:$0xff] }
 0x1db   : > { %v2503_v38 = vsub.f32 %v2475_v50, %v7129_v62  ;;  %v2086_v28 = vsub.f32 %v3540_v14, %v7130_v5  ;;  %v1970_v20 = vpop.f32.mrb[9].mxu0  ;;  %v2546_v2 = vmax.f32 %v2498_v11, 1e-08  ;;  %v7132_v23 = vand.u32 2147483648, %v6020_v10  ;;  %v6151_v50 = vpop.eup %4011 }
 0x1dc   : > { %v2085_v52 = vsub.f32 %v1970_v20, %v7131_v53  ;;  %4029 = vrsqrt.f32 %v6113_v41  ;;  %v2500_v14 = vsub.f32 %v2466_v58, %v7133_v16  ;;  %vm1788_vm6 = vcmp.eq.f32.partialorder %v6072_v0, inf  ;;  %v6160_v11 = vpop.eup %4013  ;;  %v2472_v10 = vpop.xlane.xlu1 %2471  ;;  %v7135_v16 = vld [vmem:[#allocation69_spill] sm:$0xff] }
 0x1dd   : > { %v6148_v60 = vsel %vm1776_vm2, %v7132_v23, %v1775_v51  ;;  %v2102_v62 = vmul.f32 %v2086_v28, %v6062_v12  ;;  %v2481_v5 = vpop.xlane.xlu0 %2480  ;;  %v6158_v53 = vmul.f32 %v4006_v54, %v5955_v42  ;;  %4031 = vrcp.f32 %v2549_v25  ;;  %v7134_v54 = vld [vmem:[#allocation38_spill] sm:$0xff]  ;;  %v7138_v25 = vld [vmem:[#allocation8_spill] sm:$0xff] }
 0x1de   : > { %v2101_v51 = vmul.f32 %v2085_v52, %v1750_v34  ;;  %v3543_v58 = vpop.f32.mrb[10].mxu0  ;;  %v6170_v12 = vsel %vm1797_vm3, %v1798_v30, %v1796_v63  ;;  %v4016_v20 = vpop.eup %4015  ;;  %v2551_v42 = vmax.f32 %v2503_v38, 1e-08  ;;  %v2505_v49 = vsub.f32 %v2481_v5, %v7135_v16  ;;  %v7139_v5 = vld [vmem:[#allocation67_spill] sm:$0xff]  ;;  %v7143_v38 = vld [vmem:[#allocation14_spill] sm:$0xff] }
 0x1df   : > { %v2118_v23 = vadd.f32 %v2102_v62, %v7134_v54  ;;  %v2088_v9 = vsub.f32 %v3543_v58, %v7136_v15  ;;  %v1980_v13 = vpop.f32.mrb[11].mxu0  ;;  %vm1809_vm7 = vcmp.eq.f32.partialorder %v6081_v48, inf  ;;  %v6177_v34 = vpop.eup %4017  ;;  %4033 = vrcp.f32 %v2546_v2 }
 0x1e0   : > { %v2117_v30 = vadd.f32 %v2101_v51, %v7137_v4  ;;  %v2087_v63 = vsub.f32 %v1980_v13, %v7138_v25  ;;  %vm1790_vm8 = vcmp.eq.f32.partialorder %v6072_v0, 0.0  ;;  %v4020_v52 = vpop.eup %4019  ;;  %v2548_v62 = vmax.f32 %v2500_v14, 1e-08  ;;  %v2478_v51 = vpop.xlane.xlu1 %2477 }
 0x1e1   : > { %v2502_v54 = vsub.f32 %v2472_v10, %v7139_v5  ;;  %2135 = vst.msk [vmem:[%s6166_s18 + $0x8] sm:$0xff] %vm2133_vm5, %v2118_v23  ;;  %v2104_v15 = vmul.f32 %v2088_v9, %v1771_v1  ;;  %v2487_v58 = vpop.xlane.xlu0 %2486  ;;  %vm1802_vm9 = vcmp.eq.f32.partialorder %v6094_v18, inf  ;;  %4035 = vrsqrt.f32 %v6158_v53  ;;  %v6188_v2 = vpop.eup %4021  ;;  %v7140_v23 = vld [vmem:[#allocation47_spill] sm:$0xff]  ;;  %v7141_v5 = vld [vmem:[#allocation13_spill] sm:$0xff] }
 0x1e2   : > { %2134 = vst.msk [vmem:[%s6166_s18] sm:$0xff] %vm2133_vm5, %v2117_v30  ;;  %v2103_v13 = vmul.f32 %v2087_v63, %v1764_v35  ;;  %v2507_v16 = vsub.f32 %v2487_v58, %v5556_v6  ;;  %v3546_v4 = vpop.f32.mrb[12].mxu0  ;;  %v1787_v14 = vmul.f32 %v4016_v20, %v6072_v0  ;;  %vm1811_vm0 = vcmp.eq.f32.partialorder %v6081_v48, 0.0  ;;  %v4024_v1 = vpop.eup %4023  ;;  %v7142_v63 = vld [vmem:[#allocation53_spill] sm:$0xff] }
 0x1e3   : > { %v6197_v9 = vmul.f32 %v6100_v33, %v5957_v40  ;;  %4037 = vrcp.f32 %v2551_v42  ;;  %v2553_v10 = vmax.f32 %v2505_v49, 1e-08  ;;  %v2120_v25 = vadd.f32 %v2104_v15, %v7140_v23  ;;  %v1990_v35 = vpop.f32.mrb[13].mxu0  ;;  %v6201_v6 = vpop.eup %4025 }
 0x1e4   : > { %v2090_v30 = vsub.f32 %v3546_v4, %v7141_v5  ;;  %v2504_v20 = vsub.f32 %v2478_v51, %v5538_v27  ;;  %v2119_v58 = vadd.f32 %v2103_v13, %v7142_v63  ;;  %v2089_v28 = vsub.f32 %v1990_v35, %v7143_v38  ;;  %v6209_v33 = vpop.eup %4027  ;;  %v7144_v4 = vld [vmem:[#allocation59_spill] sm:$0xff]  ;;  %v7146_v5 = vld [vmem:[#allocation64_spill] sm:$0xff] }
 0x1e5   : > { %v1808_v40 = vmul.f32 %v4020_v52, %v6081_v48  ;;  %vm1804_vm10 = vcmp.eq.f32.partialorder %v6094_v18, 0.0  ;;  %vm1823_vm11 = vcmp.eq.f32.partialorder %v6113_v41, inf  ;;  %4039 = vrcp.f32 %v2548_v62  ;;  %2137 = vst.msk [vmem:[%s6166_s18 + $0x18] sm:$0xff] %vm2133_vm5, %v2120_v25  ;;  %v2493_v15 = vpop.xlane.xlu0 %2492 }
 0x1e6   : > { %v2550_v49 = vmax.f32 %v2502_v54, 1e-08  ;;  %v2106_v42 = vmul.f32 %v2090_v30, %v6133_v39  ;;  %v6216_v27 = vmul.f32 %v6136_v55, %v5960_v43  ;;  %v4030_v38 = vpop.eup %4029  ;;  %2136 = vst.msk [vmem:[%s6166_s18 + $0x10] sm:$0xff] %vm2133_vm5, %v2119_v58  ;;  %v2555_v52 = vmax.f32 %v2507_v16, 1e-08  ;;  %v3549_v13 = vpop.f32.mrb[14].mxu0 }
 0x1e7   : > { %v2105_v51 = vmul.f32 %v2089_v28, %v6148_v60  ;;  %v1789_v62 = vsel %vm1788_vm6, %v6072_v0, %v1787_v14  ;;  %v1801_v54 = vmul.f32 %v4024_v1, %v6094_v18  ;;  %v2484_v39 = vpop.xlane.xlu1 %2483  ;;  %4041 = vrcp.f32 %v2553_v10  ;;  %v7145_v55 = vld [vmem:[#allocation17_spill] sm:$0xff]  ;;  %v2000_v16 = vpop.f32.mrb[15].mxu0  ;;  %v7147_v14 = vld [vmem:[#allocation19_spill] sm:$0xff] }
 0x1e8   : > { %v2122_v23 = vadd.f32 %v2106_v42, %v7144_v4  ;;  %v2509_v43 = vsub.f32 %v2493_v15, %v5616_v32  ;;  %v2092_v25 = vsub.f32 %v3549_v13, %v7145_v55  ;;  %vm1825_vm12 = vcmp.eq.f32.partialorder %v6113_v41, 0.0  ;;  %v6229_v60 = vpop.eup %4031  ;;  %v7152_v4 = vld [vmem:[#allocation72_spill] sm:$0xff]  ;;  %v7153_v55 = vld [vmem:[#allocation25_spill] sm:$0xff] }
 0x1e9   : > { %v2552_v28 = vmax.f32 %v2504_v20, 1e-08  ;;  %v2121_v30 = vadd.f32 %v2105_v51, %v7146_v5  ;;  %v2091_v35 = vsub.f32 %v2000_v16, %v7147_v14  ;;  %v1810_v1 = vsel %vm1809_vm7, %v6081_v48, %v1808_v40  ;;  %v6244_v58 = vpop.eup %4033 }
 0x1ea   : > { %4043 = vrcp.f32 %v2550_v49  ;;  %2139 = vst.msk [vmem:[%s6166_s18 + $0x28] sm:$0xff] %vm2133_vm5, %v2122_v23  ;;  %v2108_v32 = vmul.f32 %v2092_v25, %v6170_v12  ;;  %v7148_v10 = vand.u32 2147483648, %v6072_v0  ;;  %v1822_v20 = vmul.f32 %v4030_v38, %v6113_v41  ;;  %v3552_v49 = vpop.f32.mrb[16].mxu0  ;;  %v7149_v0 = vld [vmem:[#allocation71_spill] sm:$0xff] }
 0x1eb   : > { %v2506_v42 = vsub.f32 %v2484_v39, %v5588_v56  ;;  %4045 = vrcp.f32 %v2555_v52  ;;  %2138 = vst.msk [vmem:[%s6166_s18 + $0x20] sm:$0xff] %vm2133_vm5, %v2121_v30  ;;  %v1803_v12 = vsel %vm1802_vm9, %v6094_v18, %v1801_v54  ;;  %v4036_v15 = vpop.eup %4035  ;;  %v2557_v51 = vmax.f32 %v2509_v43, 1e-08  ;;  %v7151_v52 = vld [vmem:[#allocation22_spill] sm:$0xff]  ;;  %v2010_v39 = vpop.f32.mrb[17].mxu0 }
 0x1ec   : > { %v1792_v63 = vsel %vm1790_vm8, %v7148_v10, %v1789_v62  ;;  %v2124_v13 = vadd.f32 %v2108_v32, %v7149_v0  ;;  %v7150_v38 = vand.u32 2147483648, %v6081_v48  ;;  %v2094_v62 = vsub.f32 %v3552_v49, %v7151_v52  ;;  %v2490_v14 = vpop.xlane.xlu1 %2489  ;;  %v7156_v49 = vld [vmem:[#allocation73_spill] sm:$0xff] }
 0x1ed   : > { %v2107_v40 = vmul.f32 %v2091_v35, %v1792_v63  ;;  %4047 = vrcp.f32 %v2552_v28  ;;  %v2093_v25 = vsub.f32 %v2010_v39, %v7153_v55  ;;  %v1815_v54 = vmul.f32 %v4036_v15, %v6158_v53  ;;  %v6261_v16 = vpop.eup %4037  ;;  %v7155_v63 = vld [vmem:[#allocation29_spill] sm:$0xff] }
 0x1ee   : > { %v1813_v56 = vsel %vm1811_vm0, %v7150_v38, %v1810_v1  ;;  %2141 = vst.msk [vmem:[%s6166_s18 + $0x38] sm:$0xff] %vm2133_vm5, %v2124_v13  ;;  %v7154_v5 = vand.u32 2147483648, %v6094_v18  ;;  %v1824_v28 = vsel %vm1823_vm11, %v6113_v41, %v1822_v20  ;;  %vm1816_vm13 = vcmp.eq.f32.partialorder %v6158_v53, inf  ;;  %v3555_v1 = vpop.f32.mrb[18].mxu0  ;;  %v7158_v13 = vld [vmem:[#allocation31_spill] sm:$0xff]  ;;  %v7160_v55 = vld [vmem:[#allocation33_spill] sm:$0xff] }
 0x1ef   : > { %v2123_v23 = vadd.f32 %v2107_v40, %v7152_v4  ;;  %v2110_v43 = vmul.f32 %v2094_v62, %v1813_v56  ;;  %v2554_v30 = vmax.f32 %v2506_v42, 1e-08  ;;  %v1817_v32 = vsel %vm1816_vm13, %v6158_v53, %v1815_v54  ;;  %v6277_v10 = vpop.eup %4039  ;;  %v2020_v40 = vpop.f32.mrb[19].mxu0  ;;  %v7159_v4 = vld [vmem:[#allocation74_spill] sm:$0xff] }
 0x1f0   : > { %v1806_v48 = vsel %vm1804_vm10, %v7154_v5, %v1803_v12  ;;  %4049 = vrsqrt.f32 %v6197_v9  ;;  %v2096_v20 = vsub.f32 %v3555_v1, %v7155_v63  ;;  %v1819_v42 = vand.u32 2147483648, %v6158_v53 }
 0x1f1   : > { %2140 = vst.msk [vmem:[%s6166_s18 + $0x30] sm:$0xff] %vm2133_vm5, %v2123_v23  ;;  %v2109_v35 = vmul.f32 %v2093_v25, %v1806_v48  ;;  %4051 = vrcp.f32 %v2557_v51  ;;  %v2126_v18 = vadd.f32 %v2110_v43, %v5572_v37  ;;  %v7157_v15 = vand.u32 2147483648, %v6113_v41  ;;  %v6289_v51 = vpop.eup %4041 }
 0x1f2   : > { %vm1818_vm14 = vcmp.eq.f32.partialorder %v6158_v53, 0.0  ;;  %v2095_v38 = vsub.f32 %v2020_v40, %v7158_v13  ;;  %v2508_v37 = vsub.f32 %v2490_v14, %v5639_v22  ;;  %4053 = vrsqrt.f32 %v6216_v27  ;;  %v3558_v41 = vpop.f32.mrb[20].mxu0 }
 0x1f3   : > { %v2125_v12 = vadd.f32 %v2109_v35, %v7156_v49  ;;  %v1827_v0 = vsel %vm1825_vm12, %v7157_v15, %v1824_v28  ;;  %2143 = vst.msk [vmem:[%s6166_s18 + $0x48] sm:$0xff] %vm2133_vm5, %v2126_v18  ;;  %v1820_v52 = vsel %vm1818_vm14, %v1819_v42, %v1817_v32  ;;  %4055 = vrcp.f32 %v2554_v30  ;;  %v6309_v54 = vpop.f32.mrb[21].mxu0 }
 0x1f4   : > { %v2112_v56 = vmul.f32 %v2096_v20, %v1827_v0  ;;  %v2111_v62 = vmul.f32 %v2095_v38, %v1820_v52  ;;  %v6299_v53 = vmul.f32 %v6115_v21, %v5962_v57  ;;  %v6303_v39 = vmul.f32 %v6160_v11, %v5964_v44  ;;  %v6305_v22 = vpop.eup %4043  ;;  %v7161_v11 = vld [vmem:[#allocation34_spill] sm:$0xff] }
 0x1f5   : > { %2142 = vst.msk [vmem:[%s6166_s18 + $0x40] sm:$0xff] %vm2133_vm5, %v2125_v12  ;;  %v2098_v25 = vsub.f32 %v3558_v41, %v7160_v55  ;;  %v6313_v43 = vmul.f32 %v6151_v50, %v5968_v61  ;;  %v6317_v57 = vmul.f32 %v6188_v2, %v5970_v24  ;;  %v6319_v21 = vpop.eup %4045  ;;  %v2097_v5 = vsub.f32 %v6309_v54, %v7161_v11  ;;  %v7167_v11 = vld [vmem:[#allocation76_spill] sm:$0xff] }
 0x1f6   : > { %v2128_v23 = vadd.f32 %v2112_v56, %v7159_v4  ;;  %v2127_v44 = vadd.f32 %v2111_v62, %v5598_v7  ;;  %4057 = vrsqrt.f32 %v6299_v53  ;;  %v6327_v48 = vmul.f32 %v5786_v8, %v5786_v8  ;;  %v6347_v50 = vpop.f32.mrb[22].mxu0  ;;  %v7162_v56 = vld [vmem:[#allocation44_spill] sm:$0xff] }
 0x1f7   : > { %v6329_v28 = vmax.f32 %v2508_v37, 1e-08  ;;  %4059 = vrsqrt.f32 %v6303_v39  ;;  %v6335_v61 = vadd.f32 -1.0, %v6031_v26  ;;  %v6338_v7 = vadd.f32 -1.0, %v6040_v47  ;;  %v6340_v24 = vpop.eup %4047  ;;  %v6354_v47 = vpop.f32.mrb[23].mxu0 }
 0x1f8   : > { %2145 = vst.msk [vmem:[%s6166_s18 + $0x58] sm:$0xff] %vm2133_vm5, %v2128_v23  ;;  %2144 = vst.msk [vmem:[%s6166_s18 + $0x50] sm:$0xff] %vm2133_vm5, %v2127_v44  ;;  %vm1837_vm15 = vcmp.eq.f32.partialorder %v6197_v9, inf  ;;  %vm1839_vm1 = vcmp.eq.f32.partialorder %v6197_v9, 0.0  ;;  %v1840_v8 = vand.u32 2147483648, %v6197_v9  ;;  %4061 = vrsqrt.f32 %v6313_v43  ;;  %v7164_v23 = vld [vmem:[#allocation80_spill] sm:$0xff] }
 0x1f9   : > { %vm1830_vm2 = vcmp.eq.f32.partialorder %v6216_v27, inf  ;;  %vm1832_vm3 = vcmp.eq.f32.partialorder %v6216_v27, 0.0  ;;  %v2100_v26 = vsub.f32 %v6347_v50, %v5610_v29  ;;  %4063 = vrsqrt.f32 %v6317_v57 }
 0x1fa   : > { %v4050_v2 = vpop.eup %4049  ;;  %v1833_v30 = vand.u32 2147483648, %v6216_v27  ;;  %vm1851_vm6 = vcmp.eq.f32.partialorder %v6299_v53, inf  ;;  %v1854_v14 = vand.u32 2147483648, %v6299_v53  ;;  %v2099_v35 = vsub.f32 %v6354_v47, %v5628_v45  ;;  %v3594_v40 = vpop.f32.mrb[24].mxu0 }
 0x1fb   : > { %v6362_v1 = vpop.eup %4051  ;;  %v1836_v32 = vmul.f32 %v4050_v2, %v6197_v9  ;;  %vm1853_vm7 = vcmp.eq.f32.partialorder %v6299_v53, 0.0  ;;  %vm1844_vm8 = vcmp.eq.f32.partialorder %v6303_v39, inf  ;;  %v6369_v18 = vmul.f32 %v6177_v34, %v5977_v31  ;;  %v2816_v34 = vpop.f32.mrb[25].mxu0  ;;  %v7166_v2 = vld [vmem:[#allocation51_spill] sm:$0xff] }
 0x1fc   : > { %v6373_v63 = vmul.f32 %v6209_v33, %v5997_v46  ;;  %vm1846_vm9 = vcmp.eq.f32.partialorder %v6303_v39, 0.0  ;;  %v1847_v20 = vand.u32 2147483648, %v6303_v39  ;;  %vm2599_vm0 = vcmp.eq.f32.partialorder %v6313_v43, inf  ;;  %v4054_v12 = vpop.eup %4053 }
 0x1fd   : > { %v2602_v42 = vand.u32 2147483648, %v6313_v43  ;;  %v6381_v49 = vmul.f32 %v6201_v6, %v6002_v36  ;;  %v1838_v31 = vsel %vm1837_vm15, %v6197_v9, %v1836_v32  ;;  %vm2601_vm10 = vcmp.eq.f32.partialorder %v6313_v43, 0.0  ;;  %v6390_v33 = vpop.eup %4055 }
 0x1fe   : > { %v2932_v46 = vsub.f32 %v3594_v40, %v5635_v17  ;;  %vm2592_vm11 = vcmp.eq.f32.partialorder %v6317_v57, inf  ;;  %4065 = vrsqrt.f32 %v6369_v18  ;;  %v1841_v36 = vsel %vm1839_vm1, %v1840_v8, %v1838_v31  ;;  %v6406_v37 = vpop.f32.mrb[26].mxu0 }
 0x1ff   : > { %v1829_v6 = vmul.f32 %v4054_v12, %v6216_v27  ;;  %vm2594_vm12 = vcmp.eq.f32.partialorder %v6317_v57, 0.0  ;;  %v2931_v15 = vsub.f32 %v2816_v34, %v5652_v59  ;;  %v2114_v0 = vmul.f32 %v2098_v25, %v1841_v36  ;;  %v6423_v25 = vpop.f32.mrb[27].mxu0 }
 0x200   : > { %v2595_v13 = vand.u32 2147483648, %v6317_v57  ;;  %4067 = vrsqrt.f32 %v6373_v63  ;;  %v6401_v17 = vmul.f32 %v6244_v58, %v6008_v3  ;;  %v4058_v38 = vpop.eup %4057  ;;  %v6411_v59 = vmul.f32 %v6229_v60, %v6010_v19  ;;  %v7163_v58 = vld [vmem:[#allocation75_spill] sm:$0xff] }
 0x201   : > { %v1831_v9 = vsel %vm1830_vm2, %v6216_v27, %v1829_v6  ;;  %4069 = vrsqrt.f32 %v6381_v49  ;;  %v6415_v52 = vmul.f32 %v6277_v10, %v7162_v56  ;;  %v4060_v3 = vpop.eup %4059  ;;  %v2130_v62 = vadd.f32 %v2114_v0, %v7163_v58  ;;  %v7165_v10 = vld [vmem:[#allocation81_spill] sm:$0xff] }
 0x202   : > { %v1834_v41 = vsel %vm1832_vm3, %v1833_v30, %v1831_v9  ;;  %v1850_v4 = vmul.f32 %v4058_v38, %v6299_v53  ;;  %v2934_v55 = vsub.f32 %v6406_v37, %v7164_v23  ;;  %v4062_v44 = vpop.eup %4061  ;;  %v1843_v60 = vmul.f32 %v4060_v3, %v6303_v39  ;;  %v3600_v31 = vpop.f32.mrb[28].mxu0  ;;  %v7172_v3 = vld [vmem:[#allocation85_spill] sm:$0xff] }
 0x203   : > { %v2113_v19 = vmul.f32 %v2097_v5, %v1834_v41  ;;  %v2933_v8 = vsub.f32 %v6423_v25, %v7165_v10  ;;  %v6433_v27 = vmul.f32 %v6261_v16, %v7166_v2  ;;  %v4064_v30 = vpop.eup %4063  ;;  %2147 = vst.msk [vmem:[%s6166_s18 + $0x68] sm:$0xff] %vm2133_vm5, %v2130_v62  ;;  %v2598_v54 = vmul.f32 %v4062_v44, %v6313_v43  ;;  %v6459_v0 = vpop.f32.mrb[29].mxu0  ;;  %v7173_v41 = vld [vmem:[#allocation82_spill] sm:$0xff]  ;;  %v7179_v10 = vld [vmem:[#allocation92_spill] sm:$0xff] }
 0x204   : > { %v1852_v32 = vsel %vm1851_vm6, %v6299_v53, %v1850_v4  ;;  %vm2613_vm13 = vcmp.eq.f32.partialorder %v6369_v18, inf  ;;  %vm2615_vm14 = vcmp.eq.f32.partialorder %v6369_v18, 0.0  ;;  %v1845_v40 = vsel %vm1844_vm8, %v6303_v39, %v1843_v60 }
 0x205   : > { %v2129_v5 = vadd.f32 %v2113_v19, %v7167_v11  ;;  %v1855_v16 = vsel %vm1853_vm7, %v1854_v14, %v1852_v32  ;;  %v2591_v12 = vmul.f32 %v4064_v30, %v6317_v57  ;;  %v1848_v36 = vsel %vm1846_vm9, %v1847_v20, %v1845_v40  ;;  %v7168_v14 = vld [vmem:[#allocation84_spill] sm:$0xff]  ;;  %v7174_v11 = vld [vmem:[#allocation87_spill] sm:$0xff] }
 0x206   : > { %v2116_v34 = vmul.f32 %v2100_v26, %v1855_v16  ;;  %v2600_v53 = vsel %vm2599_vm0, %v6313_v43, %v2598_v54  ;;  %v2936_v6 = vsub.f32 %v3600_v31, %v7168_v14  ;;  %v2115_v38 = vmul.f32 %v2099_v35, %v1848_v36  ;;  %v7169_v26 = vld [vmem:[#allocation77_spill] sm:$0xff]  ;;  %v7170_v43 = vld [vmem:[#allocation78_spill] sm:$0xff]  ;;  %v7175_v31 = vld [vmem:[#allocation83_spill] sm:$0xff] }
 0x207   : > { %2146 = vst.msk [vmem:[%s6166_s18 + $0x60] sm:$0xff] %vm2133_vm5, %v2129_v5  ;;  %v2603_v29 = vsel %vm2601_vm10, %v2602_v42, %v2600_v53  ;;  %v2593_v39 = vsel %vm2592_vm11, %v6317_v57, %v2591_v12  ;;  %4071 = vrsqrt.f32 %v6401_v17  ;;  %v2616_v45 = vand.u32 2147483648, %v6369_v18 }
 0x208   : > { %v4066_v50 = vpop.eup %4065  ;;  %v2132_v20 = vadd.f32 %v2116_v34, %v7169_v26  ;;  %v2948_v9 = vmul.f32 %v2932_v46, %v2603_v29  ;;  %v2596_v37 = vsel %vm2594_vm12, %v2595_v13, %v2593_v39  ;;  %v2131_v47 = vadd.f32 %v2115_v38, %v7170_v43  ;;  %v6485_v46 = vpop.f32.mrb[30].mxu0  ;;  %v7171_v13 = vld [vmem:[#allocation79_spill] sm:$0xff]  ;;  %v7180_v39 = vld [vmem:[#allocation89_spill] sm:$0xff] }
 0x209   : > { %v2947_v35 = vmul.f32 %v2931_v15, %v2596_v37  ;;  %v2612_v42 = vmul.f32 %v4066_v50, %v6369_v18  ;;  %vm2606_vm15 = vcmp.eq.f32.partialorder %v6373_v63, inf  ;;  %vm2608_vm1 = vcmp.eq.f32.partialorder %v6373_v63, 0.0  ;;  %v6494_v15 = vpop.f32.mrb[31].mxu0  ;;  %v7182_v37 = vld [vmem:[#allocation94_spill] sm:$0xff] }
 0x20a   : > { %v4068_v57 = vpop.eup %4067  ;;  %2149 = vst.msk [vmem:[%s6166_s18 + $0x78] sm:$0xff] %vm2133_vm5, %v2132_v20  ;;  %v2964_v56 = vadd.f32 %v2948_v9, %v7171_v13  ;;  %v2935_v58 = vsub.f32 %v6459_v0, %v7172_v3  ;;  %4073 = vrsqrt.f32 %v6411_v59  ;;  %2148 = vst.msk [vmem:[%s6166_s18 + $0x70] sm:$0xff] %vm2133_vm5, %v2131_v47  ;;  %v2609_v19 = vand.u32 2147483648, %v6373_v63  ;;  %v7181_v20 = vld [vmem:[#allocation54_spill] sm:$0xff]  ;;  %v7183_v47 = vld [vmem:[#allocation32_spill] sm:$0xff]  ;;  %s4131_s18 = sshll.u32 %s4193_s6, 4  ;;  %s4132_s18 = int_to_ptr.vmem [resolvable:$false] %s4131_s18 }
 0x20b   : > { %v4070_v62 = vpop.eup %4069  ;;  %v2963_v4 = vadd.f32 %v2947_v35, %v7173_v41  ;;  %v2614_v23 = vsel %vm2613_vm13, %v6369_v18, %v2612_v42  ;;  %v2605_v44 = vmul.f32 %v4068_v57, %v6373_v63  ;;  %vm2627_vm2 = vcmp.eq.f32.partialorder %v6381_v49, inf  ;;  %v6519_v18 = vpop.f32.mrb[32].mxu0  ;;  %v7184_v42 = vld [vmem:[#allocation96_spill] sm:$0xff]  ;;  %s4133_s19 = scalar_lea.vmem %s4132_s18, 2048  ;;  %p4134_p0 = scmp.lt.s32.totalorder %s6809_s29, %s4132_s18 }
 0x20c   : > { %2980 = vst.msk [vmem:[%s6480_s24 + $0x8] sm:$0xff] %vm2133_vm5, %v2964_v56  ;;  %v2617_v60 = vsel %vm2615_vm14, %v2616_v45, %v2614_v23  ;;  %v2626_v2 = vmul.f32 %v4070_v62, %v6381_v49  ;;  %v2630_v30 = vand.u32 2147483648, %v6381_v49  ;;  %v2938_v5 = vsub.f32 %v6485_v46, %v7174_v11  ;;  %p4135_p1 = scmp.lt.s32.totalorder %s4133_s19, %s4127_s12 }
 0x20d   : > { %2979 = vst.msk [vmem:[%s6480_s24] sm:$0xff] %vm2133_vm5, %v2963_v4  ;;  %v2950_v32 = vmul.f32 %v2934_v55, %v2617_v60  ;;  %v2607_v54 = vsel %vm2606_vm15, %v6373_v63, %v2605_v44  ;;  %4075 = vrsqrt.f32 %v6415_v52  ;;  %vm2629_vm3 = vcmp.eq.f32.partialorder %v6381_v49, 0.0  ;;  %v6525_v55 = vpop.f32.mrb[33].mxu0  ;;  %v7176_v63 = vld [vmem:[#allocation88_spill] sm:$0xff]  ;;  %v7187_v60 = vld [vmem:[#allocation90_spill] sm:$0xff] }
 0x20e   : > { %v2610_v16 = vsel %vm2608_vm1, %v2609_v19, %v2607_v54  ;;  %v2628_v40 = vsel %vm2627_vm2, %v6381_v49, %v2626_v2  ;;  %v3306_v12 = vadd.f32 -1.0, %v6327_v48  ;;  %4077 = vrcp.f32 %v6329_v28  ;;  %v7177_v49 = vld [vmem:[#allocation106_spill] sm:$0xff]  ;;  %p4136_p2 = por %p4135_p1, %p4134_p0 }
 0x20f   : > { %v2966_v34 = vadd.f32 %v2950_v32, %v7175_v31  ;;  %v2949_v36 = vmul.f32 %v2933_v8, %v2610_v16  ;;  %v2631_v53 = vsel %vm2629_vm3, %v2630_v30, %v2628_v40  ;;  %v2937_v0 = vsub.f32 %v6494_v15, %v7176_v63  ;;  %v7178_v28 = vld [vmem:[#allocation86_spill] sm:$0xff] }
 0x210   : > { %v2952_v14 = vmul.f32 %v2936_v6, %v2631_v53  ;;  %4079 = vrsqrt.f32 %v6433_v27  ;;  %v2525_v38 = vmul.f32 %v7177_v49, %v7177_v49  ;;  %vm2620_vm6 = vcmp.eq.f32.partialorder %v6401_v17, inf  ;;  %v6545_v6 = vpop.f32.mrb[34].mxu0  ;;  %p4137_p3 = pnand %p4136_p2, %p4130_p13 }
 0x211   : > { %v4072_v48 = vpop.eup %4071  ;;  %2982 = vst.msk [vmem:[%s6480_s24 + $0x18] sm:$0xff] %vm2133_vm5, %v2966_v34  ;;  %v2965_v29 = vadd.f32 %v2949_v36, %v7178_v28  ;;  %v2623_v25 = vand.u32 2147483648, %v6401_v17  ;;  %v2940_v8 = vsub.f32 %v6519_v18, %v7179_v10  ;;  %v6551_v9 = vmul.f32 %v6305_v22, %v7181_v20  ;;  %v6555_v43 = vpop.f32.mrb[35].mxu0  ;;  %v7185_v22 = vld [vmem:[#allocation97_spill] sm:$0xff]  ;;  %v7194_v10 = vld [vmem:[#allocation95_spill] sm:$0xff] }
 0x212   : > { %v2968_v50 = vadd.f32 %v2952_v14, %v7180_v39  ;;  %v2619_v26 = vmul.f32 %v4072_v48, %v6401_v17  ;;  %v2939_v45 = vsub.f32 %v6525_v55, %v7182_v37  ;;  %v6561_v35 = vmul.f32 %v6289_v51, %v7183_v47  ;;  %v7189_v14 = vld [vmem:[#allocation101_spill] sm:$0xff] }
 0x213   : > { %2981 = vst.msk [vmem:[%s6480_s24 + $0x10] sm:$0xff] %vm2133_vm5, %v2965_v29  ;;  %v2942_v46 = vsub.f32 %v6545_v6, %v7184_v42  ;;  %v6567_v57 = vmul.f32 %v6340_v24, %v6335_v61  ;;  %v2941_v13 = vsub.f32 %v6555_v43, %v7185_v22  ;;  %vm2622_vm7 = vcmp.eq.f32.partialorder %v6401_v17, 0.0  ;;  %v6580_v61 = vpop.f32.mrb[36].mxu0  ;;  %v7186_v24 = vld [vmem:[#allocation109_spill] sm:$0xff]  ;;  %v7197_v43 = vld [vmem:[#allocation103_spill] sm:$0xff] }
 0x214   : > { %v4074_v56 = vpop.eup %4073  ;;  %2984 = vst.msk [vmem:[%s6480_s24 + $0x28] sm:$0xff] %vm2133_vm5, %v2968_v50  ;;  %v2621_v3 = vsel %vm2620_vm6, %v6401_v17, %v2619_v26  ;;  %4081 = vrsqrt.f32 %v6551_v9  ;;  %v3309_v51 = vadd.f32 -1.0, %v2525_v38  ;;  %v2524_v41 = vmul.f32 %v7186_v24, %v7186_v24  ;;  %v6587_v23 = vpop.f32.mrb[37].mxu0  ;;  %v7192_v39 = vld [vmem:[#allocation93_spill] sm:$0xff] }
 0x215   : > { %v2624_v15 = vsel %vm2622_vm7, %v2623_v25, %v2621_v3  ;;  %v2640_v62 = vmul.f32 %v4074_v56, %v6411_v59  ;;  %4083 = vrsqrt.f32 %v6561_v35  ;;  %vm2641_vm8 = vcmp.eq.f32.partialorder %v6411_v59, inf }
 0x216   : > { %v2951_v4 = vmul.f32 %v2935_v58, %v2624_v15  ;;  %vm2643_vm9 = vcmp.eq.f32.partialorder %v6411_v59, 0.0  ;;  %v2644_v17 = vand.u32 2147483648, %v6411_v59  ;;  %vm2634_vm0 = vcmp.eq.f32.partialorder %v6415_v52, inf  ;;  %v6605_v34 = vpop.f32.mrb[38].mxu0 }
 0x217   : > { %v4076_v44 = vpop.eup %4075  ;;  %v2642_v19 = vsel %vm2641_vm8, %v6411_v59, %v2640_v62  ;;  %vm2636_vm10 = vcmp.eq.f32.partialorder %v6415_v52, 0.0  ;;  %4085 = vrsqrt.f32 %v6567_v57  ;;  %v2637_v32 = vand.u32 2147483648, %v6415_v52  ;;  %v7188_v59 = vld [vmem:[#allocation98_spill] sm:$0xff]  ;;  %v6617_v49 = vpop.f32.mrb[39].mxu0 }
 0x218   : > { %v2967_v58 = vadd.f32 %v2951_v4, %v7187_v60  ;;  %v2645_v2 = vsel %vm2643_vm9, %v2644_v17, %v2642_v19  ;;  %v2633_v30 = vmul.f32 %v4076_v44, %v6415_v52  ;;  %v4078_v54 = vpop.eup %4077  ;;  %v6598_v16 = vmul.f32 %v6319_v21, %v6338_v7  ;;  %v7190_v7 = vld [vmem:[#allocation102_spill] sm:$0xff] }
 0x219   : > { %v2954_v11 = vmul.f32 %v2938_v5, %v2645_v2  ;;  %v2944_v40 = vsub.f32 %v6580_v61, %v7188_v59  ;;  %v6603_v31 = vmul.f32 %v6390_v33, %v3306_v12  ;;  %v2943_v5 = vsub.f32 %v6587_v23, %v7189_v14  ;;  %v7191_v33 = vld [vmem:[#allocation91_spill] sm:$0xff] }
 0x21a   : > { %v4080_v36 = vpop.eup %4079  ;;  %2983 = vst.msk [vmem:[%s6480_s24 + $0x20] sm:$0xff] %vm2133_vm5, %v2967_v58  ;;  %v2635_v53 = vsel %vm2634_vm0, %v6415_v52, %v2633_v30  ;;  %v6613_v21 = vmul.f32 %v6362_v1, %v3309_v51  ;;  %v2946_v63 = vsub.f32 %v6605_v34, %v7190_v7  ;;  %4087 = vrsqrt.f32 %v6598_v16  ;;  %v7193_v51 = vld [vmem:[#allocation107_spill] sm:$0xff] }
 0x21b   : > { %v2970_v12 = vadd.f32 %v2954_v11, %v7191_v33  ;;  %v2638_v38 = vsel %vm2636_vm10, %v2637_v32, %v2635_v53  ;;  %v2654_v48 = vmul.f32 %v4080_v36, %v6433_v27  ;;  %vm2655_vm11 = vcmp.eq.f32.partialorder %v6433_v27, inf  ;;  %v7195_v30 = vld [vmem:[#allocation99_spill] sm:$0xff] }
 0x21c   : > { %v2953_v28 = vmul.f32 %v2937_v0, %v2638_v38  ;;  %v2658_v1 = vand.u32 2147483648, %v6433_v27  ;;  %vm2657_vm12 = vcmp.eq.f32.partialorder %v6433_v27, 0.0  ;;  %4089 = vrsqrt.f32 %v6603_v31 }
 0x21d   : > { %2986 = vst.msk [vmem:[%s6480_s24 + $0x38] sm:$0xff] %vm2133_vm5, %v2970_v12  ;;  %v2656_v29 = vsel %vm2655_vm11, %v6433_v27, %v2654_v48  ;;  %v3308_v52 = vadd.f32 -1.0, %v2524_v41  ;;  %vm2648_vm13 = vcmp.eq.f32.partialorder %v6551_v9, inf  ;;  %4091 = vrsqrt.f32 %v6613_v21 }
 0x21e   : > { %v4082_v25 = vpop.eup %4081  ;;  %v2969_v50 = vadd.f32 %v2953_v28, %v7192_v39  ;;  %v2659_v26 = vsel %vm2657_vm12, %v2658_v1, %v2656_v29  ;;  %vm2650_vm14 = vcmp.eq.f32.partialorder %v6551_v9, 0.0  ;;  %v2651_v27 = vand.u32 2147483648, %v6551_v9 }
 0x21f   : > { %v4084_v0 = vpop.eup %4083  ;;  %v2956_v20 = vmul.f32 %v2940_v8, %v2659_v26  ;;  %v2647_v47 = vmul.f32 %v4082_v25, %v6551_v9  ;;  %vm2669_vm15 = vcmp.eq.f32.partialorder %v6561_v35, inf  ;;  %v6644_v3 = vmul.f32 %v4078_v54, %v3308_v52  ;;  %v7198_v25 = vld [vmem:[#allocation104_spill] sm:$0xff] }
 0x220   : > { %2985 = vst.msk [vmem:[%s6480_s24 + $0x30] sm:$0xff] %vm2133_vm5, %v2969_v50  ;;  %v2668_v56 = vmul.f32 %v4084_v0, %v6561_v35  ;;  %v2945_v15 = vsub.f32 %v6617_v49, %v7193_v51  ;;  %vm2671_vm1 = vcmp.eq.f32.partialorder %v6561_v35, 0.0  ;;  %v2672_v24 = vand.u32 2147483648, %v6561_v35  ;;  %v7200_v0 = vld [vmem:[#allocation108_spill] sm:$0xff] }
 0x221   : > { %v4086_v18 = vpop.eup %4085  ;;  %v2972_v8 = vadd.f32 %v2956_v20, %v7194_v10  ;;  %v2649_v62 = vsel %vm2648_vm13, %v6551_v9, %v2647_v47  ;;  %4093 = vrsqrt.f32 %v6644_v3  ;;  %vm2662_vm2 = vcmp.eq.f32.partialorder %v6567_v57, inf  ;;  %v1140_v58 = vpop.xlane.xlu0 %1139  ;;  %v7201_v20 = vld [vmem:[#allocation9_spill] sm:$0xff]  ;;  %v7202_v47 = vld [vmem:[#allocation110_spill] sm:$0xff] }
 0x222   : > { %v2652_v41 = vsel %vm2650_vm14, %v2651_v27, %v2649_v62  ;;  %v2670_v4 = vsel %vm2669_vm15, %v6561_v35, %v2668_v56  ;;  %v2661_v17 = vmul.f32 %v4086_v18, %v6567_v57  ;;  %v2665_v9 = vand.u32 2147483648, %v6567_v57  ;;  %v7203_v56 = vld [vmem:[#allocation111_spill] sm:$0xff]  ;;  %v7204_v62 = vld [vmem:[#allocation113_spill] sm:$0xff] }
 0x223   : > { %2988 = vst.msk [vmem:[%s6480_s24 + $0x48] sm:$0xff] %vm2133_vm5, %v2972_v8  ;;  %v2955_v44 = vmul.f32 %v2939_v45, %v2652_v41  ;;  %v2673_v19 = vsel %vm2671_vm1, %v2672_v24, %v2670_v4  ;;  %vm2664_vm3 = vcmp.eq.f32.partialorder %v6567_v57, 0.0  ;;  %v7196_v45 = vld [vmem:[#allocation100_spill] sm:$0xff]  ;;  %4095 = vrcp.f32 %v1140_v58 }
 0x224   : > { %v2958_v35 = vmul.f32 %v2942_v46, %v2673_v19  ;;  %v2663_v60 = vsel %vm2662_vm2, %v6567_v57, %v2661_v17  ;;  %v4088_v2 = vpop.eup %4087  ;;  %vm2683_vm6 = vcmp.eq.f32.partialorder %v6598_v16, inf  ;;  %vm2685_vm7 = vcmp.eq.f32.partialorder %v6598_v16, 0.0  ;;  %v7205_v58 = vld [vmem:[#allocation112_spill] sm:$0xff] }
 0x225   : > { %v2971_v55 = vadd.f32 %v2955_v44, %v7195_v30  ;;  %v2666_v37 = vsel %vm2664_vm3, %v2665_v9, %v2663_v60  ;;  %v2682_v11 = vmul.f32 %v4088_v2, %v6598_v16  ;;  %v2686_v42 = vand.u32 2147483648, %v6598_v16  ;;  %v1156_v38 = vpop.xlane.xlu0 %1155 }
 0x226   : > { %v2974_v32 = vadd.f32 %v2958_v35, %v7196_v45  ;;  %v2957_v54 = vmul.f32 %v2941_v13, %v2666_v37  ;;  %v4090_v6 = vpop.eup %4089  ;;  %vm2676_vm8 = vcmp.eq.f32.partialorder %v6603_v31, inf  ;;  %vm2678_vm9 = vcmp.eq.f32.partialorder %v6603_v31, 0.0  ;;  %v1138_v12 = vpop.xlane.xlu1 %1137  ;;  %v7206_v37 = vld [vmem:[#allocation16_spill] sm:$0xff] }
 0x227   : > { %2987 = vst.msk [vmem:[%s6480_s24 + $0x40] sm:$0xff] %vm2133_vm5, %v2971_v55  ;;  %v4092_v46 = vpop.eup %4091  ;;  %v2684_v22 = vsel %vm2683_vm6, %v6598_v16, %v2682_v11  ;;  %v2675_v13 = vmul.f32 %v4090_v6, %v6603_v31  ;;  %v2679_v53 = vand.u32 2147483648, %v6603_v31  ;;  %vm2697_vm0 = vcmp.eq.f32.partialorder %v6613_v21, inf }
 0x228   : > { %2990 = vst.msk [vmem:[%s6480_s24 + $0x58] sm:$0xff] %vm2133_vm5, %v2974_v32  ;;  %v2973_v57 = vadd.f32 %v2957_v54, %v7197_v43  ;;  %v2687_v36 = vsel %vm2685_vm7, %v2686_v42, %v2684_v22  ;;  %v2696_v33 = vmul.f32 %v4092_v46, %v6613_v21  ;;  %v2700_v28 = vand.u32 2147483648, %v6613_v21  ;;  %v7207_v42 = vld [vmem:[#allocation11_spill] sm:$0xff]  ;;  %v7208_v22 = vld [vmem:[#allocation18_spill] sm:$0xff] }
 0x229   : > { %v2960_v16 = vmul.f32 %v2944_v40, %v2687_v36  ;;  %v2677_v48 = vsel %vm2676_vm8, %v6603_v31, %v2675_v13  ;;  %4097 = vrcp.f32 %v1138_v12  ;;  %vm2699_vm10 = vcmp.eq.f32.partialorder %v6613_v21, 0.0 }
 0x22a   : > { %2989 = vst.msk [vmem:[%s6480_s24 + $0x50] sm:$0xff] %vm2133_vm5, %v2973_v57  ;;  %v2680_v1 = vsel %vm2678_vm9, %v2679_v53, %v2677_v48  ;;  %v2698_v29 = vsel %vm2697_vm0, %v6613_v21, %v2696_v33  ;;  %v7199_v21 = vld [vmem:[#allocation105_spill] sm:$0xff]  ;;  %vm2690_vm11 = vcmp.eq.f32.partialorder %v6644_v3, inf  ;;  %v2693_v26 = vand.u32 2147483648, %v6644_v3  ;;  %v1144_v34 = vpop.xlane.xlu0 %1143 }
 0x22b   : > { %v4094_v52 = vpop.eup %4093  ;;  %v2976_v39 = vadd.f32 %v2960_v16, %v7198_v25  ;;  %v2959_v61 = vmul.f32 %v2943_v5, %v2680_v1  ;;  %v2701_v59 = vsel %vm2699_vm10, %v2700_v28, %v2698_v29  ;;  %vm2692_vm12 = vcmp.eq.f32.partialorder %v6644_v3, 0.0  ;;  %v7210_v29 = vld [vmem:[#allocation26_spill] sm:$0xff] }
 0x22c   : > { %v2962_v40 = vmul.f32 %v2946_v63, %v2701_v59  ;;  %v2689_v31 = vmul.f32 %v4094_v52, %v6644_v3  ;;  %vm1201_vm13 = vcmp.eq.s32.totalorder %v7201_v20, 4  ;;  %4099 = vrcp.f32 %v1156_v38  ;;  %v7209_v38 = vld [vmem:[#allocation15_spill] sm:$0xff] }
 0x22d   : > { %2992 = vst.msk [vmem:[%s6480_s24 + $0x68] sm:$0xff] %vm2133_vm5, %v2976_v39  ;;  %v2975_v50 = vadd.f32 %v2959_v61, %v7199_v21  ;;  %v4096_v5 = vpop.eup %4095  ;;  %v4192_v10 = vmov 0.0   ;;  %4101 = vrcp.f32 %v1144_v34 }
 0x22e   : > { %v2978_v23 = vadd.f32 %v2962_v40, %v7200_v0  ;;  %v2691_v14 = vsel %vm2690_vm11, %v6644_v3, %v2689_v31  ;;  %v1186_v18 = vmul.f32 %v4096_v5, %v7203_v56  ;;  %v6724_v8 = vsel %vm1201_vm13, 1.0, %v4192_v10  ;;  %v1160_v49 = vpop.xlane.xlu0 %1159  ;;  %v7211_v40 = vld [vmem:[#allocation20_spill] sm:$0xff]  ;;  %v7214_v56 = vld [vmem:[#allocation27_spill] sm:$0xff] }
 0x22f   : > { %2991 = vst.msk [vmem:[%s6480_s24 + $0x60] sm:$0xff] %vm2133_vm5, %v2975_v50  ;;  %v2694_v7 = vsel %vm2692_vm12, %v2693_v26, %v2691_v14  ;;  %v7212_v26 = vld [vmem:[#allocation30_spill] sm:$0xff] }
 0x230   : > { %2994 = vst.msk [vmem:[%s6480_s24 + $0x78] sm:$0xff] %vm2133_vm5, %v2978_v23  ;;  %v2961_v63 = vmul.f32 %v2945_v15, %v2694_v7  ;;  %v1204_v15 = vsel %vm1040_vm4, %v1186_v18, %v6724_v8  ;;  %v7213_v7 = vld [vmem:[#allocation23_spill] sm:$0xff] }
 0x231   : > { %v1154_v51 = vpop.xlane.xlu1 %1153 }
 0x232   : > { %v2977_v27 = vadd.f32 %v2961_v63, %v7202_v47  ;;  %4103 = vrcp.f32 %v1154_v51 }
 0x233   : > { %v4098_v3 = vpop.eup %4097  ;;  %4105 = vrcp.f32 %v1160_v49 }
 0x234   : > { %2993 = vst.msk [vmem:[%s6480_s24 + $0x70] sm:$0xff] %vm2133_vm5, %v2977_v27  ;;  %v1185_v24 = vmul.f32 %v4098_v3, %v7204_v62 }
 0x235   : > { %v1142_v44 = vpop.xlane.xlu1 %1141 }
 0x236   : > { %v1203_v41 = vsel %vm1040_vm4, %v1185_v24, %v6724_v8  ;;  %v1148_v17 = vpop.xlane.xlu0 %1147  ;;  %4107 = vrcp.f32 %v1142_v44  ;;  %v4100_v19 = vpop.eup %4099  ;;  %v7215_v24 = vld [vmem:[#allocation21_spill] sm:$0xff] }
 0x237   : > { %v3351_v4 = vpack.c.bf16 %v1204_v15, %v1203_v41  ;;  %4109 = vrcp.f32 %v1148_v17  ;;  %v4102_v60 = vpop.eup %4101  ;;  %v1194_v2 = vmul.f32 %v4100_v19, %v7205_v58  ;;  %v7216_v41 = vld [vmem:[#allocation37_spill] sm:$0xff]  ;;  %v7217_v19 = vld [vmem:[#allocation24_spill] sm:$0xff]  ;;  %v7218_v58 = vld [vmem:[#allocation39_spill] sm:$0xff] }
 0x238   : > { %v1188_v46 = vmul.f32 %v4102_v60, %v7207_v42 }
 0x239   : > { %3352 = vst [vmem:[%s6737_s26] sm:$0xff] %v3351_v4   ;;  %v1212_v11 = vsel %vm1040_vm4, %v1194_v2, %v6724_v8 }
 0x23a   : > { %v1164_v9 = vpop.xlane.xlu0 %1163  ;;  %v1206_v12 = vsel %vm1040_vm4, %v1188_v46, %v6724_v8 }
 0x23b   : > { %v1158_v35 = vpop.xlane.xlu1 %1157 }
 0x23c   : > { %4111 = vrcp.f32 %v1158_v35  ;;  %v4104_v30 = vpop.eup %4103 }
 0x23d   : > { %v1193_v45 = vmul.f32 %v4104_v30, %v7206_v37  ;;  %4113 = vrcp.f32 %v1164_v9  ;;  %v4106_v54 = vpop.eup %4105 }
 0x23e   : > { %v1152_v55 = vpop.xlane.xlu0 %1151  ;;  %v1196_v16 = vmul.f32 %v4106_v54, %v7209_v38 }
 0x23f   : > { %v1146_v32 = vpop.xlane.xlu1 %1145  ;;  %v1211_v6 = vsel %vm1040_vm4, %v1193_v45, %v6724_v8 }
 0x240   : > { %4115 = vrcp.f32 %v1146_v32  ;;  %v4108_v43 = vpop.eup %4107  ;;  %v3371_v57 = vpack.c.bf16 %v1212_v11, %v1211_v6  ;;  %v1214_v61 = vsel %vm1040_vm4, %v1196_v16, %v6724_v8 }
 0x241   : > { %v1187_v13 = vmul.f32 %v4108_v43, %v7208_v22  ;;  %4117 = vrcp.f32 %v1152_v55  ;;  %v4110_v33 = vpop.eup %4109 }
 0x242   : > { %3391 = vst [vmem:[%s6737_s26 + $0x20] sm:$0xff] %v3371_v57   ;;  %v1168_v53 = vpop.xlane.xlu0 %1167  ;;  %v1190_v31 = vmul.f32 %v4110_v33, %v7211_v40 }
 0x243   : > { %v1162_v36 = vpop.xlane.xlu1 %1161  ;;  %v1205_v48 = vsel %vm1040_vm4, %v1187_v13, %v6724_v8 }
 0x244   : > { %4119 = vrcp.f32 %v1162_v36  ;;  %v3356_v1 = vpack.c.bf16 %v1206_v12, %v1205_v48  ;;  %v1208_v34 = vsel %vm1040_vm4, %v1190_v31, %v6724_v8 }
 0x245   : > { %4121 = vrcp.f32 %v1168_v53 }
 0x246   : > { %v4112_v28 = vpop.eup %4111  ;;  %3388 = vst [vmem:[%s6737_s26 + $0x8] sm:$0xff] %v3356_v1  }
 0x247   : > { %v1195_v52 = vmul.f32 %v4112_v28, %v7210_v29  ;;  %v1150_v25 = vpop.xlane.xlu1 %1149  ;;  %v4114_v39 = vpop.eup %4113 }
 0x248   : > { %4123 = vrcp.f32 %v1150_v25  ;;  %v1198_v63 = vmul.f32 %v4114_v39, %v7213_v7 }
 0x249   : > { %v1213_v59 = vsel %vm1040_vm4, %v1195_v52, %v6724_v8 }
 0x24a   : > { %v4116_v21 = vpop.eup %4115  ;;  %v3376_v50 = vpack.c.bf16 %v1214_v61, %v1213_v59  ;;  %v1216_v10 = vsel %vm1040_vm4, %v1198_v63, %v6724_v8 }
 0x24b   : > { %v1189_v0 = vmul.f32 %v4116_v21, %v7212_v26  ;;  %v1166_v23 = vpop.xlane.xlu1 %1165  ;;  %v4118_v14 = vpop.eup %4117 }
 0x24c   : > { %3392 = vst [vmem:[%s6737_s26 + $0x28] sm:$0xff] %v3376_v50   ;;  %4125 = vrcp.f32 %v1166_v23  ;;  %v1192_v49 = vmul.f32 %v4118_v14, %v7215_v24 }
 0x24d   : > { %v1207_v5 = vsel %vm1040_vm4, %v1189_v0, %v6724_v8 }
 0x24e   : > { %v4120_v47 = vpop.eup %4119  ;;  %v3361_v27 = vpack.c.bf16 %v1208_v34, %v1207_v5  ;;  %v1210_v17 = vsel %vm1040_vm4, %v1192_v49, %v6724_v8 }
 0x24f   : > { %v1197_v18 = vmul.f32 %v4120_v47, %v7214_v56  ;;  %v4122_v3 = vpop.eup %4121 }
 0x250   : > { %3389 = vst [vmem:[%s6737_s26 + $0x10] sm:$0xff] %v3361_v27   ;;  %v1200_v9 = vmul.f32 %v4122_v3, %v7217_v19 }
 0x251   : > { %v1215_v62 = vsel %vm1040_vm4, %v1197_v18, %v6724_v8 }
 0x252   : > { %v4124_v51 = vpop.eup %4123  ;;  %v3381_v15 = vpack.c.bf16 %v1216_v10, %v1215_v62  ;;  %v1218_v30 = vsel %vm1040_vm4, %v1200_v9, %v6724_v8 }
 0x253   : > { %v1191_v4 = vmul.f32 %v4124_v51, %v7216_v41 }
 0x254   : > { %3393 = vst [vmem:[%s6737_s26 + $0x30] sm:$0xff] %v3381_v15  }
 0x255   : > { %v1209_v44 = vsel %vm1040_vm4, %v1191_v4, %v6724_v8 }
 0x256   : > { %v4126_v35 = vpop.eup %4125  ;;  %v3366_v60 = vpack.c.bf16 %v1210_v17, %v1209_v44 }
 0x257   : > { %v1199_v2 = vmul.f32 %v4126_v35, %v7218_v58 }
 0x258   : > { %3390 = vst [vmem:[%s6737_s26 + $0x18] sm:$0xff] %v3366_v60  }
 0x259   : > { %v1217_v55 = vsel %vm1040_vm4, %v1199_v2, %v6724_v8 }
 0x25a   : > { %v3386_v37 = vpack.c.bf16 %v1218_v30, %v1217_v55 }
 0x25c   : > { %3394 = vst [vmem:[%s6737_s26 + $0x38] sm:$0xff] %v3386_v37  }
 0x25d   : > { %4140 = shalt.err (!%p4137_p3)
}
 0x25e   : > { %s4141_s23 = scalar_lea.hbm %s6807_s11, 1024  ;;  %s4145_s25 = scalar_lea.hbm %s6862_s7, 2048 }
 0x25f   : > { %p4142_p4 = scmp.ne.s32.totalorder %s6807_s11, %s4141_s23  ;;  %p4146_p9 = scmp.lt.u32.totalorder %s6807_s11, %s6862_s7 }
 0x260   : > { %p4147_p10 = scmp.lt.u32.totalorder %s4145_s25, %s4141_s23  ;;  %p4149_p12 = scmp.lt.u32.totalorder %s4141_s23, %s6807_s11 }
 0x261   : > { %p4143_p7 = pnand %p4142_p4, %p4290_p5 }
 0x262   : > { %p4148_p11 = por %p4147_p10, %p4146_p9 }
 0x263   : > { %p4144_p8 = pneg %p4143_p7 }
 0x264   : > { %p4150_p13 = por %p4149_p12, %p4148_p11 }
 0x266   : > { %p4151_p0 = pnand %p4150_p13, %p4144_p8 }
 0x268   : > { %4154 = shalt.err (!%p4151_p0)
}
 0x269   : > { %s4194_s30 = smov 64   ;;  %s4195_s10 = smov 4  }
 0x26a   : > { %3630 = dma.vmem_to_hbm [thread:$0]  (%p4290_p5), %s6809_s29, 1024, %s6807_s11, %s6814_s5, %s4194_s30, %s4194_s30, %s4195_s10  }
 0x26b PF: > { %p3636_p1 = scmp.ge.s32.totalorder %s4189_s16, 2  ;;  %s3042_s12 = sand.u32 1, %s4177_s13  }
 0x26c   : > { %s3043_s6 = scalar_lea.sflag [#allocation5], %s3042_s12 }
 0x26d   : > { %p3633_p2 = pnand %p3636_p1, %p4294_p6 }
 0x26f   : > { %4172 = dma.done.wait (!%p3633_p2), %s3043_s6, 1024  }
 0x270   : > { %4174 = vsyncadd (!%p3633_p2), %s3043_s6, 4294966272  ;;  %p22_p3 = scmp.ge.s32.totalorder %s4277_s17, 4   ;;  %s7219_s13 = smov %s4181_s14 }
 0x271   : > { %s7220_s14 = smov %s4185_s15  ;;  %s7221_s15 = smov %s4288_s20 }
 0x272   : > { %s7222_s16 = smov %s4277_s17  ;;  %24 = sbr.rel (!%p22_p3) target bundleno = 6 (0x6), region = 107 }
 0x279   :  { %3064 = vsyncpa [#allocation5], 1 }
 0x27a   :  { %3066 = vsyncpa [#allocation5 + $0x1], 1 }

</bundles_post_ra>
